<compile_context>
chip_gen: v7x
topology: tpu7x:2x2x1
jax: 0.10.0
libtpu: 0.0.40
codegen_flags: <defaults>
</compile_context>

<pallas_src>
from functools import partial

import jax
import jax.numpy as jnp
from jax.experimental import pallas as pl
from jax.experimental.pallas import tpu as pltpu

LANE = 128  # lane-dense output width (all Couts here are < 128)


# ----------------------------- Pallas kernels ------------------------------ #

def _gemm_bias_lrelu_kernel(p_ref, w_ref, b_ref, o_ref):
    """One M-tile of: y = patches @ W + b, fused LeakyReLU(0.2). Lane-dense out."""
    y = jnp.dot(p_ref[...], w_ref[...], preferred_element_type=jnp.float32)
    y = y + b_ref[...]
    o_ref[...] = jnp.where(y >= 0.0, y, 0.2 * y)


def _conv_bn_lrelu_kernel(p_ref, w_ref, g_ref, bt_ref, o_ref, *, m):
    """Whole-layer fused conv + train-mode BatchNorm + LeakyReLU(0.2).

    The full (M, 128) activation stays resident in VMEM; batch statistics are
    computed in-kernel (two-pass: mean, then centered sum of squares).
    Conv bias is omitted: it cancels exactly under the BN mean subtraction.
    """
    y = jnp.dot(p_ref[...], w_ref[...], preferred_element_type=jnp.float32)
    mean = jnp.sum(y, axis=0, keepdims=True) * (1.0 / m)
    d = y - mean
    var = jnp.sum(d * d, axis=0, keepdims=True) * (1.0 / m)   # biased (train mode)
    z = d * (g_ref[...] * jax.lax.rsqrt(var + 1e-5)) + bt_ref[...]
    o_ref[...] = jnp.where(z >= 0.0, z, 0.2 * z)


def _conv_bn_lrelu_head_kernel(p_ref, w_ref, g_ref, bt_ref,
                               w5_ref, grp_ref, b5_ref, o_ref, *, m):
    """Layer 4 (conv+BN+LeakyReLU) fused with the final 4x4/s2/p0 conv + Sigmoid.

    w5_ref[r, c] holds the final-conv weight for spatial tap (r % 16) and
    channel c (batch-tiled, zero-padded lanes), so the final logit per sample n
    is sum over its 16 rows / 128 lanes of a * w5. grp_ref is the (N, M)
    0/1 matrix summing the 16 rows belonging to each sample.
    """
    y = jnp.dot(p_ref[...], w_ref[...], preferred_element_type=jnp.float32)
    mean = jnp.sum(y, axis=0, keepdims=True) * (1.0 / m)
    d = y - mean
    var = jnp.sum(d * d, axis=0, keepdims=True) * (1.0 / m)
    z = d * (g_ref[...] * jax.lax.rsqrt(var + 1e-5)) + bt_ref[...]
    a = jnp.where(z >= 0.0, z, 0.2 * z)                        # (M, 128) layer-4 act.
    s = jnp.dot(grp_ref[...], a * w5_ref[...],
                preferred_element_type=jnp.float32)            # (N, 128)
    logit = jnp.sum(s, axis=-1, keepdims=True) + b5_ref[...]   # (N, 1)
    o_ref[...] = 1.0 / (1.0 + jnp.exp(-logit))                 # sigmoid


# ------------------------------ JAX glue ----------------------------------- #

def _pad_cols(a, width):
    """Zero-pad the last dim of `a` up to `width` (lane-dense layout)."""
    pad = width - a.shape[-1]
    if pad <= 0:
        return a
    return jnp.pad(a, [(0, 0)] * (a.ndim - 1) + [(0, pad)])


def im2col(x_nhwc, kh, kw, stride, pad):
    """Extract (kh, kw) patches. Returns (patches (N*oh*ow, kh*kw*C), oh, ow).

    Per-patch flattening order = (ki, kj, c)."""
    x = jnp.pad(x_nhwc, ((0, 0), (pad, pad), (pad, pad), (0, 0)))
    n, hp, wp, c = x.shape
    oh = (hp - kh) // stride + 1
    ow = (wp - kw) // stride + 1
    pieces = []
    for i in range(kh):
        for j in range(kw):
            pieces.append(
                x[:, i:i + (oh - 1) * stride + 1:stride,
                     j:j + (ow - 1) * stride + 1:stride, :])
    patches = jnp.stack(pieces, axis=3)  # (N, oh, ow, kh*kw, C)
    return patches.reshape(n * oh * ow, kh * kw * c), oh, ow


def conv_lrelu(x_nhwc, w, b):
    """Layer 1: Conv2d(k=4,s=2,p=1) + bias + LeakyReLU(0.2)."""
    n = x_nhwc.shape[0]
    c_out = w.shape[1]
    patches, oh, ow = im2col(x_nhwc, 4, 4, 2, 1)
    m, k = patches.shape
    w_p = _pad_cols(w, LANE)
    b_p = _pad_cols(b, LANE)
    tm = next(t for t in (1024, 512, 256) if m % t == 0 and t <= m) if m >= 256 else m
    y = pl.pallas_call(
        _gemm_bias_lrelu_kernel,
        out_shape=jax.ShapeDtypeStruct((m, LANE), jnp.float32),
        grid=(m // tm,),
        in_specs=[
            pl.BlockSpec((tm, k), lambda i: (i, 0)),
            pl.BlockSpec((k, LANE), lambda i: (0, 0)),
            pl.BlockSpec((1, LANE), lambda i: (0, 0)),
        ],
        out_specs=pl.BlockSpec((tm, LANE), lambda i: (i, 0)),
        compiler_params=pltpu.CompilerParams(dimension_semantics=("parallel",)),
    )(patches, w_p, b_p)
    return y[:, :c_out].reshape(n, oh, ow, c_out)


def conv_bn_lrelu(x_nhwc, w, gamma, beta):
    """Layers 2-3: Conv2d(k=4,s=2,p=1) + BatchNorm2d(batch stats) + LeakyReLU."""
    n = x_nhwc.shape[0]
    c_out = w.shape[1]
    patches, oh, ow = im2col(x_nhwc, 4, 4, 2, 1)
    m, k = patches.shape
    w_p = _pad_cols(w, LANE)
    g_p = _pad_cols(gamma.reshape(1, -1), LANE)
    bt_p = _pad_cols(beta.reshape(1, -1), LANE)
    y = pl.pallas_call(
        partial(_conv_bn_lrelu_kernel, m=m),
        out_shape=jax.ShapeDtypeStruct((m, LANE), jnp.float32),
        grid=(1,),
        in_specs=[
            pl.BlockSpec((m, k), lambda i: (0, 0)),
            pl.BlockSpec((k, LANE), lambda i: (0, 0)),
            pl.BlockSpec((1, LANE), lambda i: (0, 0)),
            pl.BlockSpec((1, LANE), lambda i: (0, 0)),
        ],
        out_specs=pl.BlockSpec((m, LANE), lambda i: (0, 0)),
    )(patches, w_p, g_p, bt_p)
    return y[:, :c_out].reshape(n, oh, ow, c_out)


def conv_bn_lrelu_head(x_nhwc, w4, gamma, beta, w5, b5):
    """Layer 4 (conv+BN+LeakyReLU) fused with layer 5 (conv k=4,s=2,p=0 + Sigmoid)."""
    n = x_nhwc.shape[0]
    c4 = w4.shape[1]
    patches, oh, ow = im2col(x_nhwc, 4, 4, 2, 1)     # oh = ow = 4 here
    m, k = patches.shape
    taps = oh * ow                                   # 16 spatial taps of the 4x4 head conv
    w4_p = _pad_cols(w4, LANE)
    g_p = _pad_cols(gamma.reshape(1, -1), LANE)
    bt_p = _pad_cols(beta.reshape(1, -1), LANE)
    # w5: (taps*c4, 1) flattened in (ki, kj, c) order -> (taps, c4), lane-pad,
    # batch-tile so w5t[row, c] matches layer-4 activation row layout.
    w5t = jnp.tile(_pad_cols(w5.reshape(taps, c4), LANE), (n, 1))        # (m, 128)
    grp = (jnp.arange(n)[:, None] ==
           (jnp.arange(m)[None, :] // taps)).astype(jnp.float32)         # (n, m)
    b5b = jnp.broadcast_to(b5.reshape(1, 1), (n, 1)).astype(jnp.float32)  # (n, 1)
    return pl.pallas_call(
        partial(_conv_bn_lrelu_head_kernel, m=m),
        out_shape=jax.ShapeDtypeStruct((n, 1), jnp.float32),
        grid=(1,),
        in_specs=[
            pl.BlockSpec((m, k), lambda i: (0, 0)),
            pl.BlockSpec((k, LANE), lambda i: (0, 0)),
            pl.BlockSpec((1, LANE), lambda i: (0, 0)),
            pl.BlockSpec((1, LANE), lambda i: (0, 0)),
            pl.BlockSpec((m, LANE), lambda i: (0, 0)),
            pl.BlockSpec((n, m), lambda i: (0, 0)),
            pl.BlockSpec((n, 1), lambda i: (0, 0)),
        ],
        out_specs=pl.BlockSpec((n, 1), lambda i: (0, 0)),
    )(patches, w4_p, g_p, bt_p, w5t, grp, b5b)


def init_params(key, img_channels, hidden_dim):
    ch = [img_channels, hidden_dim, hidden_dim * 2, hidden_dim * 4,
          hidden_dim * 8, 1]
    ks = jax.random.split(key, 10)
    params = {}
    # layer 1: conv (+bias) + LeakyReLU. GEMM weight layout: (4*4*Cin, Cout),
    # rows flattened in (ki, kj, c) order.
    params["l1"] = (0.02 * jax.random.normal(ks[0], (16 * ch[0], ch[1]), jnp.float32),
                    0.01 * jax.random.normal(ks[1], (1, ch[1]), jnp.float32))
    # layers 2-4: conv + BN + LeakyReLU. Conv bias omitted: it cancels exactly
    # under the train-mode BatchNorm mean subtraction.
    for li, name in enumerate(("l2", "l3", "l4")):
        cin, cout = ch[li + 1], ch[li + 2]
        params[name] = (0.02 * jax.random.normal(ks[2 + li], (16 * cin, cout), jnp.float32),
                        jnp.ones((cout,), jnp.float32),    # gamma
                        jnp.zeros((cout,), jnp.float32))   # beta
    # layer 5: conv (+bias) + Sigmoid
    params["l5"] = (0.02 * jax.random.normal(ks[8], (16 * ch[4], 1), jnp.float32),
                    0.01 * jax.random.normal(ks[9], (1, 1), jnp.float32))
    return params


@jax.jit
def discriminator_forward(x_nchw, params):
    x = jnp.transpose(x_nchw, (0, 2, 3, 1))          # NCHW -> NHWC
    x = conv_lrelu(x, *params["l1"])                 # conv + LeakyReLU
    x = conv_bn_lrelu(x, *params["l2"])              # conv + BN + LeakyReLU
    x = conv_bn_lrelu(x, *params["l3"])              # conv + BN + LeakyReLU
    w5, b5 = params["l5"]
    out = conv_bn_lrelu_head(x, *params["l4"], w5, b5)   # layer 4 + final conv + sigmoid
    return out                                        # (N, 1)  == x.view(N, -1)


# --------------------------------- main ------------------------------------ #

if __name__ == "__main__":
    key = jax.random.PRNGKey(0)
    k_x, k_p = jax.random.split(key)

    # Spatial must be 64 so the final 4x4 stride-2 pad-0 conv (after four
    # stride-2 halvings) sees a 4x4 feature map, matching the PyTorch module.
    N, C_IN, H, W = 2, 3, 64, 64
    HIDDEN = 8

    x = jax.random.normal(k_x, (N, C_IN, H, W), jnp.float32)
    params = init_params(k_p, C_IN, HIDDEN)

    out = discriminator_forward(x, params)
    out = jax.block_until_ready(out)

    assert out.shape == (N, 1), out.shape
    assert bool(jnp.all(jnp.isfinite(out)))
    assert bool(jnp.all((out >= 0.0) & (out <= 1.0)))  # sigmoid range
    print("KERNEL_OK")
</pallas_src>

<mosaic_0001>
module attributes {stable_mosaic.version = 11 : i64} {
  func.func @_gemm_bias_lrelu_kernel(%arg0: i32, %arg1: memref<1024x48xf32, #tpu.memory_space<vmem>>, %arg2: memref<48x128xf32, #tpu.memory_space<vmem>>, %arg3: memref<1x128xf32, #tpu.memory_space<vmem>>, %arg4: memref<1024x128xf32, #tpu.memory_space<vmem>>) attributes {dimension_semantics = [#tpu.dimension_semantics<parallel>], iteration_bounds = array<i64: 2>, scalar_prefetch = 0 : i64, scratch_operands = 0 : i64, tpu.core_type = #tpu.core_type<tc>, window_params = [{transform_indices = @transform_0, window_bounds = array<i64: 1024, 48>}, {pipeline_mode = #tpu.pipeline_mode<synchronous>, transform_indices = @transform_1, window_bounds = array<i64: 48, 128>}, {pipeline_mode = #tpu.pipeline_mode<synchronous>, transform_indices = @transform_2, window_bounds = array<i64: 1, 128>}, {transform_indices = @transform_3, window_bounds = array<i64: 1024, 128>}]} {
    %c0 = arith.constant 0 : index
    %c0_0 = arith.constant 0 : index
    %0 = vector.load %arg1[%c0, %c0_0] : memref<1024x48xf32, #tpu.memory_space<vmem>>, vector<1024x48xf32>
    %c0_1 = arith.constant 0 : index
    %c0_2 = arith.constant 0 : index
    %1 = vector.load %arg2[%c0_1, %c0_2] : memref<48x128xf32, #tpu.memory_space<vmem>>, vector<48x128xf32>
    %cst = arith.constant dense<0.000000e+00> : vector<1024x128xf32>
    %2 = tpu.matmul %0, %1, %cst {dimension_numbers = #tpu.dot_dimension_numbers<[1], [0], [0], [1], [0, 0, 1, 1], [], []>} : vector<1024x48xf32>, vector<48x128xf32>, vector<1024x128xf32> -> vector<1024x128xf32>
    %c0_3 = arith.constant 0 : index
    %c0_4 = arith.constant 0 : index
    %3 = vector.load %arg3[%c0_3, %c0_4] : memref<1x128xf32, #tpu.memory_space<vmem>>, vector<1x128xf32>
    %4 = vector.broadcast %3 : vector<1x128xf32> to vector<1024x128xf32>
    %5 = arith.addf %2, %4 : vector<1024x128xf32>
    %cst_5 = arith.constant 0.000000e+00 : f32
    %6 = vector.broadcast %cst_5 : f32 to vector<1024x128xf32>
    %7 = arith.cmpf oge, %5, %6 : vector<1024x128xf32>
    %cst_6 = arith.constant 2.000000e-01 : f32
    %8 = vector.broadcast %cst_6 : f32 to vector<1024x128xf32>
    %9 = arith.mulf %8, %5 : vector<1024x128xf32>
    %10 = arith.select %7, %5, %9 : vector<1024x128xi1>, vector<1024x128xf32>
    %c0_7 = arith.constant 0 : index
    %c0_8 = arith.constant 0 : index
    %11 = vector.load %arg4[%c0_7, %c0_8] : memref<1024x128xf32, #tpu.memory_space<vmem>>, vector<1024x128xf32>
    tpu.vector_store %arg4[%c0_7, %c0_8], %10 {strides = array<i32>} : memref<1024x128xf32, #tpu.memory_space<vmem>>, vector<1024x128xf32>,
    return
  }
  func.func @transform_0(%arg0: i32) -> (i32, i32) {
    %c0_i32 = arith.constant 0 : i32
    %c0_i32_0 = arith.constant 0 : i32
    return %arg0, %c0_i32 : i32, i32
  }
  func.func @transform_1(%arg0: i32) -> (i32, i32) {
    %c0_i32 = arith.constant 0 : i32
    %c0_i32_0 = arith.constant 0 : i32
    %c0_i32_1 = arith.constant 0 : i32
    return %c0_i32, %c0_i32_0 : i32, i32
  }
  func.func @transform_2(%arg0: i32) -> (i32, i32) {
    %c0_i32 = arith.constant 0 : i32
    %c0_i32_0 = arith.constant 0 : i32
    %c0_i32_1 = arith.constant 0 : i32
    return %c0_i32, %c0_i32_0 : i32, i32
  }
  func.func @transform_3(%arg0: i32) -> (i32, i32) {
    %c0_i32 = arith.constant 0 : i32
    %c0_i32_0 = arith.constant 0 : i32
    return %arg0, %c0_i32 : i32, i32
  }
}

module attributes {stable_mosaic.version = 11 : i64} {
  func.func @_conv_bn_lrelu_kernel(%arg0: i32, %arg1: memref<512x128xf32, #tpu.memory_space<vmem>>, %arg2: memref<128x128xf32, #tpu.memory_space<vmem>>, %arg3: memref<1x128xf32, #tpu.memory_space<vmem>>, %arg4: memref<1x128xf32, #tpu.memory_space<vmem>>, %arg5: memref<512x128xf32, #tpu.memory_space<vmem>>) attributes {dimension_semantics = [#tpu.dimension_semantics<arbitrary>], iteration_bounds = array<i64: 1>, scalar_prefetch = 0 : i64, scratch_operands = 0 : i64, tpu.core_type = #tpu.core_type<tc>, window_params = [{pipeline_mode = #tpu.pipeline_mode<synchronous>, transform_indices = @transform_0, window_bounds = array<i64: 512, 128>}, {pipeline_mode = #tpu.pipeline_mode<synchronous>, transform_indices = @transform_1, window_bounds = array<i64: 128, 128>}, {pipeline_mode = #tpu.pipeline_mode<synchronous>, transform_indices = @transform_2, window_bounds = array<i64: 1, 128>}, {pipeline_mode = #tpu.pipeline_mode<synchronous>, transform_indices = @transform_3, window_bounds = array<i64: 1, 128>}, {pipeline_mode = #tpu.pipeline_mode<synchronous>, transform_indices = @transform_4, window_bounds = array<i64: 512, 128>}]} {
    %c0 = arith.constant 0 : index
    %c0_0 = arith.constant 0 : index
    %0 = vector.load %arg1[%c0, %c0_0] : memref<512x128xf32, #tpu.memory_space<vmem>>, vector<512x128xf32>
    %c0_1 = arith.constant 0 : index
    %c0_2 = arith.constant 0 : index
    %1 = vector.load %arg2[%c0_1, %c0_2] : memref<128x128xf32, #tpu.memory_space<vmem>>, vector<128x128xf32>
    %cst = arith.constant dense<0.000000e+00> : vector<512x128xf32>
    %2 = tpu.matmul %0, %1, %cst {dimension_numbers = #tpu.dot_dimension_numbers<[1], [0], [0], [1], [0, 0, 1, 1], [], []>} : vector<512x128xf32>, vector<128x128xf32>, vector<512x128xf32> -> vector<512x128xf32>
    %cst_3 = arith.constant dense<0.000000e+00> : vector<128xf32>
    %3 = vector.multi_reduction <add>, %2, %cst_3 [0] : vector<512x128xf32> to vector<128xf32>
    %4 = vector.shape_cast %3 : vector<128xf32> to vector<1x128xf32>
    %cst_4 = arith.constant 0.001953125 : f32
    %5 = vector.broadcast %cst_4 : f32 to vector<1x128xf32>
    %6 = arith.mulf %4, %5 : vector<1x128xf32>
    %7 = vector.broadcast %6 : vector<1x128xf32> to vector<512x128xf32>
    %8 = arith.subf %2, %7 : vector<512x128xf32>
    %9 = arith.mulf %8, %8 : vector<512x128xf32>
    %cst_5 = arith.constant dense<0.000000e+00> : vector<128xf32>
    %10 = vector.multi_reduction <add>, %9, %cst_5 [0] : vector<512x128xf32> to vector<128xf32>
    %11 = vector.shape_cast %10 : vector<128xf32> to vector<1x128xf32>
    %cst_6 = arith.constant 0.001953125 : f32
    %12 = vector.broadcast %cst_6 : f32 to vector<1x128xf32>
    %13 = arith.mulf %11, %12 : vector<1x128xf32>
    %c0_7 = arith.constant 0 : index
    %c0_8 = arith.constant 0 : index
    %14 = vector.load %arg3[%c0_7, %c0_8] : memref<1x128xf32, #tpu.memory_space<vmem>>, vector<1x128xf32>
    %cst_9 = arith.constant 9.99999974E-6 : f32
    %15 = vector.broadcast %cst_9 : f32 to vector<1x128xf32>
    %16 = arith.addf %13, %15 : vector<1x128xf32>
    %17 = math.rsqrt %16 : vector<1x128xf32>
    %18 = arith.mulf %14, %17 : vector<1x128xf32>
    %19 = vector.broadcast %18 : vector<1x128xf32> to vector<512x128xf32>
    %20 = arith.mulf %8, %19 : vector<512x128xf32>
    %c0_10 = arith.constant 0 : index
    %c0_11 = arith.constant 0 : index
    %21 = vector.load %arg4[%c0_10, %c0_11] : memref<1x128xf32, #tpu.memory_space<vmem>>, vector<1x128xf32>
    %22 = vector.broadcast %21 : vector<1x128xf32> to vector<512x128xf32>
    %23 = arith.addf %20, %22 : vector<512x128xf32>
    %cst_12 = arith.constant 0.000000e+00 : f32
    %24 = vector.broadcast %cst_12 : f32 to vector<512x128xf32>
    %25 = arith.cmpf oge, %23, %24 : vector<512x128xf32>
    %cst_13 = arith.constant 2.000000e-01 : f32
    %26 = vector.broadcast %cst_13 : f32 to vector<512x128xf32>
    %27 = arith.mulf %26, %23 : vector<512x128xf32>
    %28 = arith.select %25, %23, %27 : vector<512x128xi1>, vector<512x128xf32>
    %c0_14 = arith.constant 0 : index
    %c0_15 = arith.constant 0 : index
    %29 = vector.load %arg5[%c0_14, %c0_15] : memref<512x128xf32, #tpu.memory_space<vmem>>, vector<512x128xf32>
    tpu.vector_store %arg5[%c0_14, %c0_15], %28 {strides = array<i32>} : memref<512x128xf32, #tpu.memory_space<vmem>>, vector<512x128xf32>,
    return
  }
  func.func @transform_0(%arg0: i32) -> (i32, i32) {
    %c0_i32 = arith.constant 0 : i32
    %c0_i32_0 = arith.constant 0 : i32
    %c0_i32_1 = arith.constant 0 : i32
    return %c0_i32, %c0_i32_0 : i32, i32
  }
  func.func @transform_1(%arg0: i32) -> (i32, i32) {
    %c0_i32 = arith.constant 0 : i32
    %c0_i32_0 = arith.constant 0 : i32
    %c0_i32_1 = arith.constant 0 : i32
    return %c0_i32, %c0_i32_0 : i32, i32
  }
  func.func @transform_2(%arg0: i32) -> (i32, i32) {
    %c0_i32 = arith.constant 0 : i32
    %c0_i32_0 = arith.constant 0 : i32
    %c0_i32_1 = arith.constant 0 : i32
    return %c0_i32, %c0_i32_0 : i32, i32
  }
  func.func @transform_3(%arg0: i32) -> (i32, i32) {
    %c0_i32 = arith.constant 0 : i32
    %c0_i32_0 = arith.constant 0 : i32
    %c0_i32_1 = arith.constant 0 : i32
    return %c0_i32, %c0_i32_0 : i32, i32
  }
  func.func @transform_4(%arg0: i32) -> (i32, i32) {
    %c0_i32 = arith.constant 0 : i32
    %c0_i32_0 = arith.constant 0 : i32
    %c0_i32_1 = arith.constant 0 : i32
    return %c0_i32, %c0_i32_0 : i32, i32
  }
}

module attributes {stable_mosaic.version = 11 : i64} {
  func.func @_conv_bn_lrelu_kernel(%arg0: i32, %arg1: memref<128x256xf32, #tpu.memory_space<vmem>>, %arg2: memref<256x128xf32, #tpu.memory_space<vmem>>, %arg3: memref<1x128xf32, #tpu.memory_space<vmem>>, %arg4: memref<1x128xf32, #tpu.memory_space<vmem>>, %arg5: memref<128x128xf32, #tpu.memory_space<vmem>>) attributes {dimension_semantics = [#tpu.dimension_semantics<arbitrary>], iteration_bounds = array<i64: 1>, scalar_prefetch = 0 : i64, scratch_operands = 0 : i64, tpu.core_type = #tpu.core_type<tc>, window_params = [{pipeline_mode = #tpu.pipeline_mode<synchronous>, transform_indices = @transform_0, window_bounds = array<i64: 128, 256>}, {pipeline_mode = #tpu.pipeline_mode<synchronous>, transform_indices = @transform_1, window_bounds = array<i64: 256, 128>}, {pipeline_mode = #tpu.pipeline_mode<synchronous>, transform_indices = @transform_2, window_bounds = array<i64: 1, 128>}, {pipeline_mode = #tpu.pipeline_mode<synchronous>, transform_indices = @transform_3, window_bounds = array<i64: 1, 128>}, {pipeline_mode = #tpu.pipeline_mode<synchronous>, transform_indices = @transform_4, window_bounds = array<i64: 128, 128>}]} {
    %c0 = arith.constant 0 : index
    %c0_0 = arith.constant 0 : index
    %0 = vector.load %arg1[%c0, %c0_0] : memref<128x256xf32, #tpu.memory_space<vmem>>, vector<128x256xf32>
    %c0_1 = arith.constant 0 : index
    %c0_2 = arith.constant 0 : index
    %1 = vector.load %arg2[%c0_1, %c0_2] : memref<256x128xf32, #tpu.memory_space<vmem>>, vector<256x128xf32>
    %cst = arith.constant dense<0.000000e+00> : vector<128x128xf32>
    %2 = tpu.matmul %0, %1, %cst {dimension_numbers = #tpu.dot_dimension_numbers<[1], [0], [0], [1], [0, 0, 1, 1], [], []>} : vector<128x256xf32>, vector<256x128xf32>, vector<128x128xf32> -> vector<128x128xf32>
    %cst_3 = arith.constant dense<0.000000e+00> : vector<128xf32>
    %3 = vector.multi_reduction <add>, %2, %cst_3 [0] : vector<128x128xf32> to vector<128xf32>
    %4 = vector.shape_cast %3 : vector<128xf32> to vector<1x128xf32>
    %cst_4 = arith.constant 7.812500e-03 : f32
    %5 = vector.broadcast %cst_4 : f32 to vector<1x128xf32>
    %6 = arith.mulf %4, %5 : vector<1x128xf32>
    %7 = vector.broadcast %6 : vector<1x128xf32> to vector<128x128xf32>
    %8 = arith.subf %2, %7 : vector<128x128xf32>
    %9 = arith.mulf %8, %8 : vector<128x128xf32>
    %cst_5 = arith.constant dense<0.000000e+00> : vector<128xf32>
    %10 = vector.multi_reduction <add>, %9, %cst_5 [0] : vector<128x128xf32> to vector<128xf32>
    %11 = vector.shape_cast %10 : vector<128xf32> to vector<1x128xf32>
    %cst_6 = arith.constant 7.812500e-03 : f32
    %12 = vector.broadcast %cst_6 : f32 to vector<1x128xf32>
    %13 = arith.mulf %11, %12 : vector<1x128xf32>
    %c0_7 = arith.constant 0 : index
    %c0_8 = arith.constant 0 : index
    %14 = vector.load %arg3[%c0_7, %c0_8] : memref<1x128xf32, #tpu.memory_space<vmem>>, vector<1x128xf32>
    %cst_9 = arith.constant 9.99999974E-6 : f32
    %15 = vector.broadcast %cst_9 : f32 to vector<1x128xf32>
    %16 = arith.addf %13, %15 : vector<1x128xf32>
    %17 = math.rsqrt %16 : vector<1x128xf32>
    %18 = arith.mulf %14, %17 : vector<1x128xf32>
    %19 = vector.broadcast %18 : vector<1x128xf32> to vector<128x128xf32>
    %20 = arith.mulf %8, %19 : vector<128x128xf32>
    %c0_10 = arith.constant 0 : index
    %c0_11 = arith.constant 0 : index
    %21 = vector.load %arg4[%c0_10, %c0_11] : memref<1x128xf32, #tpu.memory_space<vmem>>, vector<1x128xf32>
    %22 = vector.broadcast %21 : vector<1x128xf32> to vector<128x128xf32>
    %23 = arith.addf %20, %22 : vector<128x128xf32>
    %cst_12 = arith.constant 0.000000e+00 : f32
    %24 = vector.broadcast %cst_12 : f32 to vector<128x128xf32>
    %25 = arith.cmpf oge, %23, %24 : vector<128x128xf32>
    %cst_13 = arith.constant 2.000000e-01 : f32
    %26 = vector.broadcast %cst_13 : f32 to vector<128x128xf32>
    %27 = arith.mulf %26, %23 : vector<128x128xf32>
    %28 = arith.select %25, %23, %27 : vector<128x128xi1>, vector<128x128xf32>
    %c0_14 = arith.constant 0 : index
    %c0_15 = arith.constant 0 : index
    %29 = vector.load %arg5[%c0_14, %c0_15] : memref<128x128xf32, #tpu.memory_space<vmem>>, vector<128x128xf32>
    tpu.vector_store %arg5[%c0_14, %c0_15], %28 {strides = array<i32>} : memref<128x128xf32, #tpu.memory_space<vmem>>, vector<128x128xf32>,
    return
  }
  func.func @transform_0(%arg0: i32) -> (i32, i32) {
    %c0_i32 = arith.constant 0 : i32
    %c0_i32_0 = arith.constant 0 : i32
    %c0_i32_1 = arith.constant 0 : i32
    return %c0_i32, %c0_i32_0 : i32, i32
  }
  func.func @transform_1(%arg0: i32) -> (i32, i32) {
    %c0_i32 = arith.constant 0 : i32
    %c0_i32_0 = arith.constant 0 : i32
    %c0_i32_1 = arith.constant 0 : i32
    return %c0_i32, %c0_i32_0 : i32, i32
  }
  func.func @transform_2(%arg0: i32) -> (i32, i32) {
    %c0_i32 = arith.constant 0 : i32
    %c0_i32_0 = arith.constant 0 : i32
    %c0_i32_1 = arith.constant 0 : i32
    return %c0_i32, %c0_i32_0 : i32, i32
  }
  func.func @transform_3(%arg0: i32) -> (i32, i32) {
    %c0_i32 = arith.constant 0 : i32
    %c0_i32_0 = arith.constant 0 : i32
    %c0_i32_1 = arith.constant 0 : i32
    return %c0_i32, %c0_i32_0 : i32, i32
  }
  func.func @transform_4(%arg0: i32) -> (i32, i32) {
    %c0_i32 = arith.constant 0 : i32
    %c0_i32_0 = arith.constant 0 : i32
    %c0_i32_1 = arith.constant 0 : i32
    return %c0_i32, %c0_i32_0 : i32, i32
  }
}

module attributes {stable_mosaic.version = 11 : i64} {
  func.func @_conv_bn_lrelu_head_kernel(%arg0: i32, %arg1: memref<32x512xf32, #tpu.memory_space<vmem>>, %arg2: memref<512x128xf32, #tpu.memory_space<vmem>>, %arg3: memref<1x128xf32, #tpu.memory_space<vmem>>, %arg4: memref<1x128xf32, #tpu.memory_space<vmem>>, %arg5: memref<32x128xf32, #tpu.memory_space<vmem>>, %arg6: memref<2x32xf32, #tpu.memory_space<vmem>>, %arg7: memref<2x1xf32, #tpu.memory_space<vmem>>, %arg8: memref<2x1xf32, #tpu.memory_space<vmem>>) attributes {dimension_semantics = [#tpu.dimension_semantics<arbitrary>], iteration_bounds = array<i64: 1>, scalar_prefetch = 0 : i64, scratch_operands = 0 : i64, tpu.core_type = #tpu.core_type<tc>, window_params = [{pipeline_mode = #tpu.pipeline_mode<synchronous>, transform_indices = @transform_0, window_bounds = array<i64: 32, 512>}, {pipeline_mode = #tpu.pipeline_mode<synchronous>, transform_indices = @transform_1, window_bounds = array<i64: 512, 128>}, {pipeline_mode = #tpu.pipeline_mode<synchronous>, transform_indices = @transform_2, window_bounds = array<i64: 1, 128>}, {pipeline_mode = #tpu.pipeline_mode<synchronous>, transform_indices = @transform_3, window_bounds = array<i64: 1, 128>}, {pipeline_mode = #tpu.pipeline_mode<synchronous>, transform_indices = @transform_4, window_bounds = array<i64: 32, 128>}, {pipeline_mode = #tpu.pipeline_mode<synchronous>, transform_indices = @transform_5, window_bounds = array<i64: 2, 32>}, {pipeline_mode = #tpu.pipeline_mode<synchronous>, transform_indices = @transform_6, window_bounds = array<i64: 2, 1>}, {pipeline_mode = #tpu.pipeline_mode<synchronous>, transform_indices = @transform_7, window_bounds = array<i64: 2, 1>}]} {
    %c0 = arith.constant 0 : index
    %c0_0 = arith.constant 0 : index
    %0 = vector.load %arg1[%c0, %c0_0] : memref<32x512xf32, #tpu.memory_space<vmem>>, vector<32x512xf32>
    %c0_1 = arith.constant 0 : index
    %c0_2 = arith.constant 0 : index
    %1 = vector.load %arg2[%c0_1, %c0_2] : memref<512x128xf32, #tpu.memory_space<vmem>>, vector<512x128xf32>
    %cst = arith.constant dense<0.000000e+00> : vector<32x128xf32>
    %2 = tpu.matmul %0, %1, %cst {dimension_numbers = #tpu.dot_dimension_numbers<[1], [0], [0], [1], [0, 0, 1, 1], [], []>} : vector<32x512xf32>, vector<512x128xf32>, vector<32x128xf32> -> vector<32x128xf32>
    %cst_3 = arith.constant dense<0.000000e+00> : vector<128xf32>
    %3 = vector.multi_reduction <add>, %2, %cst_3 [0] : vector<32x128xf32> to vector<128xf32>
    %4 = vector.shape_cast %3 : vector<128xf32> to vector<1x128xf32>
    %cst_4 = arith.constant 3.125000e-02 : f32
    %5 = vector.broadcast %cst_4 : f32 to vector<1x128xf32>
    %6 = arith.mulf %4, %5 : vector<1x128xf32>
    %7 = vector.broadcast %6 : vector<1x128xf32> to vector<32x128xf32>
    %8 = arith.subf %2, %7 : vector<32x128xf32>
    %9 = arith.mulf %8, %8 : vector<32x128xf32>
    %cst_5 = arith.constant dense<0.000000e+00> : vector<128xf32>
    %10 = vector.multi_reduction <add>, %9, %cst_5 [0] : vector<32x128xf32> to vector<128xf32>
    %11 = vector.shape_cast %10 : vector<128xf32> to vector<1x128xf32>
    %cst_6 = arith.constant 3.125000e-02 : f32
    %12 = vector.broadcast %cst_6 : f32 to vector<1x128xf32>
    %13 = arith.mulf %11, %12 : vector<1x128xf32>
    %c0_7 = arith.constant 0 : index
    %c0_8 = arith.constant 0 : index
    %14 = vector.load %arg3[%c0_7, %c0_8] : memref<1x128xf32, #tpu.memory_space<vmem>>, vector<1x128xf32>
    %cst_9 = arith.constant 9.99999974E-6 : f32
    %15 = vector.broadcast %cst_9 : f32 to vector<1x128xf32>
    %16 = arith.addf %13, %15 : vector<1x128xf32>
    %17 = math.rsqrt %16 : vector<1x128xf32>
    %18 = arith.mulf %14, %17 : vector<1x128xf32>
    %19 = vector.broadcast %18 : vector<1x128xf32> to vector<32x128xf32>
    %20 = arith.mulf %8, %19 : vector<32x128xf32>
    %c0_10 = arith.constant 0 : index
    %c0_11 = arith.constant 0 : index
    %21 = vector.load %arg4[%c0_10, %c0_11] : memref<1x128xf32, #tpu.memory_space<vmem>>, vector<1x128xf32>
    %22 = vector.broadcast %21 : vector<1x128xf32> to vector<32x128xf32>
    %23 = arith.addf %20, %22 : vector<32x128xf32>
    %cst_12 = arith.constant 0.000000e+00 : f32
    %24 = vector.broadcast %cst_12 : f32 to vector<32x128xf32>
    %25 = arith.cmpf oge, %23, %24 : vector<32x128xf32>
    %cst_13 = arith.constant 2.000000e-01 : f32
    %26 = vector.broadcast %cst_13 : f32 to vector<32x128xf32>
    %27 = arith.mulf %26, %23 : vector<32x128xf32>
    %28 = arith.select %25, %23, %27 : vector<32x128xi1>, vector<32x128xf32>
    %c0_14 = arith.constant 0 : index
    %c0_15 = arith.constant 0 : index
    %29 = vector.load %arg6[%c0_14, %c0_15] : memref<2x32xf32, #tpu.memory_space<vmem>>, vector<2x32xf32>
    %c0_16 = arith.constant 0 : index
    %c0_17 = arith.constant 0 : index
    %30 = vector.load %arg5[%c0_16, %c0_17] : memref<32x128xf32, #tpu.memory_space<vmem>>, vector<32x128xf32>
    %31 = arith.mulf %28, %30 : vector<32x128xf32>
    %cst_18 = arith.constant dense<0.000000e+00> : vector<2x128xf32>
    %32 = tpu.matmul %29, %31, %cst_18 {dimension_numbers = #tpu.dot_dimension_numbers<[1], [0], [0], [1], [0, 0, 1, 1], [], []>} : vector<2x32xf32>, vector<32x128xf32>, vector<2x128xf32> -> vector<2x128xf32>
    %cst_19 = arith.constant dense<0.000000e+00> : vector<2xf32>
    %33 = vector.multi_reduction <add>, %32, %cst_19 [1] : vector<2x128xf32> to vector<2xf32>
    %34 = vector.shape_cast %33 : vector<2xf32> to vector<2x1xf32>
    %c0_20 = arith.constant 0 : index
    %c0_21 = arith.constant 0 : index
    %35 = vector.load %arg7[%c0_20, %c0_21] : memref<2x1xf32, #tpu.memory_space<vmem>>, vector<2x1xf32>
    %36 = arith.addf %34, %35 : vector<2x1xf32>
    %cst_22 = arith.constant 0.000000e+00 : f32
    %37 = vector.broadcast %cst_22 : f32 to vector<2x1xf32>
    %38 = arith.subf %37, %36 : vector<2x1xf32>
    %39 = math.exp %38 : vector<2x1xf32>
    %cst_23 = arith.constant 1.000000e+00 : f32
    %40 = vector.broadcast %cst_23 : f32 to vector<2x1xf32>
    %41 = arith.addf %40, %39 : vector<2x1xf32>
    %cst_24 = arith.constant 1.000000e+00 : f32
    %42 = vector.broadcast %cst_24 : f32 to vector<2x1xf32>
    %43 = arith.divf %42, %41 : vector<2x1xf32>
    %c0_25 = arith.constant 0 : index
    %c0_26 = arith.constant 0 : index
    %44 = vector.load %arg8[%c0_25, %c0_26] : memref<2x1xf32, #tpu.memory_space<vmem>>, vector<2x1xf32>
    tpu.vector_store %arg8[%c0_25, %c0_26], %43 {strides = array<i32>} : memref<2x1xf32, #tpu.memory_space<vmem>>, vector<2x1xf32>,
    return
  }
  func.func @transform_0(%arg0: i32) -> (i32, i32) {
    %c0_i32 = arith.constant 0 : i32
    %c0_i32_0 = arith.constant 0 : i32
    %c0_i32_1 = arith.constant 0 : i32
    return %c0_i32, %c0_i32_0 : i32, i32
  }
  func.func @transform_1(%arg0: i32) -> (i32, i32) {
    %c0_i32 = arith.constant 0 : i32
    %c0_i32_0 = arith.constant 0 : i32
    %c0_i32_1 = arith.constant 0 : i32
    return %c0_i32, %c0_i32_0 : i32, i32
  }
  func.func @transform_2(%arg0: i32) -> (i32, i32) {
    %c0_i32 = arith.constant 0 : i32
    %c0_i32_0 = arith.constant 0 : i32
    %c0_i32_1 = arith.constant 0 : i32
    return %c0_i32, %c0_i32_0 : i32, i32
  }
  func.func @transform_3(%arg0: i32) -> (i32, i32) {
    %c0_i32 = arith.constant 0 : i32
    %c0_i32_0 = arith.constant 0 : i32
    %c0_i32_1 = arith.constant 0 : i32
    return %c0_i32, %c0_i32_0 : i32, i32
  }
  func.func @transform_4(%arg0: i32) -> (i32, i32) {
    %c0_i32 = arith.constant 0 : i32
    %c0_i32_0 = arith.constant 0 : i32
    %c0_i32_1 = arith.constant 0 : i32
    return %c0_i32, %c0_i32_0 : i32, i32
  }
  func.func @transform_5(%arg0: i32) -> (i32, i32) {
    %c0_i32 = arith.constant 0 : i32
    %c0_i32_0 = arith.constant 0 : i32
    %c0_i32_1 = arith.constant 0 : i32
    return %c0_i32, %c0_i32_0 : i32, i32
  }
  func.func @transform_6(%arg0: i32) -> (i32, i32) {
    %c0_i32 = arith.constant 0 : i32
    %c0_i32_0 = arith.constant 0 : i32
    %c0_i32_1 = arith.constant 0 : i32
    return %c0_i32, %c0_i32_0 : i32, i32
  }
  func.func @transform_7(%arg0: i32) -> (i32, i32) {
    %c0_i32 = arith.constant 0 : i32
    %c0_i32_0 = arith.constant 0 : i32
    %c0_i32_1 = arith.constant 0 : i32
    return %c0_i32, %c0_i32_0 : i32, i32
  }
}

</mosaic_0001>

<bundles_post_ra>
// kernel: discriminator_forward.4
= control target key start
LH: loop header
LB: loop body
LE: loop exit
PB: predicated region body
PF: predicated region fallthrough
CT: control target
= control target key end

     0   :  { %s2506_s12 = smov 0   ;;  %s3074_s0 = inlined_call_operand.vmem [shape: f32[2048,48], index: 0, kind: input, shape index: {}]   ;;  %s3075_s1 = inlined_call_operand.vmem [shape: f32[48,128], index: 1, kind: input, shape index: {}]   ;;  %s3076_s2 = inlined_call_operand.vmem [shape: f32[1,128], index: 2, kind: input, shape index: {}]   ;;  %s3077_s3 = inlined_call_operand.vmem [shape: f32[2048,128], index: 3, kind: output, shape index: {}]  }
   0x1 LB: > { %s1973_s13 = sadd.s32 4294967295, %s2484_s12   ;;  %p1977_p0 = scmp.ge.s32.totalorder %s2484_s12, 1  ;;  %s2484_s12 = sphi %s2506_s12, %s13_s12  }
   0x2   : > { %p138_p1 = scmp.lt.s32.totalorder %s2484_s12, 3 }
   0x4   : > { %p139_p2 = pnand %p1977_p0, %p138_p1 }
   0x5   : > { %v302_v0 = vld [vmem:[%s3075_s1] sm:$0xff] (!%p139_p2)  ;;  %v303_v1 = vld [vmem:[%s3075_s1 + $0x8] sm:$0xff] (!%p139_p2)  ;;  %v304_v2 = vld [vmem:[%s3075_s1 + $0x10] sm:$0xff] (!%p139_p2)  ;;  %s1978_s20 = sshll.u32 (!%p139_p2), %s1973_s13, 7  ;;  %vm315_vm0 = vcmask (!%p139_p2), 392192  }
   0x6   : > { %142 = sbr.rel (%p139_p2) target bundleno = 366 (0x16e), region = 32  ;;  %v2451_v3 = vpack.c.bf16 (!%p139_p2), %v303_v1, %v302_v0  ;;  %v305_v4 = vld [vmem:[%s3075_s1 + $0x18] sm:$0xff] (!%p139_p2)  ;;  %p163_p3 = scmp.lt.s32.totalorder (!%p139_p2), %s1978_s20, 255  ;;  %v306_v6 = vld [vmem:[%s3075_s1 + $0x20] sm:$0xff] (!%p139_p2)  ;;  %v307_v7 = vld [vmem:[%s3075_s1 + $0x28] sm:$0xff] (!%p139_p2) }
   0x7   : > { %v2455_v5 = vpack.c.bf16 (!%p139_p2), %v305_v4, %v304_v2  ;;  %v2459_v8 = vpack.c.bf16 (!%p139_p2), %v307_v7, %v306_v6 }
   0x8   : > { %2452 = vmatprep.subr.bf16.mxu0 (!%p139_p2), %v2451_v3  ;;  %2463 = vmatprep.subr.bf16.mxu1 (!%p139_p2), %v2451_v3 }
   0x9   : > { %2454 = vmatpush3.bf16.msra.mxu0 (!%p139_p2), %v2451_v3  ;;  %2466 = vmatpush3.bf16.msra.mxu1 (!%p139_p2), %v2451_v3 }
   0xa   : > { %2456 = vmatprep.subr.bf16.mxu0 (!%p139_p2), %v2455_v5  ;;  %2464 = vmatprep.subr.bf16.mxu1 (!%p139_p2), %v2455_v5 }
   0xd   : > { %s3079_s20 = smov (!%p163_p3, %s1978_s20), 255  ;;  %2458 = vmatpush3.bf16.msra.mxu0 %v2455_v5  ;;  %2467 = vmatpush3.bf16.msra.mxu1 %v2455_v5 }
   0xe   : > { %s1979_s27 = sshll.u32 %s3079_s20, 3  ;;  %2460 = vmatprep.subr.bf16.mxu0 %v2459_v8  ;;  %2465 = vmatprep.subr.bf16.mxu1 %v2459_v8 }
   0xf   : > { %s2540_s30 = scalar_lea.vmem %s3074_s0, %s1979_s27  ;;  %s2812_s8 = scalar_lea.vmem %s3077_s3, %s1979_s27 }
  0x10   : > { %v174_v9 = vld [vmem:[%s2540_s30] sm:$0xff]  ;;  %v175_v11 = vld [vmem:[%s2540_s30 + $0x8] sm:$0xff]  ;;  %v176_v13 = vld [vmem:[%s2540_s30 + $0x10] sm:$0xff] }
  0x11   : > { %v238_v10 = vld [vmem:[%s2540_s30 + $0x200] sm:$0xff]  ;;  %2259 = vmatprep.mubr.msk.f32.mxu0 %vm315_vm0, %v174_v9  ;;  %2462 = vmatpush3.bf16.msra.mxu0 %v2459_v8  ;;  %v239_v12 = vld [vmem:[%s2540_s30 + $0x208] sm:$0xff]  ;;  %v240_v14 = vld [vmem:[%s2540_s30 + $0x210] sm:$0xff] }
  0x12   : > { %2355 = vmatprep.mubr.msk.f32.mxu1 %vm315_vm0, %v238_v10  ;;  %2468 = vmatpush3.bf16.msra.mxu1 %v2459_v8  ;;  %v177_v15 = vld [vmem:[%s2540_s30 + $0x18] sm:$0xff]  ;;  %v178_v17 = vld [vmem:[%s2540_s30 + $0x20] sm:$0xff]  ;;  %v179_v19 = vld [vmem:[%s2540_s30 + $0x28] sm:$0xff] }
  0x13   : > { %v241_v16 = vld [vmem:[%s2540_s30 + $0x218] sm:$0xff]  ;;  %v242_v18 = vld [vmem:[%s2540_s30 + $0x220] sm:$0xff]  ;;  %v243_v20 = vld [vmem:[%s2540_s30 + $0x228] sm:$0xff] }
  0x14   : > { %2260 = vmatmul.mubr.msk.f32.vlgmr.msra.gmra.mrb[0].mxu0 %vm315_vm0, %v175_v11  ;;  %v180_v21 = vld [vmem:[%s2540_s30 + $0x30] sm:$0xff]  ;;  %v181_v23 = vld [vmem:[%s2540_s30 + $0x38] sm:$0xff]  ;;  %v182_v25 = vld [vmem:[%s2540_s30 + $0x40] sm:$0xff] }
  0x15   : > { %2356 = vmatmul.mubr.msk.f32.vlgmr.msra.gmra.mrb[0].mxu1 %vm315_vm0, %v239_v12  ;;  %2262 = vmatprep.mubr.msk.f32.mxu0 %vm315_vm0, %v176_v13  ;;  %v244_v22 = vld [vmem:[%s2540_s30 + $0x230] sm:$0xff]  ;;  %v245_v24 = vld [vmem:[%s2540_s30 + $0x238] sm:$0xff]  ;;  %v246_v26 = vld [vmem:[%s2540_s30 + $0x240] sm:$0xff] }
  0x16   : > { %2358 = vmatprep.mubr.msk.f32.mxu1 %vm315_vm0, %v240_v14  ;;  %v183_v27 = vld [vmem:[%s2540_s30 + $0x48] sm:$0xff]  ;;  %v184_v29 = vld [vmem:[%s2540_s30 + $0x50] sm:$0xff]  ;;  %v185_v31 = vld [vmem:[%s2540_s30 + $0x58] sm:$0xff] }
  0x17   : > { %v247_v28 = vld [vmem:[%s2540_s30 + $0x248] sm:$0xff]  ;;  %v248_v30 = vld [vmem:[%s2540_s30 + $0x250] sm:$0xff]  ;;  %v249_v32 = vld [vmem:[%s2540_s30 + $0x258] sm:$0xff] }
  0x18   : > { %2263 = vmatmul.mubr.msk.f32.gmra.mrb[2].mxu0 %vm315_vm0, %v177_v15  ;;  %v186_v33 = vld [vmem:[%s2540_s30 + $0x60] sm:$0xff]  ;;  %v187_v35 = vld [vmem:[%s2540_s30 + $0x68] sm:$0xff]  ;;  %v188_v37 = vld [vmem:[%s2540_s30 + $0x70] sm:$0xff] }
  0x19   : > { %2359 = vmatmul.mubr.msk.f32.gmra.mrb[2].mxu1 %vm315_vm0, %v241_v16  ;;  %2265 = vmatprep.mubr.msk.f32.mxu0 %vm315_vm0, %v178_v17  ;;  %v250_v34 = vld [vmem:[%s2540_s30 + $0x260] sm:$0xff]  ;;  %v251_v36 = vld [vmem:[%s2540_s30 + $0x268] sm:$0xff]  ;;  %v252_v38 = vld [vmem:[%s2540_s30 + $0x270] sm:$0xff] }
  0x1a   : > { %2361 = vmatprep.mubr.msk.f32.mxu1 %vm315_vm0, %v242_v18  ;;  %v189_v39 = vld [vmem:[%s2540_s30 + $0x78] sm:$0xff]  ;;  %v190_v41 = vld [vmem:[%s2540_s30 + $0x80] sm:$0xff]  ;;  %v191_v43 = vld [vmem:[%s2540_s30 + $0x88] sm:$0xff] }
  0x1b   : > { %v253_v40 = vld [vmem:[%s2540_s30 + $0x278] sm:$0xff]  ;;  %v254_v42 = vld [vmem:[%s2540_s30 + $0x280] sm:$0xff]  ;;  %v255_v44 = vld [vmem:[%s2540_s30 + $0x288] sm:$0xff] }
  0x1c   : > { %2266 = vmatmul.mubr.msk.f32.gmra.mrb[4].mxu0 %vm315_vm0, %v179_v19  ;;  %v192_v45 = vld [vmem:[%s2540_s30 + $0x90] sm:$0xff]  ;;  %v193_v47 = vld [vmem:[%s2540_s30 + $0x98] sm:$0xff]  ;;  %v194_v49 = vld [vmem:[%s2540_s30 + $0xa0] sm:$0xff] }
  0x1d   : > { %2362 = vmatmul.mubr.msk.f32.gmra.mrb[4].mxu1 %vm315_vm0, %v243_v20  ;;  %2268 = vmatprep.mubr.msk.f32.mxu0 %vm315_vm0, %v180_v21  ;;  %v256_v46 = vld [vmem:[%s2540_s30 + $0x290] sm:$0xff]  ;;  %v257_v48 = vld [vmem:[%s2540_s30 + $0x298] sm:$0xff]  ;;  %v258_v50 = vld [vmem:[%s2540_s30 + $0x2a0] sm:$0xff] }
  0x1e   : > { %2364 = vmatprep.mubr.msk.f32.mxu1 %vm315_vm0, %v244_v22  ;;  %v195_v51 = vld [vmem:[%s2540_s30 + $0xa8] sm:$0xff]  ;;  %v196_v53 = vld [vmem:[%s2540_s30 + $0xb0] sm:$0xff]  ;;  %v197_v55 = vld [vmem:[%s2540_s30 + $0xb8] sm:$0xff] }
  0x1f   : > { %v259_v52 = vld [vmem:[%s2540_s30 + $0x2a8] sm:$0xff]  ;;  %v260_v54 = vld [vmem:[%s2540_s30 + $0x2b0] sm:$0xff]  ;;  %v261_v56 = vld [vmem:[%s2540_s30 + $0x2b8] sm:$0xff] }
  0x20   : > { %2269 = vmatmul.mubr.msk.f32.gmra.mrb[6].mxu0 %vm315_vm0, %v181_v23  ;;  %v198_v57 = vld [vmem:[%s2540_s30 + $0xc0] sm:$0xff]  ;;  %v199_v59 = vld [vmem:[%s2540_s30 + $0xc8] sm:$0xff]  ;;  %v200_v61 = vld [vmem:[%s2540_s30 + $0xd0] sm:$0xff] }
  0x21   : > { %2365 = vmatmul.mubr.msk.f32.gmra.mrb[6].mxu1 %vm315_vm0, %v245_v24  ;;  %2271 = vmatprep.mubr.msk.f32.mxu0 %vm315_vm0, %v182_v25  ;;  %v262_v58 = vld [vmem:[%s2540_s30 + $0x2c0] sm:$0xff]  ;;  %v263_v60 = vld [vmem:[%s2540_s30 + $0x2c8] sm:$0xff]  ;;  %v264_v62 = vld [vmem:[%s2540_s30 + $0x2d0] sm:$0xff] }
  0x22   : > { %2367 = vmatprep.mubr.msk.f32.mxu1 %vm315_vm0, %v246_v26  ;;  %v201_v63 = vld [vmem:[%s2540_s30 + $0xd8] sm:$0xff]  ;;  %v202_v1 = vld [vmem:[%s2540_s30 + $0xe0] sm:$0xff]  ;;  %v203_v3 = vld [vmem:[%s2540_s30 + $0xe8] sm:$0xff] }
  0x23   : > { %v265_v0 = vld [vmem:[%s2540_s30 + $0x2d8] sm:$0xff]  ;;  %v266_v2 = vld [vmem:[%s2540_s30 + $0x2e0] sm:$0xff]  ;;  %v267_v4 = vld [vmem:[%s2540_s30 + $0x2e8] sm:$0xff] }
  0x24   : > { %2272 = vmatmul.mubr.msk.f32.gmra.mrb[8].mxu0 %vm315_vm0, %v183_v27  ;;  %v204_v5 = vld [vmem:[%s2540_s30 + $0xf0] sm:$0xff]  ;;  %v205_v7 = vld [vmem:[%s2540_s30 + $0xf8] sm:$0xff]  ;;  %v206_v9 = vld [vmem:[%s2540_s30 + $0x100] sm:$0xff] }
  0x25   : > { %2368 = vmatmul.mubr.msk.f32.gmra.mrb[8].mxu1 %vm315_vm0, %v247_v28  ;;  %2274 = vmatprep.mubr.msk.f32.mxu0 %vm315_vm0, %v184_v29  ;;  %v268_v6 = vld [vmem:[%s2540_s30 + $0x2f0] sm:$0xff]  ;;  %v269_v8 = vld [vmem:[%s2540_s30 + $0x2f8] sm:$0xff]  ;;  %v270_v10 = vld [vmem:[%s2540_s30 + $0x300] sm:$0xff] }
  0x26   : > { %2370 = vmatprep.mubr.msk.f32.mxu1 %vm315_vm0, %v248_v30  ;;  %v207_v11 = vld [vmem:[%s2540_s30 + $0x108] sm:$0xff]  ;;  %v208_v13 = vld [vmem:[%s2540_s30 + $0x110] sm:$0xff]  ;;  %v209_v15 = vld [vmem:[%s2540_s30 + $0x118] sm:$0xff] }
  0x27   : > { %v271_v12 = vld [vmem:[%s2540_s30 + $0x308] sm:$0xff]  ;;  %v272_v14 = vld [vmem:[%s2540_s30 + $0x310] sm:$0xff]  ;;  %v273_v16 = vld [vmem:[%s2540_s30 + $0x318] sm:$0xff] }
  0x28   : > { %2275 = vmatmul.mubr.msk.f32.gmra.mrb[10].mxu0 %vm315_vm0, %v185_v31  ;;  %v210_v17 = vld [vmem:[%s2540_s30 + $0x120] sm:$0xff]  ;;  %v211_v19 = vld [vmem:[%s2540_s30 + $0x128] sm:$0xff]  ;;  %v212_v21 = vld [vmem:[%s2540_s30 + $0x130] sm:$0xff] }
  0x29   : > { %2371 = vmatmul.mubr.msk.f32.gmra.mrb[10].mxu1 %vm315_vm0, %v249_v32  ;;  %2277 = vmatprep.mubr.msk.f32.mxu0 %vm315_vm0, %v186_v33  ;;  %v274_v18 = vld [vmem:[%s2540_s30 + $0x320] sm:$0xff]  ;;  %v275_v20 = vld [vmem:[%s2540_s30 + $0x328] sm:$0xff]  ;;  %v276_v22 = vld [vmem:[%s2540_s30 + $0x330] sm:$0xff] }
  0x2a   : > { %2373 = vmatprep.mubr.msk.f32.mxu1 %vm315_vm0, %v250_v34  ;;  %v213_v23 = vld [vmem:[%s2540_s30 + $0x138] sm:$0xff]  ;;  %v214_v25 = vld [vmem:[%s2540_s30 + $0x140] sm:$0xff]  ;;  %v215_v27 = vld [vmem:[%s2540_s30 + $0x148] sm:$0xff] }
  0x2b   : > { %v277_v24 = vld [vmem:[%s2540_s30 + $0x338] sm:$0xff]  ;;  %v278_v26 = vld [vmem:[%s2540_s30 + $0x340] sm:$0xff]  ;;  %v279_v28 = vld [vmem:[%s2540_s30 + $0x348] sm:$0xff] }
  0x2c   : > { %2278 = vmatmul.mubr.msk.f32.gmra.mrb[12].mxu0 %vm315_vm0, %v187_v35  ;;  %v216_v29 = vld [vmem:[%s2540_s30 + $0x150] sm:$0xff]  ;;  %v217_v31 = vld [vmem:[%s2540_s30 + $0x158] sm:$0xff]  ;;  %v218_v33 = vld [vmem:[%s2540_s30 + $0x160] sm:$0xff] }
  0x2d   : > { %2374 = vmatmul.mubr.msk.f32.gmra.mrb[12].mxu1 %vm315_vm0, %v251_v36  ;;  %2280 = vmatprep.mubr.msk.f32.mxu0 %vm315_vm0, %v188_v37  ;;  %v280_v30 = vld [vmem:[%s2540_s30 + $0x350] sm:$0xff]  ;;  %v281_v32 = vld [vmem:[%s2540_s30 + $0x358] sm:$0xff]  ;;  %v282_v34 = vld [vmem:[%s2540_s30 + $0x360] sm:$0xff] }
  0x2e   : > { %2376 = vmatprep.mubr.msk.f32.mxu1 %vm315_vm0, %v252_v38  ;;  %v219_v35 = vld [vmem:[%s2540_s30 + $0x168] sm:$0xff]  ;;  %v220_v37 = vld [vmem:[%s2540_s30 + $0x170] sm:$0xff] }
  0x2f   : > { %v283_v36 = vld [vmem:[%s2540_s30 + $0x368] sm:$0xff]  ;;  %v284_v38 = vld [vmem:[%s2540_s30 + $0x370] sm:$0xff] }
  0x30   : > { %2281 = vmatmul.mubr.msk.f32.gmra.mrb[14].mxu0 %vm315_vm0, %v189_v39  ;;  %v221_v39 = vld [vmem:[%s2540_s30 + $0x178] sm:$0xff] }
  0x31   : > { %2377 = vmatmul.mubr.msk.f32.gmra.mrb[14].mxu1 %vm315_vm0, %v253_v40  ;;  %2283 = vmatprep.mubr.msk.f32.mxu0 %vm315_vm0, %v190_v41  ;;  %v285_v40 = vld [vmem:[%s2540_s30 + $0x378] sm:$0xff]  ;;  %v222_v41 = vld [vmem:[%s2540_s30 + $0x180] sm:$0xff] }
  0x32   : > { %2379 = vmatprep.mubr.msk.f32.mxu1 %vm315_vm0, %v254_v42  ;;  %v286_v42 = vld [vmem:[%s2540_s30 + $0x380] sm:$0xff] }
  0x34   : > { %2284 = vmatmul.mubr.msk.f32.gmra.mrb[16].mxu0 %vm315_vm0, %v191_v43  ;;  %v223_v43 = vld [vmem:[%s2540_s30 + $0x188] sm:$0xff] }
  0x35   : > { %2380 = vmatmul.mubr.msk.f32.gmra.mrb[16].mxu1 %vm315_vm0, %v255_v44  ;;  %2286 = vmatprep.mubr.msk.f32.mxu0 %vm315_vm0, %v192_v45  ;;  %v287_v44 = vld [vmem:[%s2540_s30 + $0x388] sm:$0xff]  ;;  %v224_v45 = vld [vmem:[%s2540_s30 + $0x190] sm:$0xff] }
  0x36   : > { %2382 = vmatprep.mubr.msk.f32.mxu1 %vm315_vm0, %v256_v46  ;;  %v288_v46 = vld [vmem:[%s2540_s30 + $0x390] sm:$0xff] }
  0x38   : > { %2287 = vmatmul.mubr.msk.f32.gmra.mrb[18].mxu0 %vm315_vm0, %v193_v47  ;;  %v225_v47 = vld [vmem:[%s2540_s30 + $0x198] sm:$0xff] }
  0x39   : > { %2383 = vmatmul.mubr.msk.f32.gmra.mrb[18].mxu1 %vm315_vm0, %v257_v48  ;;  %2289 = vmatprep.mubr.msk.f32.mxu0 %vm315_vm0, %v194_v49  ;;  %v289_v48 = vld [vmem:[%s2540_s30 + $0x398] sm:$0xff]  ;;  %v226_v49 = vld [vmem:[%s2540_s30 + $0x1a0] sm:$0xff] }
  0x3a   : > { %2385 = vmatprep.mubr.msk.f32.mxu1 %vm315_vm0, %v258_v50  ;;  %v290_v50 = vld [vmem:[%s2540_s30 + $0x3a0] sm:$0xff] }
  0x3c   : > { %2290 = vmatmul.mubr.msk.f32.gmra.mrb[20].mxu0 %vm315_vm0, %v195_v51  ;;  %v227_v51 = vld [vmem:[%s2540_s30 + $0x1a8] sm:$0xff] }
  0x3d   : > { %2386 = vmatmul.mubr.msk.f32.gmra.mrb[20].mxu1 %vm315_vm0, %v259_v52  ;;  %2292 = vmatprep.mubr.msk.f32.mxu0 %vm315_vm0, %v196_v53  ;;  %v291_v52 = vld [vmem:[%s2540_s30 + $0x3a8] sm:$0xff]  ;;  %v228_v53 = vld [vmem:[%s2540_s30 + $0x1b0] sm:$0xff] }
  0x3e   : > { %2388 = vmatprep.mubr.msk.f32.mxu1 %vm315_vm0, %v260_v54  ;;  %v292_v54 = vld [vmem:[%s2540_s30 + $0x3b0] sm:$0xff] }
  0x40   : > { %2293 = vmatmul.mubr.msk.f32.gmra.mrb[22].mxu0 %vm315_vm0, %v197_v55  ;;  %v229_v55 = vld [vmem:[%s2540_s30 + $0x1b8] sm:$0xff] }
  0x41   : > { %2389 = vmatmul.mubr.msk.f32.gmra.mrb[22].mxu1 %vm315_vm0, %v261_v56  ;;  %2295 = vmatprep.mubr.msk.f32.mxu0 %vm315_vm0, %v198_v57  ;;  %v293_v56 = vld [vmem:[%s2540_s30 + $0x3b8] sm:$0xff]  ;;  %v230_v57 = vld [vmem:[%s2540_s30 + $0x1c0] sm:$0xff] }
  0x42   : > { %2391 = vmatprep.mubr.msk.f32.mxu1 %vm315_vm0, %v262_v58  ;;  %v294_v58 = vld [vmem:[%s2540_s30 + $0x3c0] sm:$0xff] }
  0x44   : > { %2296 = vmatmul.mubr.msk.f32.gmra.mrb[24].mxu0 %vm315_vm0, %v199_v59  ;;  %v231_v59 = vld [vmem:[%s2540_s30 + $0x1c8] sm:$0xff] }
  0x45   : > { %2392 = vmatmul.mubr.msk.f32.gmra.mrb[24].mxu1 %vm315_vm0, %v263_v60  ;;  %2298 = vmatprep.mubr.msk.f32.mxu0 %vm315_vm0, %v200_v61  ;;  %v295_v60 = vld [vmem:[%s2540_s30 + $0x3c8] sm:$0xff]  ;;  %v232_v61 = vld [vmem:[%s2540_s30 + $0x1d0] sm:$0xff] }
  0x46   : > { %2394 = vmatprep.mubr.msk.f32.mxu1 %vm315_vm0, %v264_v62  ;;  %v296_v62 = vld [vmem:[%s2540_s30 + $0x3d0] sm:$0xff] }
  0x48   : > { %2299 = vmatmul.mubr.msk.f32.gmra.mrb[26].mxu0 %vm315_vm0, %v201_v63  ;;  %v233_v63 = vld [vmem:[%s2540_s30 + $0x1d8] sm:$0xff] }
  0x49   : > { %2395 = vmatmul.mubr.msk.f32.gmra.mrb[26].mxu1 %vm315_vm0, %v265_v0  ;;  %2301 = vmatprep.mubr.msk.f32.mxu0 %vm315_vm0, %v202_v1  ;;  %v297_v0 = vld [vmem:[%s2540_s30 + $0x3d8] sm:$0xff]  ;;  %v234_v1 = vld [vmem:[%s2540_s30 + $0x1e0] sm:$0xff] }
  0x4a   : > { %2397 = vmatprep.mubr.msk.f32.mxu1 %vm315_vm0, %v266_v2  ;;  %v298_v2 = vld [vmem:[%s2540_s30 + $0x3e0] sm:$0xff] }
  0x4c   : > { %2302 = vmatmul.mubr.msk.f32.gmra.mrb[28].mxu0 %vm315_vm0, %v203_v3  ;;  %v235_v3 = vld [vmem:[%s2540_s30 + $0x1e8] sm:$0xff] }
  0x4d   : > { %2398 = vmatmul.mubr.msk.f32.gmra.mrb[28].mxu1 %vm315_vm0, %v267_v4  ;;  %2304 = vmatprep.mubr.msk.f32.mxu0 %vm315_vm0, %v204_v5  ;;  %v299_v4 = vld [vmem:[%s2540_s30 + $0x3e8] sm:$0xff]  ;;  %v236_v5 = vld [vmem:[%s2540_s30 + $0x1f0] sm:$0xff] }
  0x4e   : > { %2400 = vmatprep.mubr.msk.f32.mxu1 %vm315_vm0, %v268_v6  ;;  %v300_v6 = vld [vmem:[%s2540_s30 + $0x3f0] sm:$0xff] }
  0x50   : > { %2305 = vmatmul.mubr.msk.f32.gmra.mrb[30].mxu0 %vm315_vm0, %v205_v7  ;;  %v237_v7 = vld [vmem:[%s2540_s30 + $0x1f8] sm:$0xff] }
  0x51   : > { %2401 = vmatmul.mubr.msk.f32.gmra.mrb[30].mxu1 %vm315_vm0, %v269_v8  ;;  %2307 = vmatprep.mubr.msk.f32.mxu0 %vm315_vm0, %v206_v9  ;;  %v301_v8 = vld [vmem:[%s2540_s30 + $0x3f8] sm:$0xff]  ;;  %v2801_v9 = vld [vmem:[%s3076_s2] ss:$0 sm:$0xff] }
  0x52   : > { %2403 = vmatprep.mubr.msk.f32.mxu1 %vm315_vm0, %v270_v10 }
  0x54   : > { %2308 = vmatmul.mubr.msk.f32.gmra.mrb[32].mxu0 %vm315_vm0, %v207_v11 }
  0x55   : > { %2404 = vmatmul.mubr.msk.f32.gmra.mrb[32].mxu1 %vm315_vm0, %v271_v12  ;;  %2310 = vmatprep.mubr.msk.f32.mxu0 %vm315_vm0, %v208_v13 }
  0x56   : > { %2406 = vmatprep.mubr.msk.f32.mxu1 %vm315_vm0, %v272_v14 }
  0x58   : > { %2311 = vmatmul.mubr.msk.f32.gmra.mrb[34].mxu0 %vm315_vm0, %v209_v15 }
  0x59   : > { %2407 = vmatmul.mubr.msk.f32.gmra.mrb[34].mxu1 %vm315_vm0, %v273_v16  ;;  %2313 = vmatprep.mubr.msk.f32.mxu0 %vm315_vm0, %v210_v17 }
  0x5a   : > { %2409 = vmatprep.mubr.msk.f32.mxu1 %vm315_vm0, %v274_v18 }
  0x5c   : > { %2314 = vmatmul.mubr.msk.f32.gmra.mrb[36].mxu0 %vm315_vm0, %v211_v19 }
  0x5d   : > { %2410 = vmatmul.mubr.msk.f32.gmra.mrb[36].mxu1 %vm315_vm0, %v275_v20  ;;  %2316 = vmatprep.mubr.msk.f32.mxu0 %vm315_vm0, %v212_v21 }
  0x5e   : > { %2412 = vmatprep.mubr.msk.f32.mxu1 %vm315_vm0, %v276_v22 }
  0x60   : > { %2317 = vmatmul.mubr.msk.f32.gmra.mrb[38].mxu0 %vm315_vm0, %v213_v23 }
  0x61   : > { %2413 = vmatmul.mubr.msk.f32.gmra.mrb[38].mxu1 %vm315_vm0, %v277_v24  ;;  %2319 = vmatprep.mubr.msk.f32.mxu0 %vm315_vm0, %v214_v25 }
  0x62   : > { %2415 = vmatprep.mubr.msk.f32.mxu1 %vm315_vm0, %v278_v26 }
  0x64   : > { %2320 = vmatmul.mubr.msk.f32.gmra.mrb[40].mxu0 %vm315_vm0, %v215_v27 }
  0x65   : > { %2416 = vmatmul.mubr.msk.f32.gmra.mrb[40].mxu1 %vm315_vm0, %v279_v28  ;;  %2322 = vmatprep.mubr.msk.f32.mxu0 %vm315_vm0, %v216_v29 }
  0x66   : > { %2418 = vmatprep.mubr.msk.f32.mxu1 %vm315_vm0, %v280_v30 }
  0x68   : > { %2323 = vmatmul.mubr.msk.f32.gmra.mrb[42].mxu0 %vm315_vm0, %v217_v31 }
  0x69   : > { %2419 = vmatmul.mubr.msk.f32.gmra.mrb[42].mxu1 %vm315_vm0, %v281_v32  ;;  %2325 = vmatprep.mubr.msk.f32.mxu0 %vm315_vm0, %v218_v33 }
  0x6a   : > { %2421 = vmatprep.mubr.msk.f32.mxu1 %vm315_vm0, %v282_v34 }
  0x6c   : > { %2326 = vmatmul.mubr.msk.f32.gmra.mrb[44].mxu0 %vm315_vm0, %v219_v35 }
  0x6d   : > { %2422 = vmatmul.mubr.msk.f32.gmra.mrb[44].mxu1 %vm315_vm0, %v283_v36  ;;  %2328 = vmatprep.mubr.msk.f32.mxu0 %vm315_vm0, %v220_v37 }
  0x6e   : > { %2424 = vmatprep.mubr.msk.f32.mxu1 %vm315_vm0, %v284_v38 }
  0x70   : > { %2329 = vmatmul.mubr.msk.f32.gmra.mrb[46].mxu0 %vm315_vm0, %v221_v39 }
  0x71   : > { %2425 = vmatmul.mubr.msk.f32.gmra.mrb[46].mxu1 %vm315_vm0, %v285_v40  ;;  %2331 = vmatprep.mubr.msk.f32.mxu0 %vm315_vm0, %v222_v41 }
  0x72   : > { %2427 = vmatprep.mubr.msk.f32.mxu1 %vm315_vm0, %v286_v42 }
  0x74   : > { %2332 = vmatmul.mubr.msk.f32.gmra.mrb[48].mxu0 %vm315_vm0, %v223_v43 }
  0x75   : > { %2428 = vmatmul.mubr.msk.f32.gmra.mrb[48].mxu1 %vm315_vm0, %v287_v44  ;;  %2334 = vmatprep.mubr.msk.f32.mxu0 %vm315_vm0, %v224_v45 }
  0x76   : > { %2430 = vmatprep.mubr.msk.f32.mxu1 %vm315_vm0, %v288_v46 }
  0x78   : > { %2335 = vmatmul.mubr.msk.f32.gmra.mrb[50].mxu0 %vm315_vm0, %v225_v47 }
  0x79   : > { %2431 = vmatmul.mubr.msk.f32.gmra.mrb[50].mxu1 %vm315_vm0, %v289_v48  ;;  %2337 = vmatprep.mubr.msk.f32.mxu0 %vm315_vm0, %v226_v49 }
  0x7a   : > { %2433 = vmatprep.mubr.msk.f32.mxu1 %vm315_vm0, %v290_v50 }
  0x7c   : > { %2338 = vmatmul.mubr.msk.f32.gmra.mrb[52].mxu0 %vm315_vm0, %v227_v51 }
  0x7d   : > { %2434 = vmatmul.mubr.msk.f32.gmra.mrb[52].mxu1 %vm315_vm0, %v291_v52  ;;  %2340 = vmatprep.mubr.msk.f32.mxu0 %vm315_vm0, %v228_v53 }
  0x7e   : > { %2436 = vmatprep.mubr.msk.f32.mxu1 %vm315_vm0, %v292_v54 }
  0x80   : > { %2341 = vmatmul.mubr.msk.f32.gmra.mrb[54].mxu0 %vm315_vm0, %v229_v55 }
  0x81   : > { %2437 = vmatmul.mubr.msk.f32.gmra.mrb[54].mxu1 %vm315_vm0, %v293_v56  ;;  %2343 = vmatprep.mubr.msk.f32.mxu0 %vm315_vm0, %v230_v57 }
  0x82   : > { %2439 = vmatprep.mubr.msk.f32.mxu1 %vm315_vm0, %v294_v58 }
  0x84   : > { %2344 = vmatmul.mubr.msk.f32.gmra.mrb[56].mxu0 %vm315_vm0, %v231_v59 }
  0x85   : > { %2440 = vmatmul.mubr.msk.f32.gmra.mrb[56].mxu1 %vm315_vm0, %v295_v60  ;;  %2346 = vmatprep.mubr.msk.f32.mxu0 %vm315_vm0, %v232_v61 }
  0x86   : > { %2442 = vmatprep.mubr.msk.f32.mxu1 %vm315_vm0, %v296_v62 }
  0x88   : > { %2347 = vmatmul.mubr.msk.f32.gmra.mrb[58].mxu0 %vm315_vm0, %v233_v63 }
  0x89   : > { %2443 = vmatmul.mubr.msk.f32.gmra.mrb[58].mxu1 %vm315_vm0, %v297_v0  ;;  %2349 = vmatprep.mubr.msk.f32.mxu0 %vm315_vm0, %v234_v1 }
  0x8a   : > { %2445 = vmatprep.mubr.msk.f32.mxu1 %vm315_vm0, %v298_v2 }
  0x8c   : > { %2350 = vmatmul.mubr.msk.f32.gmra.mrb[60].mxu0 %vm315_vm0, %v235_v3 }
  0x8d   : > { %2446 = vmatmul.mubr.msk.f32.gmra.mrb[60].mxu1 %vm315_vm0, %v299_v4  ;;  %2352 = vmatprep.mubr.msk.f32.mxu0 %vm315_vm0, %v236_v5 }
  0x8e   : > { %2448 = vmatprep.mubr.msk.f32.mxu1 %vm315_vm0, %v300_v6 }
  0x90   : > { %2353 = vmatmul.mubr.msk.f32.gmra.mrb[62].mxu0 %vm315_vm0, %v237_v7 }
  0x91   : > { %2449 = vmatmul.mubr.msk.f32.gmra.mrb[62].mxu1 %vm315_vm0, %v301_v8 }
  0xe7   : > { %v2261_v10 = vpop.f32.mrb[0].mxu0 }
  0xe8   : > { %v2357_v11 = vpop.f32.mrb[0].mxu1  ;;  %v772_v12 = vadd.f32 %v2261_v10, %v2801_v9  ;;  %v766_v14 = vpop.f32.mrb[1].mxu0 }
  0xe9   : > { %v1092_v13 = vadd.f32 %v2357_v11, %v2801_v9  ;;  %v1086_v15 = vpop.f32.mrb[1].mxu1  ;;  %v767_v16 = vadd.f32 %v2801_v9, %v766_v14 }
  0xea   : > { %v1087_v17 = vadd.f32 %v2801_v9, %v1086_v15  ;;  %vm1406_vm1 = vcmp.ge.f32.partialorder %v772_v12, 0.0  ;;  %v1534_v18 = vmul.f32 0.2, %v772_v12 }
  0xeb   : > { %vm1470_vm2 = vcmp.ge.f32.partialorder %v1092_v13, 0.0  ;;  %v1598_v19 = vmul.f32 0.2, %v1092_v13  ;;  %vm1405_vm3 = vcmp.ge.f32.partialorder %v767_v16, 0.0  ;;  %v1533_v20 = vmul.f32 0.2, %v767_v16 }
  0xec   : > { %vm1469_vm4 = vcmp.ge.f32.partialorder %v1087_v17, 0.0  ;;  %v1597_v21 = vmul.f32 0.2, %v1087_v17  ;;  %v1662_v22 = vsel %vm1406_vm1, %v772_v12, %v1534_v18  ;;  %v2264_v24 = vpop.f32.mrb[2].mxu0  ;;  %v2360_v25 = vpop.f32.mrb[2].mxu1 }
  0xed   : > { %v1726_v23 = vsel %vm1470_vm2, %v1092_v13, %v1598_v19  ;;  %1790 = vst [vmem:[%s2812_s8 + $0x8] sm:$0xff] %v1662_v22  ;;  %v1661_v26 = vsel %vm1405_vm3, %v767_v16, %v1533_v20  ;;  %v782_v28 = vadd.f32 %v2264_v24, %v2801_v9  ;;  %v1102_v29 = vadd.f32 %v2360_v25, %v2801_v9  ;;  %v776_v30 = vpop.f32.mrb[3].mxu0  ;;  %v1096_v31 = vpop.f32.mrb[3].mxu1 }
  0xee   : > { %1854 = vst [vmem:[%s2812_s8 + $0x208] sm:$0xff] %v1726_v23  ;;  %v1725_v27 = vsel %vm1469_vm4, %v1087_v17, %v1597_v21  ;;  %1789 = vst [vmem:[%s2812_s8] sm:$0xff] %v1661_v26  ;;  %v777_v32 = vadd.f32 %v2801_v9, %v776_v30  ;;  %v1097_v33 = vadd.f32 %v2801_v9, %v1096_v31 }
  0xef   : > { %1853 = vst [vmem:[%s2812_s8 + $0x200] sm:$0xff] %v1725_v27  ;;  %vm1408_vm5 = vcmp.ge.f32.partialorder %v782_v28, 0.0  ;;  %v1536_v34 = vmul.f32 0.2, %v782_v28  ;;  %vm1472_vm6 = vcmp.ge.f32.partialorder %v1102_v29, 0.0  ;;  %v2267_v40 = vpop.f32.mrb[4].mxu0 }
  0xf0   : > { %v1600_v35 = vmul.f32 0.2, %v1102_v29  ;;  %vm1407_vm7 = vcmp.ge.f32.partialorder %v777_v32, 0.0  ;;  %v1535_v36 = vmul.f32 0.2, %v777_v32  ;;  %vm1471_vm8 = vcmp.ge.f32.partialorder %v1097_v33, 0.0 }
  0xf1   : > { %v1599_v37 = vmul.f32 0.2, %v1097_v33  ;;  %v1664_v38 = vsel %vm1408_vm5, %v782_v28, %v1536_v34  ;;  %v2363_v41 = vpop.f32.mrb[4].mxu1  ;;  %v792_v44 = vadd.f32 %v2267_v40, %v2801_v9  ;;  %v786_v46 = vpop.f32.mrb[5].mxu0 }
  0xf2   : > { %v1728_v39 = vsel %vm1472_vm6, %v1102_v29, %v1600_v35  ;;  %1792 = vst [vmem:[%s2812_s8 + $0x18] sm:$0xff] %v1664_v38  ;;  %v1663_v42 = vsel %vm1407_vm7, %v777_v32, %v1535_v36  ;;  %v1112_v45 = vadd.f32 %v2363_v41, %v2801_v9  ;;  %v1106_v47 = vpop.f32.mrb[5].mxu1  ;;  %v787_v48 = vadd.f32 %v2801_v9, %v786_v46 }
  0xf3   : > { %1856 = vst [vmem:[%s2812_s8 + $0x218] sm:$0xff] %v1728_v39  ;;  %v1727_v43 = vsel %vm1471_vm8, %v1097_v33, %v1599_v37  ;;  %1791 = vst [vmem:[%s2812_s8 + $0x10] sm:$0xff] %v1663_v42  ;;  %v1107_v49 = vadd.f32 %v2801_v9, %v1106_v47  ;;  %v2270_v50 = vpop.f32.mrb[6].mxu0  ;;  %vm1410_vm9 = vcmp.ge.f32.partialorder %v792_v44, 0.0  ;;  %v1538_v52 = vmul.f32 0.2, %v792_v44 }
  0xf4   : > { %1855 = vst [vmem:[%s2812_s8 + $0x210] sm:$0xff] %v1727_v43  ;;  %v2366_v51 = vpop.f32.mrb[6].mxu1  ;;  %vm1474_vm10 = vcmp.ge.f32.partialorder %v1112_v45, 0.0  ;;  %v1602_v53 = vmul.f32 0.2, %v1112_v45  ;;  %vm1409_vm11 = vcmp.ge.f32.partialorder %v787_v48, 0.0  ;;  %v802_v58 = vadd.f32 %v2270_v50, %v2801_v9 }
  0xf5   : > { %v1537_v54 = vmul.f32 0.2, %v787_v48  ;;  %vm1473_vm12 = vcmp.ge.f32.partialorder %v1107_v49, 0.0  ;;  %v1601_v55 = vmul.f32 0.2, %v1107_v49  ;;  %v1666_v56 = vsel %vm1410_vm9, %v792_v44, %v1538_v52  ;;  %v796_v60 = vpop.f32.mrb[7].mxu0 }
  0xf6   : > { %v1730_v57 = vsel %vm1474_vm10, %v1112_v45, %v1602_v53  ;;  %v1122_v59 = vadd.f32 %v2366_v51, %v2801_v9  ;;  %v1116_v61 = vpop.f32.mrb[7].mxu1  ;;  %1794 = vst [vmem:[%s2812_s8 + $0x28] sm:$0xff] %v1666_v56  ;;  %v797_v0 = vadd.f32 %v2801_v9, %v796_v60  ;;  %vm1412_vm13 = vcmp.ge.f32.partialorder %v802_v58, 0.0 }
  0xf7   : > { %1858 = vst [vmem:[%s2812_s8 + $0x228] sm:$0xff] %v1730_v57  ;;  %v1665_v62 = vsel %vm1409_vm11, %v787_v48, %v1537_v54  ;;  %v1729_v63 = vsel %vm1473_vm12, %v1107_v49, %v1601_v55  ;;  %v1117_v1 = vadd.f32 %v2801_v9, %v1116_v61  ;;  %v2273_v2 = vpop.f32.mrb[8].mxu0  ;;  %v1540_v4 = vmul.f32 0.2, %v802_v58 }
  0xf8   : > { %v2369_v3 = vpop.f32.mrb[8].mxu1  ;;  %1793 = vst [vmem:[%s2812_s8 + $0x20] sm:$0xff] %v1665_v62  ;;  %1857 = vst [vmem:[%s2812_s8 + $0x220] sm:$0xff] %v1729_v63  ;;  %vm1476_vm14 = vcmp.ge.f32.partialorder %v1122_v59, 0.0  ;;  %v1604_v5 = vmul.f32 0.2, %v1122_v59  ;;  %v812_v11 = vadd.f32 %v2273_v2, %v2801_v9 }
  0xf9   : > { %vm1411_vm15 = vcmp.ge.f32.partialorder %v797_v0, 0.0  ;;  %v1539_v6 = vmul.f32 0.2, %v797_v0  ;;  %vm1475_vm0 = vcmp.ge.f32.partialorder %v1117_v1, 0.0  ;;  %v1603_v7 = vmul.f32 0.2, %v1117_v1 }
  0xfa   : > { %v1668_v8 = vsel %vm1412_vm13, %v802_v58, %v1540_v4  ;;  %v1732_v10 = vsel %vm1476_vm14, %v1122_v59, %v1604_v5  ;;  %v1132_v12 = vadd.f32 %v2369_v3, %v2801_v9  ;;  %v806_v13 = vpop.f32.mrb[9].mxu0  ;;  %v1126_v14 = vpop.f32.mrb[9].mxu1  ;;  %vm1414_vm1 = vcmp.ge.f32.partialorder %v812_v11, 0.0 }
  0xfb   : > { %1796 = vst [vmem:[%s2812_s8 + $0x38] sm:$0xff] %v1668_v8  ;;  %1860 = vst [vmem:[%s2812_s8 + $0x238] sm:$0xff] %v1732_v10  ;;  %v1667_v15 = vsel %vm1411_vm15, %v797_v0, %v1539_v6  ;;  %v1731_v16 = vsel %vm1475_vm0, %v1117_v1, %v1603_v7  ;;  %v807_v17 = vadd.f32 %v2801_v9, %v806_v13  ;;  %v2276_v19 = vpop.f32.mrb[10].mxu0  ;;  %v1542_v21 = vmul.f32 0.2, %v812_v11 }
  0xfc   : > { %v1127_v18 = vadd.f32 %v2801_v9, %v1126_v14  ;;  %v2372_v20 = vpop.f32.mrb[10].mxu1  ;;  %1795 = vst [vmem:[%s2812_s8 + $0x30] sm:$0xff] %v1667_v15  ;;  %1859 = vst [vmem:[%s2812_s8 + $0x230] sm:$0xff] %v1731_v16  ;;  %vm1478_vm2 = vcmp.ge.f32.partialorder %v1132_v12, 0.0  ;;  %v1606_v22 = vmul.f32 0.2, %v1132_v12  ;;  %v822_v27 = vadd.f32 %v2276_v19, %v2801_v9 }
  0xfd   : > { %vm1413_vm3 = vcmp.ge.f32.partialorder %v807_v17, 0.0  ;;  %v1541_v23 = vmul.f32 0.2, %v807_v17  ;;  %v1670_v25 = vsel %vm1414_vm1, %v812_v11, %v1542_v21  ;;  %v1142_v28 = vadd.f32 %v2372_v20, %v2801_v9  ;;  %v816_v29 = vpop.f32.mrb[11].mxu0  ;;  %v1136_v30 = vpop.f32.mrb[11].mxu1 }
  0xfe   : > { %vm1477_vm4 = vcmp.ge.f32.partialorder %v1127_v18, 0.0  ;;  %v1605_v24 = vmul.f32 0.2, %v1127_v18  ;;  %v1734_v26 = vsel %vm1478_vm2, %v1132_v12, %v1606_v22  ;;  %1798 = vst [vmem:[%s2812_s8 + $0x48] sm:$0xff] %v1670_v25  ;;  %v817_v33 = vadd.f32 %v2801_v9, %v816_v29 }
  0xff   : > { %1862 = vst [vmem:[%s2812_s8 + $0x248] sm:$0xff] %v1734_v26  ;;  %v1669_v31 = vsel %vm1413_vm3, %v807_v17, %v1541_v23  ;;  %v1137_v34 = vadd.f32 %v2801_v9, %v1136_v30  ;;  %v2279_v35 = vpop.f32.mrb[12].mxu0  ;;  %vm1416_vm5 = vcmp.ge.f32.partialorder %v822_v27, 0.0  ;;  %v1544_v37 = vmul.f32 0.2, %v822_v27 }
 0x100   : > { %v1733_v32 = vsel %vm1477_vm4, %v1127_v18, %v1605_v24  ;;  %v2375_v36 = vpop.f32.mrb[12].mxu1  ;;  %1797 = vst [vmem:[%s2812_s8 + $0x40] sm:$0xff] %v1669_v31  ;;  %vm1480_vm6 = vcmp.ge.f32.partialorder %v1142_v28, 0.0  ;;  %v1608_v38 = vmul.f32 0.2, %v1142_v28  ;;  %vm1415_vm7 = vcmp.ge.f32.partialorder %v817_v33, 0.0 }
 0x101   : > { %1861 = vst [vmem:[%s2812_s8 + $0x240] sm:$0xff] %v1733_v32  ;;  %v1543_v39 = vmul.f32 0.2, %v817_v33  ;;  %vm1479_vm8 = vcmp.ge.f32.partialorder %v1137_v34, 0.0  ;;  %v1607_v40 = vmul.f32 0.2, %v1137_v34  ;;  %v1672_v41 = vsel %vm1416_vm5, %v822_v27, %v1544_v37 }
 0x102   : > { %v1736_v42 = vsel %vm1480_vm6, %v1142_v28, %v1608_v38  ;;  %v832_v43 = vadd.f32 %v2279_v35, %v2801_v9  ;;  %v1152_v44 = vadd.f32 %v2375_v36, %v2801_v9  ;;  %v826_v45 = vpop.f32.mrb[13].mxu0  ;;  %v1146_v46 = vpop.f32.mrb[13].mxu1  ;;  %1800 = vst [vmem:[%s2812_s8 + $0x58] sm:$0xff] %v1672_v41 }
 0x103   : > { %1864 = vst [vmem:[%s2812_s8 + $0x258] sm:$0xff] %v1736_v42  ;;  %v1671_v47 = vsel %vm1415_vm7, %v817_v33, %v1543_v39  ;;  %v1735_v48 = vsel %vm1479_vm8, %v1137_v34, %v1607_v40  ;;  %v827_v49 = vadd.f32 %v2801_v9, %v826_v45  ;;  %v1147_v50 = vadd.f32 %v2801_v9, %v1146_v46  ;;  %v2282_v51 = vpop.f32.mrb[14].mxu0 }
 0x104   : > { %v2378_v52 = vpop.f32.mrb[14].mxu1  ;;  %1799 = vst [vmem:[%s2812_s8 + $0x50] sm:$0xff] %v1671_v47  ;;  %1863 = vst [vmem:[%s2812_s8 + $0x250] sm:$0xff] %v1735_v48  ;;  %vm1418_vm9 = vcmp.ge.f32.partialorder %v832_v43, 0.0  ;;  %v1546_v53 = vmul.f32 0.2, %v832_v43  ;;  %v842_v59 = vadd.f32 %v2282_v51, %v2801_v9 }
 0x105   : > { %vm1482_vm10 = vcmp.ge.f32.partialorder %v1152_v44, 0.0  ;;  %v1610_v54 = vmul.f32 0.2, %v1152_v44  ;;  %vm1417_vm11 = vcmp.ge.f32.partialorder %v827_v49, 0.0  ;;  %v1545_v55 = vmul.f32 0.2, %v827_v49 }
 0x106   : > { %vm1481_vm12 = vcmp.ge.f32.partialorder %v1147_v50, 0.0  ;;  %v1609_v56 = vmul.f32 0.2, %v1147_v50  ;;  %v1674_v57 = vsel %vm1418_vm9, %v832_v43, %v1546_v53  ;;  %v1162_v60 = vadd.f32 %v2378_v52, %v2801_v9  ;;  %v836_v61 = vpop.f32.mrb[15].mxu0  ;;  %v1156_v62 = vpop.f32.mrb[15].mxu1 }
 0x107   : > { %v1738_v58 = vsel %vm1482_vm10, %v1152_v44, %v1610_v54  ;;  %1802 = vst [vmem:[%s2812_s8 + $0x68] sm:$0xff] %v1674_v57  ;;  %v1673_v63 = vsel %vm1417_vm11, %v827_v49, %v1545_v55  ;;  %v837_v1 = vadd.f32 %v2801_v9, %v836_v61  ;;  %v1157_v2 = vadd.f32 %v2801_v9, %v1156_v62  ;;  %v2285_v3 = vpop.f32.mrb[16].mxu0 }
 0x108   : > { %1866 = vst [vmem:[%s2812_s8 + $0x268] sm:$0xff] %v1738_v58  ;;  %v1737_v0 = vsel %vm1481_vm12, %v1147_v50, %v1609_v56  ;;  %v2381_v4 = vpop.f32.mrb[16].mxu1  ;;  %1801 = vst [vmem:[%s2812_s8 + $0x60] sm:$0xff] %v1673_v63  ;;  %vm1420_vm13 = vcmp.ge.f32.partialorder %v842_v59, 0.0  ;;  %v1548_v5 = vmul.f32 0.2, %v842_v59  ;;  %v852_v12 = vadd.f32 %v2285_v3, %v2801_v9 }
 0x109   : > { %1865 = vst [vmem:[%s2812_s8 + $0x260] sm:$0xff] %v1737_v0  ;;  %vm1484_vm14 = vcmp.ge.f32.partialorder %v1162_v60, 0.0  ;;  %v1612_v6 = vmul.f32 0.2, %v1162_v60  ;;  %vm1419_vm15 = vcmp.ge.f32.partialorder %v837_v1, 0.0  ;;  %vm1483_vm0 = vcmp.ge.f32.partialorder %v1157_v2, 0.0 }
 0x10a   : > { %v1547_v7 = vmul.f32 0.2, %v837_v1  ;;  %v1611_v8 = vmul.f32 0.2, %v1157_v2  ;;  %v1676_v10 = vsel %vm1420_vm13, %v842_v59, %v1548_v5  ;;  %v1172_v13 = vadd.f32 %v2381_v4, %v2801_v9  ;;  %v846_v14 = vpop.f32.mrb[17].mxu0  ;;  %v1166_v15 = vpop.f32.mrb[17].mxu1 }
 0x10b   : > { %v1740_v11 = vsel %vm1484_vm14, %v1162_v60, %v1612_v6  ;;  %1804 = vst [vmem:[%s2812_s8 + $0x78] sm:$0xff] %v1676_v10  ;;  %v847_v18 = vadd.f32 %v2801_v9, %v846_v14  ;;  %v1167_v19 = vadd.f32 %v2801_v9, %v1166_v15  ;;  %v2288_v20 = vpop.f32.mrb[18].mxu0  ;;  %vm1422_vm1 = vcmp.ge.f32.partialorder %v852_v12, 0.0 }
 0x10c   : > { %1868 = vst [vmem:[%s2812_s8 + $0x278] sm:$0xff] %v1740_v11  ;;  %v1675_v16 = vsel %vm1419_vm15, %v837_v1, %v1547_v7  ;;  %v1739_v17 = vsel %vm1483_vm0, %v1157_v2, %v1611_v8  ;;  %v2384_v21 = vpop.f32.mrb[18].mxu1  ;;  %v1550_v22 = vmul.f32 0.2, %v852_v12  ;;  %vm1486_vm2 = vcmp.ge.f32.partialorder %v1172_v13, 0.0  ;;  %v856_v30 = vpop.f32.mrb[19].mxu0 }
 0x10d   : > { %1803 = vst [vmem:[%s2812_s8 + $0x70] sm:$0xff] %v1675_v16  ;;  %1867 = vst [vmem:[%s2812_s8 + $0x270] sm:$0xff] %v1739_v17  ;;  %v1614_v23 = vmul.f32 0.2, %v1172_v13  ;;  %vm1421_vm3 = vcmp.ge.f32.partialorder %v847_v18, 0.0  ;;  %vm1485_vm4 = vcmp.ge.f32.partialorder %v1167_v19, 0.0  ;;  %v862_v28 = vadd.f32 %v2288_v20, %v2801_v9 }
 0x10e   : > { %v1549_v24 = vmul.f32 0.2, %v847_v18  ;;  %v1613_v25 = vmul.f32 0.2, %v1167_v19  ;;  %v1678_v26 = vsel %vm1422_vm1, %v852_v12, %v1550_v22  ;;  %v1182_v29 = vadd.f32 %v2384_v21, %v2801_v9  ;;  %v1176_v31 = vpop.f32.mrb[19].mxu1 }
 0x10f   : > { %v1742_v27 = vsel %vm1486_vm2, %v1172_v13, %v1614_v23  ;;  %1806 = vst [vmem:[%s2812_s8 + $0x88] sm:$0xff] %v1678_v26  ;;  %v857_v34 = vadd.f32 %v2801_v9, %v856_v30  ;;  %v1177_v35 = vadd.f32 %v2801_v9, %v1176_v31  ;;  %v2291_v36 = vpop.f32.mrb[20].mxu0  ;;  %vm1424_vm5 = vcmp.ge.f32.partialorder %v862_v28, 0.0 }
 0x110   : > { %1870 = vst [vmem:[%s2812_s8 + $0x288] sm:$0xff] %v1742_v27  ;;  %v1677_v32 = vsel %vm1421_vm3, %v847_v18, %v1549_v24  ;;  %v1741_v33 = vsel %vm1485_vm4, %v1167_v19, %v1613_v25  ;;  %v2387_v37 = vpop.f32.mrb[20].mxu1  ;;  %v1552_v38 = vmul.f32 0.2, %v862_v28  ;;  %vm1488_vm6 = vcmp.ge.f32.partialorder %v1182_v29, 0.0  ;;  %v866_v46 = vpop.f32.mrb[21].mxu0 }
 0x111   : > { %1805 = vst [vmem:[%s2812_s8 + $0x80] sm:$0xff] %v1677_v32  ;;  %1869 = vst [vmem:[%s2812_s8 + $0x280] sm:$0xff] %v1741_v33  ;;  %v1616_v39 = vmul.f32 0.2, %v1182_v29  ;;  %vm1423_vm7 = vcmp.ge.f32.partialorder %v857_v34, 0.0  ;;  %vm1487_vm8 = vcmp.ge.f32.partialorder %v1177_v35, 0.0  ;;  %v872_v44 = vadd.f32 %v2291_v36, %v2801_v9 }
 0x112   : > { %v1551_v40 = vmul.f32 0.2, %v857_v34  ;;  %v1615_v41 = vmul.f32 0.2, %v1177_v35  ;;  %v1680_v42 = vsel %vm1424_vm5, %v862_v28, %v1552_v38  ;;  %v1192_v45 = vadd.f32 %v2387_v37, %v2801_v9  ;;  %v1186_v47 = vpop.f32.mrb[21].mxu1 }
 0x113   : > { %v1744_v43 = vsel %vm1488_vm6, %v1182_v29, %v1616_v39  ;;  %1808 = vst [vmem:[%s2812_s8 + $0x98] sm:$0xff] %v1680_v42  ;;  %v867_v50 = vadd.f32 %v2801_v9, %v866_v46  ;;  %v1187_v51 = vadd.f32 %v2801_v9, %v1186_v47  ;;  %v2294_v52 = vpop.f32.mrb[22].mxu0  ;;  %vm1426_vm9 = vcmp.ge.f32.partialorder %v872_v44, 0.0 }
 0x114   : > { %1872 = vst [vmem:[%s2812_s8 + $0x298] sm:$0xff] %v1744_v43  ;;  %v1679_v48 = vsel %vm1423_vm7, %v857_v34, %v1551_v40  ;;  %v1743_v49 = vsel %vm1487_vm8, %v1177_v35, %v1615_v41  ;;  %v2390_v53 = vpop.f32.mrb[22].mxu1  ;;  %v1554_v54 = vmul.f32 0.2, %v872_v44  ;;  %vm1490_vm10 = vcmp.ge.f32.partialorder %v1192_v45, 0.0  ;;  %v876_v62 = vpop.f32.mrb[23].mxu0 }
 0x115   : > { %1807 = vst [vmem:[%s2812_s8 + $0x90] sm:$0xff] %v1679_v48  ;;  %1871 = vst [vmem:[%s2812_s8 + $0x290] sm:$0xff] %v1743_v49  ;;  %v1618_v55 = vmul.f32 0.2, %v1192_v45  ;;  %vm1425_vm11 = vcmp.ge.f32.partialorder %v867_v50, 0.0  ;;  %vm1489_vm12 = vcmp.ge.f32.partialorder %v1187_v51, 0.0  ;;  %v882_v60 = vadd.f32 %v2294_v52, %v2801_v9 }
 0x116   : > { %v1553_v56 = vmul.f32 0.2, %v867_v50  ;;  %v1617_v57 = vmul.f32 0.2, %v1187_v51  ;;  %v1682_v58 = vsel %vm1426_vm9, %v872_v44, %v1554_v54  ;;  %v1202_v61 = vadd.f32 %v2390_v53, %v2801_v9  ;;  %v1196_v63 = vpop.f32.mrb[23].mxu1 }
 0x117   : > { %v1746_v59 = vsel %vm1490_vm10, %v1192_v45, %v1618_v55  ;;  %1810 = vst [vmem:[%s2812_s8 + $0xa8] sm:$0xff] %v1682_v58  ;;  %v877_v2 = vadd.f32 %v2801_v9, %v876_v62  ;;  %v1197_v3 = vadd.f32 %v2801_v9, %v1196_v63  ;;  %v2297_v4 = vpop.f32.mrb[24].mxu0  ;;  %vm1428_vm13 = vcmp.ge.f32.partialorder %v882_v60, 0.0 }
 0x118   : > { %1874 = vst [vmem:[%s2812_s8 + $0x2a8] sm:$0xff] %v1746_v59  ;;  %v1681_v0 = vsel %vm1425_vm11, %v867_v50, %v1553_v56  ;;  %v1745_v1 = vsel %vm1489_vm12, %v1187_v51, %v1617_v57  ;;  %v2393_v5 = vpop.f32.mrb[24].mxu1  ;;  %v1556_v6 = vmul.f32 0.2, %v882_v60  ;;  %vm1492_vm14 = vcmp.ge.f32.partialorder %v1202_v61, 0.0  ;;  %v886_v15 = vpop.f32.mrb[25].mxu0 }
 0x119   : > { %1809 = vst [vmem:[%s2812_s8 + $0xa0] sm:$0xff] %v1681_v0  ;;  %1873 = vst [vmem:[%s2812_s8 + $0x2a0] sm:$0xff] %v1745_v1  ;;  %v1620_v7 = vmul.f32 0.2, %v1202_v61  ;;  %vm1427_vm15 = vcmp.ge.f32.partialorder %v877_v2, 0.0  ;;  %vm1491_vm0 = vcmp.ge.f32.partialorder %v1197_v3, 0.0  ;;  %v892_v13 = vadd.f32 %v2297_v4, %v2801_v9 }
 0x11a   : > { %v1555_v8 = vmul.f32 0.2, %v877_v2  ;;  %v1619_v10 = vmul.f32 0.2, %v1197_v3  ;;  %v1684_v11 = vsel %vm1428_vm13, %v882_v60, %v1556_v6  ;;  %v1212_v14 = vadd.f32 %v2393_v5, %v2801_v9  ;;  %v1206_v16 = vpop.f32.mrb[25].mxu1 }
 0x11b   : > { %v1748_v12 = vsel %vm1492_vm14, %v1202_v61, %v1620_v7  ;;  %1812 = vst [vmem:[%s2812_s8 + $0xb8] sm:$0xff] %v1684_v11  ;;  %v887_v19 = vadd.f32 %v2801_v9, %v886_v15  ;;  %v1207_v20 = vadd.f32 %v2801_v9, %v1206_v16  ;;  %v2300_v21 = vpop.f32.mrb[26].mxu0  ;;  %vm1430_vm1 = vcmp.ge.f32.partialorder %v892_v13, 0.0 }
 0x11c   : > { %1876 = vst [vmem:[%s2812_s8 + $0x2b8] sm:$0xff] %v1748_v12  ;;  %v1683_v17 = vsel %vm1427_vm15, %v877_v2, %v1555_v8  ;;  %v1747_v18 = vsel %vm1491_vm0, %v1197_v3, %v1619_v10  ;;  %v2396_v22 = vpop.f32.mrb[26].mxu1  ;;  %v1558_v23 = vmul.f32 0.2, %v892_v13  ;;  %vm1494_vm2 = vcmp.ge.f32.partialorder %v1212_v14, 0.0  ;;  %v896_v31 = vpop.f32.mrb[27].mxu0 }
 0x11d   : > { %1811 = vst [vmem:[%s2812_s8 + $0xb0] sm:$0xff] %v1683_v17  ;;  %1875 = vst [vmem:[%s2812_s8 + $0x2b0] sm:$0xff] %v1747_v18  ;;  %v1622_v24 = vmul.f32 0.2, %v1212_v14  ;;  %vm1429_vm3 = vcmp.ge.f32.partialorder %v887_v19, 0.0  ;;  %vm1493_vm4 = vcmp.ge.f32.partialorder %v1207_v20, 0.0  ;;  %v902_v29 = vadd.f32 %v2300_v21, %v2801_v9 }
 0x11e   : > { %v1557_v25 = vmul.f32 0.2, %v887_v19  ;;  %v1621_v26 = vmul.f32 0.2, %v1207_v20  ;;  %v1686_v27 = vsel %vm1430_vm1, %v892_v13, %v1558_v23  ;;  %v1222_v30 = vadd.f32 %v2396_v22, %v2801_v9  ;;  %v1216_v32 = vpop.f32.mrb[27].mxu1 }
 0x11f   : > { %v1750_v28 = vsel %vm1494_vm2, %v1212_v14, %v1622_v24  ;;  %1814 = vst [vmem:[%s2812_s8 + $0xc8] sm:$0xff] %v1686_v27  ;;  %v897_v35 = vadd.f32 %v2801_v9, %v896_v31  ;;  %v1217_v36 = vadd.f32 %v2801_v9, %v1216_v32  ;;  %v2303_v37 = vpop.f32.mrb[28].mxu0  ;;  %vm1432_vm5 = vcmp.ge.f32.partialorder %v902_v29, 0.0 }
 0x120   : > { %1878 = vst [vmem:[%s2812_s8 + $0x2c8] sm:$0xff] %v1750_v28  ;;  %v1685_v33 = vsel %vm1429_vm3, %v887_v19, %v1557_v25  ;;  %v1749_v34 = vsel %vm1493_vm4, %v1207_v20, %v1621_v26  ;;  %v2399_v38 = vpop.f32.mrb[28].mxu1  ;;  %v1560_v39 = vmul.f32 0.2, %v902_v29  ;;  %vm1496_vm6 = vcmp.ge.f32.partialorder %v1222_v30, 0.0  ;;  %v906_v47 = vpop.f32.mrb[29].mxu0 }
 0x121   : > { %1813 = vst [vmem:[%s2812_s8 + $0xc0] sm:$0xff] %v1685_v33  ;;  %1877 = vst [vmem:[%s2812_s8 + $0x2c0] sm:$0xff] %v1749_v34  ;;  %v1624_v40 = vmul.f32 0.2, %v1222_v30  ;;  %vm1431_vm7 = vcmp.ge.f32.partialorder %v897_v35, 0.0  ;;  %vm1495_vm8 = vcmp.ge.f32.partialorder %v1217_v36, 0.0  ;;  %v912_v45 = vadd.f32 %v2303_v37, %v2801_v9 }
 0x122   : > { %v1559_v41 = vmul.f32 0.2, %v897_v35  ;;  %v1623_v42 = vmul.f32 0.2, %v1217_v36  ;;  %v1688_v43 = vsel %vm1432_vm5, %v902_v29, %v1560_v39  ;;  %v1232_v46 = vadd.f32 %v2399_v38, %v2801_v9  ;;  %v1226_v48 = vpop.f32.mrb[29].mxu1 }
 0x123   : > { %v1752_v44 = vsel %vm1496_vm6, %v1222_v30, %v1624_v40  ;;  %1816 = vst [vmem:[%s2812_s8 + $0xd8] sm:$0xff] %v1688_v43  ;;  %v907_v51 = vadd.f32 %v2801_v9, %v906_v47  ;;  %v1227_v52 = vadd.f32 %v2801_v9, %v1226_v48  ;;  %v2306_v53 = vpop.f32.mrb[30].mxu0  ;;  %vm1434_vm9 = vcmp.ge.f32.partialorder %v912_v45, 0.0 }
 0x124   : > { %1880 = vst [vmem:[%s2812_s8 + $0x2d8] sm:$0xff] %v1752_v44  ;;  %v1687_v49 = vsel %vm1431_vm7, %v897_v35, %v1559_v41  ;;  %v1751_v50 = vsel %vm1495_vm8, %v1217_v36, %v1623_v42  ;;  %v2402_v54 = vpop.f32.mrb[30].mxu1  ;;  %v1562_v55 = vmul.f32 0.2, %v912_v45  ;;  %vm1498_vm10 = vcmp.ge.f32.partialorder %v1232_v46, 0.0  ;;  %v916_v63 = vpop.f32.mrb[31].mxu0 }
 0x125   : > { %1815 = vst [vmem:[%s2812_s8 + $0xd0] sm:$0xff] %v1687_v49  ;;  %1879 = vst [vmem:[%s2812_s8 + $0x2d0] sm:$0xff] %v1751_v50  ;;  %v1626_v56 = vmul.f32 0.2, %v1232_v46  ;;  %vm1433_vm11 = vcmp.ge.f32.partialorder %v907_v51, 0.0  ;;  %vm1497_vm12 = vcmp.ge.f32.partialorder %v1227_v52, 0.0  ;;  %v922_v61 = vadd.f32 %v2306_v53, %v2801_v9 }
 0x126   : > { %v1561_v57 = vmul.f32 0.2, %v907_v51  ;;  %v1625_v58 = vmul.f32 0.2, %v1227_v52  ;;  %v1690_v59 = vsel %vm1434_vm9, %v912_v45, %v1562_v55  ;;  %v1242_v62 = vadd.f32 %v2402_v54, %v2801_v9  ;;  %v1236_v0 = vpop.f32.mrb[31].mxu1 }
 0x127   : > { %v1754_v60 = vsel %vm1498_vm10, %v1232_v46, %v1626_v56  ;;  %1818 = vst [vmem:[%s2812_s8 + $0xe8] sm:$0xff] %v1690_v59  ;;  %v917_v3 = vadd.f32 %v2801_v9, %v916_v63  ;;  %v1237_v4 = vadd.f32 %v2801_v9, %v1236_v0  ;;  %v2309_v5 = vpop.f32.mrb[32].mxu0  ;;  %vm1436_vm13 = vcmp.ge.f32.partialorder %v922_v61, 0.0 }
 0x128   : > { %1882 = vst [vmem:[%s2812_s8 + $0x2e8] sm:$0xff] %v1754_v60  ;;  %v1689_v1 = vsel %vm1433_vm11, %v907_v51, %v1561_v57  ;;  %v1753_v2 = vsel %vm1497_vm12, %v1227_v52, %v1625_v58  ;;  %v2405_v6 = vpop.f32.mrb[32].mxu1  ;;  %v1564_v7 = vmul.f32 0.2, %v922_v61  ;;  %vm1500_vm14 = vcmp.ge.f32.partialorder %v1242_v62, 0.0  ;;  %v926_v16 = vpop.f32.mrb[33].mxu0 }
 0x129   : > { %1817 = vst [vmem:[%s2812_s8 + $0xe0] sm:$0xff] %v1689_v1  ;;  %1881 = vst [vmem:[%s2812_s8 + $0x2e0] sm:$0xff] %v1753_v2  ;;  %v1628_v8 = vmul.f32 0.2, %v1242_v62  ;;  %vm1435_vm15 = vcmp.ge.f32.partialorder %v917_v3, 0.0  ;;  %vm1499_vm0 = vcmp.ge.f32.partialorder %v1237_v4, 0.0  ;;  %v932_v14 = vadd.f32 %v2309_v5, %v2801_v9 }
 0x12a   : > { %v1563_v10 = vmul.f32 0.2, %v917_v3  ;;  %v1627_v11 = vmul.f32 0.2, %v1237_v4  ;;  %v1692_v12 = vsel %vm1436_vm13, %v922_v61, %v1564_v7  ;;  %v1252_v15 = vadd.f32 %v2405_v6, %v2801_v9  ;;  %v1246_v17 = vpop.f32.mrb[33].mxu1 }
 0x12b   : > { %v1756_v13 = vsel %vm1500_vm14, %v1242_v62, %v1628_v8  ;;  %1820 = vst [vmem:[%s2812_s8 + $0xf8] sm:$0xff] %v1692_v12  ;;  %v927_v20 = vadd.f32 %v2801_v9, %v926_v16  ;;  %v1247_v21 = vadd.f32 %v2801_v9, %v1246_v17  ;;  %v2312_v22 = vpop.f32.mrb[34].mxu0  ;;  %vm1438_vm1 = vcmp.ge.f32.partialorder %v932_v14, 0.0 }
 0x12c   : > { %1884 = vst [vmem:[%s2812_s8 + $0x2f8] sm:$0xff] %v1756_v13  ;;  %v1691_v18 = vsel %vm1435_vm15, %v917_v3, %v1563_v10  ;;  %v1755_v19 = vsel %vm1499_vm0, %v1237_v4, %v1627_v11  ;;  %v2408_v23 = vpop.f32.mrb[34].mxu1  ;;  %v1566_v24 = vmul.f32 0.2, %v932_v14  ;;  %vm1502_vm2 = vcmp.ge.f32.partialorder %v1252_v15, 0.0  ;;  %v936_v32 = vpop.f32.mrb[35].mxu0 }
 0x12d   : > { %1819 = vst [vmem:[%s2812_s8 + $0xf0] sm:$0xff] %v1691_v18  ;;  %1883 = vst [vmem:[%s2812_s8 + $0x2f0] sm:$0xff] %v1755_v19  ;;  %v1630_v25 = vmul.f32 0.2, %v1252_v15  ;;  %vm1437_vm3 = vcmp.ge.f32.partialorder %v927_v20, 0.0  ;;  %vm1501_vm4 = vcmp.ge.f32.partialorder %v1247_v21, 0.0  ;;  %v942_v30 = vadd.f32 %v2312_v22, %v2801_v9 }
 0x12e   : > { %v1565_v26 = vmul.f32 0.2, %v927_v20  ;;  %v1629_v27 = vmul.f32 0.2, %v1247_v21  ;;  %v1694_v28 = vsel %vm1438_vm1, %v932_v14, %v1566_v24  ;;  %v1262_v31 = vadd.f32 %v2408_v23, %v2801_v9  ;;  %v1256_v33 = vpop.f32.mrb[35].mxu1 }
 0x12f   : > { %v1758_v29 = vsel %vm1502_vm2, %v1252_v15, %v1630_v25  ;;  %1822 = vst [vmem:[%s2812_s8 + $0x108] sm:$0xff] %v1694_v28  ;;  %v937_v36 = vadd.f32 %v2801_v9, %v936_v32  ;;  %v1257_v37 = vadd.f32 %v2801_v9, %v1256_v33  ;;  %v2315_v38 = vpop.f32.mrb[36].mxu0  ;;  %vm1440_vm5 = vcmp.ge.f32.partialorder %v942_v30, 0.0 }
 0x130   : > { %1886 = vst [vmem:[%s2812_s8 + $0x308] sm:$0xff] %v1758_v29  ;;  %v1693_v34 = vsel %vm1437_vm3, %v927_v20, %v1565_v26  ;;  %v1757_v35 = vsel %vm1501_vm4, %v1247_v21, %v1629_v27  ;;  %v2411_v39 = vpop.f32.mrb[36].mxu1  ;;  %v1568_v40 = vmul.f32 0.2, %v942_v30  ;;  %vm1504_vm6 = vcmp.ge.f32.partialorder %v1262_v31, 0.0  ;;  %v946_v48 = vpop.f32.mrb[37].mxu0 }
 0x131   : > { %1821 = vst [vmem:[%s2812_s8 + $0x100] sm:$0xff] %v1693_v34  ;;  %1885 = vst [vmem:[%s2812_s8 + $0x300] sm:$0xff] %v1757_v35  ;;  %v1632_v41 = vmul.f32 0.2, %v1262_v31  ;;  %vm1439_vm7 = vcmp.ge.f32.partialorder %v937_v36, 0.0  ;;  %vm1503_vm8 = vcmp.ge.f32.partialorder %v1257_v37, 0.0  ;;  %v952_v46 = vadd.f32 %v2315_v38, %v2801_v9 }
 0x132   : > { %v1567_v42 = vmul.f32 0.2, %v937_v36  ;;  %v1631_v43 = vmul.f32 0.2, %v1257_v37  ;;  %v1696_v44 = vsel %vm1440_vm5, %v942_v30, %v1568_v40  ;;  %v1272_v47 = vadd.f32 %v2411_v39, %v2801_v9  ;;  %v1266_v49 = vpop.f32.mrb[37].mxu1 }
 0x133   : > { %v1760_v45 = vsel %vm1504_vm6, %v1262_v31, %v1632_v41  ;;  %1824 = vst [vmem:[%s2812_s8 + $0x118] sm:$0xff] %v1696_v44  ;;  %v947_v52 = vadd.f32 %v2801_v9, %v946_v48  ;;  %v1267_v53 = vadd.f32 %v2801_v9, %v1266_v49  ;;  %v2318_v54 = vpop.f32.mrb[38].mxu0  ;;  %vm1442_vm9 = vcmp.ge.f32.partialorder %v952_v46, 0.0 }
 0x134   : > { %1888 = vst [vmem:[%s2812_s8 + $0x318] sm:$0xff] %v1760_v45  ;;  %v1695_v50 = vsel %vm1439_vm7, %v937_v36, %v1567_v42  ;;  %v1759_v51 = vsel %vm1503_vm8, %v1257_v37, %v1631_v43  ;;  %v2414_v55 = vpop.f32.mrb[38].mxu1  ;;  %v1570_v56 = vmul.f32 0.2, %v952_v46  ;;  %vm1506_vm10 = vcmp.ge.f32.partialorder %v1272_v47, 0.0  ;;  %v956_v0 = vpop.f32.mrb[39].mxu0 }
 0x135   : > { %1823 = vst [vmem:[%s2812_s8 + $0x110] sm:$0xff] %v1695_v50  ;;  %1887 = vst [vmem:[%s2812_s8 + $0x310] sm:$0xff] %v1759_v51  ;;  %v1634_v57 = vmul.f32 0.2, %v1272_v47  ;;  %vm1441_vm11 = vcmp.ge.f32.partialorder %v947_v52, 0.0  ;;  %vm1505_vm12 = vcmp.ge.f32.partialorder %v1267_v53, 0.0  ;;  %v962_v62 = vadd.f32 %v2318_v54, %v2801_v9 }
 0x136   : > { %v1569_v58 = vmul.f32 0.2, %v947_v52  ;;  %v1633_v59 = vmul.f32 0.2, %v1267_v53  ;;  %v1698_v60 = vsel %vm1442_vm9, %v952_v46, %v1570_v56  ;;  %v1282_v63 = vadd.f32 %v2414_v55, %v2801_v9  ;;  %v1276_v1 = vpop.f32.mrb[39].mxu1 }
 0x137   : > { %v1762_v61 = vsel %vm1506_vm10, %v1272_v47, %v1634_v57  ;;  %1826 = vst [vmem:[%s2812_s8 + $0x128] sm:$0xff] %v1698_v60  ;;  %v957_v4 = vadd.f32 %v2801_v9, %v956_v0  ;;  %v1277_v5 = vadd.f32 %v2801_v9, %v1276_v1  ;;  %v2321_v6 = vpop.f32.mrb[40].mxu0  ;;  %vm1444_vm13 = vcmp.ge.f32.partialorder %v962_v62, 0.0 }
 0x138   : > { %1890 = vst [vmem:[%s2812_s8 + $0x328] sm:$0xff] %v1762_v61  ;;  %v1697_v2 = vsel %vm1441_vm11, %v947_v52, %v1569_v58  ;;  %v1761_v3 = vsel %vm1505_vm12, %v1267_v53, %v1633_v59  ;;  %v2417_v7 = vpop.f32.mrb[40].mxu1  ;;  %v1572_v8 = vmul.f32 0.2, %v962_v62  ;;  %vm1508_vm14 = vcmp.ge.f32.partialorder %v1282_v63, 0.0  ;;  %v966_v17 = vpop.f32.mrb[41].mxu0 }
 0x139   : > { %1825 = vst [vmem:[%s2812_s8 + $0x120] sm:$0xff] %v1697_v2  ;;  %1889 = vst [vmem:[%s2812_s8 + $0x320] sm:$0xff] %v1761_v3  ;;  %v1636_v10 = vmul.f32 0.2, %v1282_v63  ;;  %vm1443_vm15 = vcmp.ge.f32.partialorder %v957_v4, 0.0  ;;  %vm1507_vm0 = vcmp.ge.f32.partialorder %v1277_v5, 0.0  ;;  %v972_v15 = vadd.f32 %v2321_v6, %v2801_v9 }
 0x13a   : > { %v1571_v11 = vmul.f32 0.2, %v957_v4  ;;  %v1635_v12 = vmul.f32 0.2, %v1277_v5  ;;  %v1700_v13 = vsel %vm1444_vm13, %v962_v62, %v1572_v8  ;;  %v1292_v16 = vadd.f32 %v2417_v7, %v2801_v9  ;;  %v1286_v18 = vpop.f32.mrb[41].mxu1 }
 0x13b   : > { %v1764_v14 = vsel %vm1508_vm14, %v1282_v63, %v1636_v10  ;;  %1828 = vst [vmem:[%s2812_s8 + $0x138] sm:$0xff] %v1700_v13  ;;  %v967_v21 = vadd.f32 %v2801_v9, %v966_v17  ;;  %v1287_v22 = vadd.f32 %v2801_v9, %v1286_v18  ;;  %v2324_v23 = vpop.f32.mrb[42].mxu0  ;;  %vm1446_vm1 = vcmp.ge.f32.partialorder %v972_v15, 0.0 }
 0x13c   : > { %1892 = vst [vmem:[%s2812_s8 + $0x338] sm:$0xff] %v1764_v14  ;;  %v1699_v19 = vsel %vm1443_vm15, %v957_v4, %v1571_v11  ;;  %v1763_v20 = vsel %vm1507_vm0, %v1277_v5, %v1635_v12  ;;  %v2420_v24 = vpop.f32.mrb[42].mxu1  ;;  %v1574_v25 = vmul.f32 0.2, %v972_v15  ;;  %vm1510_vm2 = vcmp.ge.f32.partialorder %v1292_v16, 0.0  ;;  %v976_v33 = vpop.f32.mrb[43].mxu0 }
 0x13d   : > { %1827 = vst [vmem:[%s2812_s8 + $0x130] sm:$0xff] %v1699_v19  ;;  %1891 = vst [vmem:[%s2812_s8 + $0x330] sm:$0xff] %v1763_v20  ;;  %v1638_v26 = vmul.f32 0.2, %v1292_v16  ;;  %vm1445_vm3 = vcmp.ge.f32.partialorder %v967_v21, 0.0  ;;  %vm1509_vm4 = vcmp.ge.f32.partialorder %v1287_v22, 0.0  ;;  %v982_v31 = vadd.f32 %v2324_v23, %v2801_v9 }
 0x13e   : > { %v1573_v27 = vmul.f32 0.2, %v967_v21  ;;  %v1637_v28 = vmul.f32 0.2, %v1287_v22  ;;  %v1702_v29 = vsel %vm1446_vm1, %v972_v15, %v1574_v25  ;;  %v1302_v32 = vadd.f32 %v2420_v24, %v2801_v9  ;;  %v1296_v34 = vpop.f32.mrb[43].mxu1 }
 0x13f   : > { %v1766_v30 = vsel %vm1510_vm2, %v1292_v16, %v1638_v26  ;;  %1830 = vst [vmem:[%s2812_s8 + $0x148] sm:$0xff] %v1702_v29  ;;  %v977_v37 = vadd.f32 %v2801_v9, %v976_v33  ;;  %v1297_v38 = vadd.f32 %v2801_v9, %v1296_v34  ;;  %v2327_v39 = vpop.f32.mrb[44].mxu0  ;;  %vm1448_vm5 = vcmp.ge.f32.partialorder %v982_v31, 0.0  ;;  %v2985_v9 = vld [vmem:[%s3076_s2] ss:$0 sm:$0xff] }
 0x140   : > { %1894 = vst [vmem:[%s2812_s8 + $0x348] sm:$0xff] %v1766_v30  ;;  %v1701_v35 = vsel %vm1445_vm3, %v967_v21, %v1573_v27  ;;  %v1765_v36 = vsel %vm1509_vm4, %v1287_v22, %v1637_v28  ;;  %v2423_v40 = vpop.f32.mrb[44].mxu1  ;;  %v1576_v41 = vmul.f32 0.2, %v982_v31  ;;  %vm1512_vm6 = vcmp.ge.f32.partialorder %v1302_v32, 0.0  ;;  %v986_v49 = vpop.f32.mrb[45].mxu0 }
 0x141   : > { %1829 = vst [vmem:[%s2812_s8 + $0x140] sm:$0xff] %v1701_v35  ;;  %1893 = vst [vmem:[%s2812_s8 + $0x340] sm:$0xff] %v1765_v36  ;;  %v1640_v42 = vmul.f32 0.2, %v1302_v32  ;;  %vm1447_vm7 = vcmp.ge.f32.partialorder %v977_v37, 0.0  ;;  %vm1511_vm8 = vcmp.ge.f32.partialorder %v1297_v38, 0.0  ;;  %v992_v47 = vadd.f32 %v2985_v9, %v2327_v39 }
 0x142   : > { %v1575_v43 = vmul.f32 0.2, %v977_v37  ;;  %v1639_v44 = vmul.f32 0.2, %v1297_v38  ;;  %v1704_v45 = vsel %vm1448_vm5, %v982_v31, %v1576_v41  ;;  %v1312_v48 = vadd.f32 %v2985_v9, %v2423_v40  ;;  %v1306_v50 = vpop.f32.mrb[45].mxu1 }
 0x143   : > { %v1768_v46 = vsel %vm1512_vm6, %v1302_v32, %v1640_v42  ;;  %1832 = vst [vmem:[%s2812_s8 + $0x158] sm:$0xff] %v1704_v45  ;;  %v987_v53 = vadd.f32 %v2985_v9, %v986_v49  ;;  %v1307_v54 = vadd.f32 %v2985_v9, %v1306_v50  ;;  %v2330_v55 = vpop.f32.mrb[46].mxu0  ;;  %vm1450_vm9 = vcmp.ge.f32.partialorder %v992_v47, 0.0 }
 0x144   : > { %1896 = vst [vmem:[%s2812_s8 + $0x358] sm:$0xff] %v1768_v46  ;;  %v1703_v51 = vsel %vm1447_vm7, %v977_v37, %v1575_v43  ;;  %v1767_v52 = vsel %vm1511_vm8, %v1297_v38, %v1639_v44  ;;  %v2426_v56 = vpop.f32.mrb[46].mxu1  ;;  %v1578_v57 = vmul.f32 0.2, %v992_v47  ;;  %vm1514_vm10 = vcmp.ge.f32.partialorder %v1312_v48, 0.0  ;;  %v996_v1 = vpop.f32.mrb[47].mxu0 }
 0x145   : > { %1831 = vst [vmem:[%s2812_s8 + $0x150] sm:$0xff] %v1703_v51  ;;  %1895 = vst [vmem:[%s2812_s8 + $0x350] sm:$0xff] %v1767_v52  ;;  %v1642_v58 = vmul.f32 0.2, %v1312_v48  ;;  %vm1449_vm11 = vcmp.ge.f32.partialorder %v987_v53, 0.0  ;;  %vm1513_vm12 = vcmp.ge.f32.partialorder %v1307_v54, 0.0  ;;  %v1002_v63 = vadd.f32 %v2985_v9, %v2330_v55 }
 0x146   : > { %v1577_v59 = vmul.f32 0.2, %v987_v53  ;;  %v1641_v60 = vmul.f32 0.2, %v1307_v54  ;;  %v1706_v61 = vsel %vm1450_vm9, %v992_v47, %v1578_v57  ;;  %v1322_v0 = vadd.f32 %v2985_v9, %v2426_v56  ;;  %v1316_v2 = vpop.f32.mrb[47].mxu1 }
 0x147   : > { %v1770_v62 = vsel %vm1514_vm10, %v1312_v48, %v1642_v58  ;;  %1834 = vst [vmem:[%s2812_s8 + $0x168] sm:$0xff] %v1706_v61  ;;  %v997_v5 = vadd.f32 %v2985_v9, %v996_v1  ;;  %v1317_v6 = vadd.f32 %v2985_v9, %v1316_v2  ;;  %v2333_v7 = vpop.f32.mrb[48].mxu0  ;;  %vm1452_vm13 = vcmp.ge.f32.partialorder %v1002_v63, 0.0 }
 0x148   : > { %1898 = vst [vmem:[%s2812_s8 + $0x368] sm:$0xff] %v1770_v62  ;;  %v1705_v3 = vsel %vm1449_vm11, %v987_v53, %v1577_v59  ;;  %v1769_v4 = vsel %vm1513_vm12, %v1307_v54, %v1641_v60  ;;  %v2429_v8 = vpop.f32.mrb[48].mxu1  ;;  %v1580_v10 = vmul.f32 0.2, %v1002_v63  ;;  %vm1516_vm14 = vcmp.ge.f32.partialorder %v1322_v0, 0.0  ;;  %v1006_v18 = vpop.f32.mrb[49].mxu0 }
 0x149   : > { %1833 = vst [vmem:[%s2812_s8 + $0x160] sm:$0xff] %v1705_v3  ;;  %1897 = vst [vmem:[%s2812_s8 + $0x360] sm:$0xff] %v1769_v4  ;;  %v1644_v11 = vmul.f32 0.2, %v1322_v0  ;;  %vm1451_vm15 = vcmp.ge.f32.partialorder %v997_v5, 0.0  ;;  %vm1515_vm0 = vcmp.ge.f32.partialorder %v1317_v6, 0.0  ;;  %v1012_v16 = vadd.f32 %v2985_v9, %v2333_v7 }
 0x14a   : > { %v1579_v12 = vmul.f32 0.2, %v997_v5  ;;  %v1643_v13 = vmul.f32 0.2, %v1317_v6  ;;  %v1708_v14 = vsel %vm1452_vm13, %v1002_v63, %v1580_v10  ;;  %v1332_v17 = vadd.f32 %v2985_v9, %v2429_v8  ;;  %v1326_v19 = vpop.f32.mrb[49].mxu1 }
 0x14b   : > { %v1772_v15 = vsel %vm1516_vm14, %v1322_v0, %v1644_v11  ;;  %1836 = vst [vmem:[%s2812_s8 + $0x178] sm:$0xff] %v1708_v14  ;;  %v1007_v22 = vadd.f32 %v2985_v9, %v1006_v18  ;;  %v1327_v23 = vadd.f32 %v2985_v9, %v1326_v19  ;;  %v2336_v24 = vpop.f32.mrb[50].mxu0  ;;  %vm1454_vm1 = vcmp.ge.f32.partialorder %v1012_v16, 0.0 }
 0x14c   : > { %1900 = vst [vmem:[%s2812_s8 + $0x378] sm:$0xff] %v1772_v15  ;;  %v1707_v20 = vsel %vm1451_vm15, %v997_v5, %v1579_v12  ;;  %v1771_v21 = vsel %vm1515_vm0, %v1317_v6, %v1643_v13  ;;  %v2432_v25 = vpop.f32.mrb[50].mxu1  ;;  %v1582_v26 = vmul.f32 0.2, %v1012_v16  ;;  %vm1518_vm2 = vcmp.ge.f32.partialorder %v1332_v17, 0.0  ;;  %v1016_v34 = vpop.f32.mrb[51].mxu0 }
 0x14d   : > { %1835 = vst [vmem:[%s2812_s8 + $0x170] sm:$0xff] %v1707_v20  ;;  %1899 = vst [vmem:[%s2812_s8 + $0x370] sm:$0xff] %v1771_v21  ;;  %v1646_v27 = vmul.f32 0.2, %v1332_v17  ;;  %vm1453_vm3 = vcmp.ge.f32.partialorder %v1007_v22, 0.0  ;;  %vm1517_vm4 = vcmp.ge.f32.partialorder %v1327_v23, 0.0  ;;  %v1022_v32 = vadd.f32 %v2985_v9, %v2336_v24 }
 0x14e   : > { %v1581_v28 = vmul.f32 0.2, %v1007_v22  ;;  %v1645_v29 = vmul.f32 0.2, %v1327_v23  ;;  %v1710_v30 = vsel %vm1454_vm1, %v1012_v16, %v1582_v26  ;;  %v1342_v33 = vadd.f32 %v2985_v9, %v2432_v25  ;;  %v1336_v35 = vpop.f32.mrb[51].mxu1 }
 0x14f   : > { %v1774_v31 = vsel %vm1518_vm2, %v1332_v17, %v1646_v27  ;;  %1838 = vst [vmem:[%s2812_s8 + $0x188] sm:$0xff] %v1710_v30  ;;  %v1017_v38 = vadd.f32 %v2985_v9, %v1016_v34  ;;  %v1337_v39 = vadd.f32 %v2985_v9, %v1336_v35  ;;  %v2339_v40 = vpop.f32.mrb[52].mxu0  ;;  %vm1456_vm5 = vcmp.ge.f32.partialorder %v1022_v32, 0.0 }
 0x150   : > { %1902 = vst [vmem:[%s2812_s8 + $0x388] sm:$0xff] %v1774_v31  ;;  %v1709_v36 = vsel %vm1453_vm3, %v1007_v22, %v1581_v28  ;;  %v1773_v37 = vsel %vm1517_vm4, %v1327_v23, %v1645_v29  ;;  %v2435_v41 = vpop.f32.mrb[52].mxu1  ;;  %v1584_v42 = vmul.f32 0.2, %v1022_v32  ;;  %vm1520_vm6 = vcmp.ge.f32.partialorder %v1342_v33, 0.0  ;;  %v1026_v50 = vpop.f32.mrb[53].mxu0 }
 0x151   : > { %1837 = vst [vmem:[%s2812_s8 + $0x180] sm:$0xff] %v1709_v36  ;;  %1901 = vst [vmem:[%s2812_s8 + $0x380] sm:$0xff] %v1773_v37  ;;  %v1648_v43 = vmul.f32 0.2, %v1342_v33  ;;  %vm1455_vm7 = vcmp.ge.f32.partialorder %v1017_v38, 0.0  ;;  %vm1519_vm8 = vcmp.ge.f32.partialorder %v1337_v39, 0.0  ;;  %v1032_v48 = vadd.f32 %v2985_v9, %v2339_v40 }
 0x152   : > { %v1583_v44 = vmul.f32 0.2, %v1017_v38  ;;  %v1647_v45 = vmul.f32 0.2, %v1337_v39  ;;  %v1712_v46 = vsel %vm1456_vm5, %v1022_v32, %v1584_v42  ;;  %v1352_v49 = vadd.f32 %v2985_v9, %v2435_v41  ;;  %v1346_v51 = vpop.f32.mrb[53].mxu1 }
 0x153   : > { %v1776_v47 = vsel %vm1520_vm6, %v1342_v33, %v1648_v43  ;;  %1840 = vst [vmem:[%s2812_s8 + $0x198] sm:$0xff] %v1712_v46  ;;  %v1027_v54 = vadd.f32 %v2985_v9, %v1026_v50  ;;  %v1347_v55 = vadd.f32 %v2985_v9, %v1346_v51  ;;  %v2342_v56 = vpop.f32.mrb[54].mxu0  ;;  %vm1458_vm9 = vcmp.ge.f32.partialorder %v1032_v48, 0.0 }
 0x154   : > { %1904 = vst [vmem:[%s2812_s8 + $0x398] sm:$0xff] %v1776_v47  ;;  %v1711_v52 = vsel %vm1455_vm7, %v1017_v38, %v1583_v44  ;;  %v1775_v53 = vsel %vm1519_vm8, %v1337_v39, %v1647_v45  ;;  %v2438_v57 = vpop.f32.mrb[54].mxu1  ;;  %v1586_v58 = vmul.f32 0.2, %v1032_v48  ;;  %vm1522_vm10 = vcmp.ge.f32.partialorder %v1352_v49, 0.0  ;;  %v1036_v2 = vpop.f32.mrb[55].mxu0 }
 0x155   : > { %1839 = vst [vmem:[%s2812_s8 + $0x190] sm:$0xff] %v1711_v52  ;;  %1903 = vst [vmem:[%s2812_s8 + $0x390] sm:$0xff] %v1775_v53  ;;  %v1650_v59 = vmul.f32 0.2, %v1352_v49  ;;  %vm1457_vm11 = vcmp.ge.f32.partialorder %v1027_v54, 0.0  ;;  %vm1521_vm12 = vcmp.ge.f32.partialorder %v1347_v55, 0.0  ;;  %v1042_v0 = vadd.f32 %v2985_v9, %v2342_v56 }
 0x156   : > { %v1585_v60 = vmul.f32 0.2, %v1027_v54  ;;  %v1649_v61 = vmul.f32 0.2, %v1347_v55  ;;  %v1714_v62 = vsel %vm1458_vm9, %v1032_v48, %v1586_v58  ;;  %v1362_v1 = vadd.f32 %v2985_v9, %v2438_v57  ;;  %v1356_v3 = vpop.f32.mrb[55].mxu1 }
 0x157   : > { %v1778_v63 = vsel %vm1522_vm10, %v1352_v49, %v1650_v59  ;;  %1842 = vst [vmem:[%s2812_s8 + $0x1a8] sm:$0xff] %v1714_v62  ;;  %v1037_v6 = vadd.f32 %v2985_v9, %v1036_v2  ;;  %v1357_v7 = vadd.f32 %v2985_v9, %v1356_v3  ;;  %v2345_v8 = vpop.f32.mrb[56].mxu0  ;;  %vm1460_vm13 = vcmp.ge.f32.partialorder %v1042_v0, 0.0 }
 0x158   : > { %1906 = vst [vmem:[%s2812_s8 + $0x3a8] sm:$0xff] %v1778_v63  ;;  %v1713_v4 = vsel %vm1457_vm11, %v1027_v54, %v1585_v60  ;;  %v1777_v5 = vsel %vm1521_vm12, %v1347_v55, %v1649_v61  ;;  %v2441_v10 = vpop.f32.mrb[56].mxu1  ;;  %v1588_v11 = vmul.f32 0.2, %v1042_v0  ;;  %vm1524_vm14 = vcmp.ge.f32.partialorder %v1362_v1, 0.0  ;;  %v1046_v19 = vpop.f32.mrb[57].mxu0 }
 0x159   : > { %1841 = vst [vmem:[%s2812_s8 + $0x1a0] sm:$0xff] %v1713_v4  ;;  %1905 = vst [vmem:[%s2812_s8 + $0x3a0] sm:$0xff] %v1777_v5  ;;  %v1652_v12 = vmul.f32 0.2, %v1362_v1  ;;  %vm1459_vm15 = vcmp.ge.f32.partialorder %v1037_v6, 0.0  ;;  %vm1523_vm0 = vcmp.ge.f32.partialorder %v1357_v7, 0.0  ;;  %v1052_v17 = vadd.f32 %v2985_v9, %v2345_v8 }
 0x15a   : > { %v1587_v13 = vmul.f32 0.2, %v1037_v6  ;;  %v1651_v14 = vmul.f32 0.2, %v1357_v7  ;;  %v1716_v15 = vsel %vm1460_vm13, %v1042_v0, %v1588_v11  ;;  %v1372_v18 = vadd.f32 %v2985_v9, %v2441_v10  ;;  %v1366_v20 = vpop.f32.mrb[57].mxu1 }
 0x15b   : > { %v1780_v16 = vsel %vm1524_vm14, %v1362_v1, %v1652_v12  ;;  %1844 = vst [vmem:[%s2812_s8 + $0x1b8] sm:$0xff] %v1716_v15  ;;  %v1047_v23 = vadd.f32 %v2985_v9, %v1046_v19  ;;  %v1367_v24 = vadd.f32 %v2985_v9, %v1366_v20  ;;  %v2348_v25 = vpop.f32.mrb[58].mxu0  ;;  %vm1462_vm1 = vcmp.ge.f32.partialorder %v1052_v17, 0.0 }
 0x15c   : > { %1908 = vst [vmem:[%s2812_s8 + $0x3b8] sm:$0xff] %v1780_v16  ;;  %v1715_v21 = vsel %vm1459_vm15, %v1037_v6, %v1587_v13  ;;  %v1779_v22 = vsel %vm1523_vm0, %v1357_v7, %v1651_v14  ;;  %v2444_v26 = vpop.f32.mrb[58].mxu1  ;;  %v1590_v27 = vmul.f32 0.2, %v1052_v17  ;;  %vm1526_vm2 = vcmp.ge.f32.partialorder %v1372_v18, 0.0  ;;  %v1056_v35 = vpop.f32.mrb[59].mxu0 }
 0x15d   : > { %1843 = vst [vmem:[%s2812_s8 + $0x1b0] sm:$0xff] %v1715_v21  ;;  %1907 = vst [vmem:[%s2812_s8 + $0x3b0] sm:$0xff] %v1779_v22  ;;  %v1654_v28 = vmul.f32 0.2, %v1372_v18  ;;  %vm1461_vm3 = vcmp.ge.f32.partialorder %v1047_v23, 0.0  ;;  %vm1525_vm4 = vcmp.ge.f32.partialorder %v1367_v24, 0.0  ;;  %v1062_v33 = vadd.f32 %v2985_v9, %v2348_v25 }
 0x15e   : > { %v1589_v29 = vmul.f32 0.2, %v1047_v23  ;;  %v1653_v30 = vmul.f32 0.2, %v1367_v24  ;;  %v1718_v31 = vsel %vm1462_vm1, %v1052_v17, %v1590_v27  ;;  %v1382_v34 = vadd.f32 %v2985_v9, %v2444_v26  ;;  %v1376_v36 = vpop.f32.mrb[59].mxu1 }
 0x15f   : > { %v1782_v32 = vsel %vm1526_vm2, %v1372_v18, %v1654_v28  ;;  %1846 = vst [vmem:[%s2812_s8 + $0x1c8] sm:$0xff] %v1718_v31  ;;  %v1057_v39 = vadd.f32 %v2985_v9, %v1056_v35  ;;  %v1377_v40 = vadd.f32 %v2985_v9, %v1376_v36  ;;  %v2351_v41 = vpop.f32.mrb[60].mxu0  ;;  %vm1464_vm5 = vcmp.ge.f32.partialorder %v1062_v33, 0.0 }
 0x160   : > { %1910 = vst [vmem:[%s2812_s8 + $0x3c8] sm:$0xff] %v1782_v32  ;;  %v1717_v37 = vsel %vm1461_vm3, %v1047_v23, %v1589_v29  ;;  %v1781_v38 = vsel %vm1525_vm4, %v1367_v24, %v1653_v30  ;;  %v2447_v42 = vpop.f32.mrb[60].mxu1  ;;  %v1592_v43 = vmul.f32 0.2, %v1062_v33  ;;  %vm1528_vm6 = vcmp.ge.f32.partialorder %v1382_v34, 0.0  ;;  %v1066_v51 = vpop.f32.mrb[61].mxu0 }
 0x161   : > { %1845 = vst [vmem:[%s2812_s8 + $0x1c0] sm:$0xff] %v1717_v37  ;;  %1909 = vst [vmem:[%s2812_s8 + $0x3c0] sm:$0xff] %v1781_v38  ;;  %v1656_v44 = vmul.f32 0.2, %v1382_v34  ;;  %vm1463_vm7 = vcmp.ge.f32.partialorder %v1057_v39, 0.0  ;;  %vm1527_vm8 = vcmp.ge.f32.partialorder %v1377_v40, 0.0  ;;  %v1072_v49 = vadd.f32 %v2985_v9, %v2351_v41 }
 0x162   : > { %v1591_v45 = vmul.f32 0.2, %v1057_v39  ;;  %v1655_v46 = vmul.f32 0.2, %v1377_v40  ;;  %v1720_v47 = vsel %vm1464_vm5, %v1062_v33, %v1592_v43  ;;  %v1392_v50 = vadd.f32 %v2985_v9, %v2447_v42  ;;  %v1386_v52 = vpop.f32.mrb[61].mxu1 }
 0x163   : > { %v1784_v48 = vsel %vm1528_vm6, %v1382_v34, %v1656_v44  ;;  %1848 = vst [vmem:[%s2812_s8 + $0x1d8] sm:$0xff] %v1720_v47  ;;  %v1067_v55 = vadd.f32 %v2985_v9, %v1066_v51  ;;  %v1387_v56 = vadd.f32 %v2985_v9, %v1386_v52  ;;  %v2354_v57 = vpop.f32.mrb[62].mxu0  ;;  %vm1466_vm9 = vcmp.ge.f32.partialorder %v1072_v49, 0.0 }
 0x164   : > { %1912 = vst [vmem:[%s2812_s8 + $0x3d8] sm:$0xff] %v1784_v48  ;;  %v1719_v53 = vsel %vm1463_vm7, %v1057_v39, %v1591_v45  ;;  %v1783_v54 = vsel %vm1527_vm8, %v1377_v40, %v1655_v46  ;;  %v2450_v58 = vpop.f32.mrb[62].mxu1  ;;  %v1594_v59 = vmul.f32 0.2, %v1072_v49  ;;  %vm1530_vm10 = vcmp.ge.f32.partialorder %v1392_v50, 0.0  ;;  %v1076_v3 = vpop.f32.mrb[63].mxu0 }
 0x165   : > { %1847 = vst [vmem:[%s2812_s8 + $0x1d0] sm:$0xff] %v1719_v53  ;;  %1911 = vst [vmem:[%s2812_s8 + $0x3d0] sm:$0xff] %v1783_v54  ;;  %v1658_v60 = vmul.f32 0.2, %v1392_v50  ;;  %vm1465_vm11 = vcmp.ge.f32.partialorder %v1067_v55, 0.0  ;;  %vm1529_vm12 = vcmp.ge.f32.partialorder %v1387_v56, 0.0  ;;  %v1082_v1 = vadd.f32 %v2985_v9, %v2354_v57 }
 0x166   : > { %v1593_v61 = vmul.f32 0.2, %v1067_v55  ;;  %v1657_v62 = vmul.f32 0.2, %v1387_v56  ;;  %v1722_v63 = vsel %vm1466_vm9, %v1072_v49, %v1594_v59  ;;  %v1402_v2 = vadd.f32 %v2985_v9, %v2450_v58  ;;  %v1396_v4 = vpop.f32.mrb[63].mxu1 }
 0x167   : > { %v1786_v0 = vsel %vm1530_vm10, %v1392_v50, %v1658_v60  ;;  %1850 = vst [vmem:[%s2812_s8 + $0x1e8] sm:$0xff] %v1722_v63  ;;  %v1077_v7 = vadd.f32 %v2985_v9, %v1076_v3  ;;  %v1397_v8 = vadd.f32 %v2985_v9, %v1396_v4  ;;  %vm1468_vm13 = vcmp.ge.f32.partialorder %v1082_v1, 0.0 }
 0x168   : > { %1914 = vst [vmem:[%s2812_s8 + $0x3e8] sm:$0xff] %v1786_v0  ;;  %v1721_v5 = vsel %vm1465_vm11, %v1067_v55, %v1593_v61  ;;  %v1785_v6 = vsel %vm1529_vm12, %v1387_v56, %v1657_v62  ;;  %v1596_v10 = vmul.f32 0.2, %v1082_v1  ;;  %vm1532_vm14 = vcmp.ge.f32.partialorder %v1402_v2, 0.0 }
 0x169   : > { %1849 = vst [vmem:[%s2812_s8 + $0x1e0] sm:$0xff] %v1721_v5  ;;  %1913 = vst [vmem:[%s2812_s8 + $0x3e0] sm:$0xff] %v1785_v6  ;;  %v1660_v11 = vmul.f32 0.2, %v1402_v2  ;;  %vm1467_vm15 = vcmp.ge.f32.partialorder %v1077_v7, 0.0  ;;  %vm1531_vm0 = vcmp.ge.f32.partialorder %v1397_v8, 0.0 }
 0x16a   : > { %v1595_v12 = vmul.f32 0.2, %v1077_v7  ;;  %v1659_v13 = vmul.f32 0.2, %v1397_v8  ;;  %v1724_v14 = vsel %vm1468_vm13, %v1082_v1, %v1596_v10 }
 0x16b   : > { %v1788_v15 = vsel %vm1532_vm14, %v1402_v2, %v1660_v11  ;;  %1852 = vst [vmem:[%s2812_s8 + $0x1f8] sm:$0xff] %v1724_v14 }
 0x16c   : > { %1916 = vst [vmem:[%s2812_s8 + $0x3f8] sm:$0xff] %v1788_v15  ;;  %v1723_v16 = vsel %vm1467_vm15, %v1077_v7, %v1595_v12  ;;  %v1787_v17 = vsel %vm1531_vm0, %v1397_v8, %v1659_v13 }
 0x16d   : > { %1851 = vst [vmem:[%s2812_s8 + $0x1f0] sm:$0xff] %v1723_v16  ;;  %1915 = vst [vmem:[%s2812_s8 + $0x3f0] sm:$0xff] %v1787_v17 }
 0x16e PF: > { %s13_s12 = sadd.s32 1, %s2484_s12  }
 0x16f   : > { %p10_p4 = scmp.ge.s32.totalorder %s13_s12, 4  }
 0x171   :  { %12 = sbr.rel (!%p10_p4) target bundleno = 1 (0x1), region = 62 }

// kernel: discriminator_forward.5
= control target key start
LH: loop header
LB: loop body
LE: loop exit
PB: predicated region body
PF: predicated region fallthrough
CT: control target
= control target key end

     0   :  { %s3453_s1 = inlined_call_operand.vmem [shape: f32[128,128], index: 1, kind: input, shape index: {}]   ;;  %s3454_s0 = inlined_call_operand.vmem [shape: f32[512,128], index: 0, kind: input, shape index: {}]   ;;  %s3455_s2 = inlined_call_operand.vmem [shape: f32[1,128], index: 2, kind: input, shape index: {}]   ;;  %s3456_s3 = inlined_call_operand.vmem [shape: f32[1,128], index: 3, kind: input, shape index: {}]   ;;  %s3457_s4 = inlined_call_operand.vmem [shape: f32[512,128], index: 4, kind: output, shape index: {}]  }
   0x1   :  { %v81_v0 = vld [vmem:[%s3453_s1] sm:$0xff]  ;;  %v82_v1 = vld [vmem:[%s3453_s1 + $0x8] sm:$0xff]  ;;  %v83_v2 = vld [vmem:[%s3453_s1 + $0x10] sm:$0xff] }
   0x2   :  { %v1364_v3 = vpack.c.bf16 %v82_v1, %v81_v0  ;;  %v84_v4 = vld [vmem:[%s3453_s1 + $0x18] sm:$0xff]  ;;  %v85_v6 = vld [vmem:[%s3453_s1 + $0x20] sm:$0xff]  ;;  %v86_v7 = vld [vmem:[%s3453_s1 + $0x28] sm:$0xff] }
   0x3   :  { %v1368_v5 = vpack.c.bf16 %v84_v4, %v83_v2  ;;  %v1372_v8 = vpack.c.bf16 %v86_v7, %v85_v6  ;;  %v17_v9 = vld [vmem:[%s3454_s0] sm:$0xff]  ;;  %v87_v10 = vld [vmem:[%s3453_s1 + $0x30] sm:$0xff]  ;;  %v88_v11 = vld [vmem:[%s3453_s1 + $0x38] sm:$0xff] }
   0x4   :  { %1365 = vmatprep.subr.bf16.mxu0 %v1364_v3  ;;  %1396 = vmatprep.subr.bf16.mxu1 %v1364_v3  ;;  %v1376_v12 = vpack.c.bf16 %v88_v11, %v87_v10  ;;  %v89_v13 = vld [vmem:[%s3453_s1 + $0x40] sm:$0xff]  ;;  %v90_v14 = vld [vmem:[%s3453_s1 + $0x48] sm:$0xff]  ;;  %v91_v16 = vld [vmem:[%s3453_s1 + $0x50] sm:$0xff] }
   0x5   :  { %1367 = vmatpush3.bf16.msra.mxu0 %v1364_v3  ;;  %1404 = vmatpush3.bf16.msra.mxu1 %v1364_v3  ;;  %v1380_v15 = vpack.c.bf16 %v90_v14, %v89_v13  ;;  %v92_v17 = vld [vmem:[%s3453_s1 + $0x58] sm:$0xff]  ;;  %v49_v18 = vld [vmem:[%s3454_s0 + $0x100] sm:$0xff]  ;;  %v94_v21 = vld [vmem:[%s3453_s1 + $0x68] sm:$0xff] }
   0x6   :  { %1369 = vmatprep.subr.bf16.mxu0 %v1368_v5  ;;  %1397 = vmatprep.subr.bf16.mxu1 %v1368_v5  ;;  %v1384_v19 = vpack.c.bf16 %v92_v17, %v91_v16  ;;  %v93_v20 = vld [vmem:[%s3453_s1 + $0x60] sm:$0xff]  ;;  %v95_v23 = vld [vmem:[%s3453_s1 + $0x70] sm:$0xff]  ;;  %v96_v24 = vld [vmem:[%s3453_s1 + $0x78] sm:$0xff] }
   0x7   :  { %1268 = vmatprep.mubr.f32.mxu0 %v17_v9  ;;  %1316 = vmatprep.mubr.f32.mxu1 %v49_v18  ;;  %v1388_v22 = vpack.c.bf16 %v94_v21, %v93_v20  ;;  %v1392_v25 = vpack.c.bf16 %v96_v24, %v95_v23  ;;  %v18_v26 = vld [vmem:[%s3454_s0 + $0x8] sm:$0xff]  ;;  %v19_v28 = vld [vmem:[%s3454_s0 + $0x10] sm:$0xff]  ;;  %v20_v30 = vld [vmem:[%s3454_s0 + $0x18] sm:$0xff] }
   0x8   :  { %v50_v27 = vld [vmem:[%s3454_s0 + $0x108] sm:$0xff]  ;;  %v51_v29 = vld [vmem:[%s3454_s0 + $0x110] sm:$0xff]  ;;  %v52_v31 = vld [vmem:[%s3454_s0 + $0x118] sm:$0xff] }
   0x9   :  { %1371 = vmatpush3.bf16.msra.mxu0 %v1368_v5  ;;  %1405 = vmatpush3.bf16.msra.mxu1 %v1368_v5  ;;  %v21_v32 = vld [vmem:[%s3454_s0 + $0x20] sm:$0xff]  ;;  %v22_v34 = vld [vmem:[%s3454_s0 + $0x28] sm:$0xff]  ;;  %v23_v36 = vld [vmem:[%s3454_s0 + $0x30] sm:$0xff] }
   0xa   :  { %1373 = vmatprep.subr.bf16.mxu0 %v1372_v8  ;;  %1398 = vmatprep.subr.bf16.mxu1 %v1372_v8  ;;  %v53_v33 = vld [vmem:[%s3454_s0 + $0x120] sm:$0xff]  ;;  %v54_v35 = vld [vmem:[%s3454_s0 + $0x128] sm:$0xff]  ;;  %v55_v37 = vld [vmem:[%s3454_s0 + $0x130] sm:$0xff] }
   0xb   :  { %v24_v38 = vld [vmem:[%s3454_s0 + $0x38] sm:$0xff]  ;;  %v25_v40 = vld [vmem:[%s3454_s0 + $0x40] sm:$0xff]  ;;  %v26_v42 = vld [vmem:[%s3454_s0 + $0x48] sm:$0xff] }
   0xc   :  { %v56_v39 = vld [vmem:[%s3454_s0 + $0x138] sm:$0xff]  ;;  %v57_v41 = vld [vmem:[%s3454_s0 + $0x140] sm:$0xff]  ;;  %v58_v43 = vld [vmem:[%s3454_s0 + $0x148] sm:$0xff] }
   0xd   :  { %1375 = vmatpush3.bf16.msra.mxu0 %v1372_v8  ;;  %1406 = vmatpush3.bf16.msra.mxu1 %v1372_v8  ;;  %v27_v44 = vld [vmem:[%s3454_s0 + $0x50] sm:$0xff]  ;;  %v28_v46 = vld [vmem:[%s3454_s0 + $0x58] sm:$0xff]  ;;  %v29_v48 = vld [vmem:[%s3454_s0 + $0x60] sm:$0xff] }
   0xe   :  { %1377 = vmatprep.subr.bf16.mxu0 %v1376_v12  ;;  %1399 = vmatprep.subr.bf16.mxu1 %v1376_v12  ;;  %v59_v45 = vld [vmem:[%s3454_s0 + $0x150] sm:$0xff]  ;;  %v60_v47 = vld [vmem:[%s3454_s0 + $0x158] sm:$0xff]  ;;  %v61_v49 = vld [vmem:[%s3454_s0 + $0x160] sm:$0xff] }
   0xf   :  { %v30_v50 = vld [vmem:[%s3454_s0 + $0x68] sm:$0xff]  ;;  %v31_v52 = vld [vmem:[%s3454_s0 + $0x70] sm:$0xff]  ;;  %v32_v54 = vld [vmem:[%s3454_s0 + $0x78] sm:$0xff] }
  0x10   :  { %v62_v51 = vld [vmem:[%s3454_s0 + $0x168] sm:$0xff]  ;;  %v63_v53 = vld [vmem:[%s3454_s0 + $0x170] sm:$0xff]  ;;  %v64_v55 = vld [vmem:[%s3454_s0 + $0x178] sm:$0xff] }
  0x11   :  { %1379 = vmatpush3.bf16.msra.mxu0 %v1376_v12  ;;  %1407 = vmatpush3.bf16.msra.mxu1 %v1376_v12  ;;  %v33_v56 = vld [vmem:[%s3454_s0 + $0x80] sm:$0xff]  ;;  %v34_v58 = vld [vmem:[%s3454_s0 + $0x88] sm:$0xff]  ;;  %v35_v60 = vld [vmem:[%s3454_s0 + $0x90] sm:$0xff] }
  0x12   :  { %1381 = vmatprep.subr.bf16.mxu0 %v1380_v15  ;;  %1400 = vmatprep.subr.bf16.mxu1 %v1380_v15  ;;  %v65_v57 = vld [vmem:[%s3454_s0 + $0x180] sm:$0xff]  ;;  %v66_v59 = vld [vmem:[%s3454_s0 + $0x188] sm:$0xff]  ;;  %v67_v61 = vld [vmem:[%s3454_s0 + $0x190] sm:$0xff] }
  0x13   :  { %v36_v62 = vld [vmem:[%s3454_s0 + $0x98] sm:$0xff]  ;;  %v37_v0 = vld [vmem:[%s3454_s0 + $0xa0] sm:$0xff]  ;;  %v38_v2 = vld [vmem:[%s3454_s0 + $0xa8] sm:$0xff] }
  0x14   :  { %v68_v63 = vld [vmem:[%s3454_s0 + $0x198] sm:$0xff]  ;;  %v69_v1 = vld [vmem:[%s3454_s0 + $0x1a0] sm:$0xff]  ;;  %v70_v3 = vld [vmem:[%s3454_s0 + $0x1a8] sm:$0xff] }
  0x15   :  { %1383 = vmatpush3.bf16.msra.mxu0 %v1380_v15  ;;  %1408 = vmatpush3.bf16.msra.mxu1 %v1380_v15  ;;  %v39_v4 = vld [vmem:[%s3454_s0 + $0xb0] sm:$0xff]  ;;  %v40_v6 = vld [vmem:[%s3454_s0 + $0xb8] sm:$0xff]  ;;  %v41_v8 = vld [vmem:[%s3454_s0 + $0xc0] sm:$0xff] }
  0x16   :  { %1385 = vmatprep.subr.bf16.mxu0 %v1384_v19  ;;  %1401 = vmatprep.subr.bf16.mxu1 %v1384_v19  ;;  %v71_v5 = vld [vmem:[%s3454_s0 + $0x1b0] sm:$0xff]  ;;  %v72_v7 = vld [vmem:[%s3454_s0 + $0x1b8] sm:$0xff]  ;;  %v73_v9 = vld [vmem:[%s3454_s0 + $0x1c0] sm:$0xff] }
  0x17   :  { %v42_v10 = vld [vmem:[%s3454_s0 + $0xc8] sm:$0xff]  ;;  %v43_v12 = vld [vmem:[%s3454_s0 + $0xd0] sm:$0xff]  ;;  %v44_v14 = vld [vmem:[%s3454_s0 + $0xd8] sm:$0xff] }
  0x18   :  { %v74_v11 = vld [vmem:[%s3454_s0 + $0x1c8] sm:$0xff]  ;;  %v75_v13 = vld [vmem:[%s3454_s0 + $0x1d0] sm:$0xff]  ;;  %v76_v15 = vld [vmem:[%s3454_s0 + $0x1d8] sm:$0xff] }
  0x19   :  { %1387 = vmatpush3.bf16.msra.mxu0 %v1384_v19  ;;  %1409 = vmatpush3.bf16.msra.mxu1 %v1384_v19  ;;  %v45_v16 = vld [vmem:[%s3454_s0 + $0xe0] sm:$0xff]  ;;  %v46_v18 = vld [vmem:[%s3454_s0 + $0xe8] sm:$0xff]  ;;  %v47_v20 = vld [vmem:[%s3454_s0 + $0xf0] sm:$0xff] }
  0x1a   :  { %1389 = vmatprep.subr.bf16.mxu0 %v1388_v22  ;;  %1402 = vmatprep.subr.bf16.mxu1 %v1388_v22  ;;  %v77_v17 = vld [vmem:[%s3454_s0 + $0x1e0] sm:$0xff]  ;;  %v78_v19 = vld [vmem:[%s3454_s0 + $0x1e8] sm:$0xff]  ;;  %v79_v21 = vld [vmem:[%s3454_s0 + $0x1f0] sm:$0xff] }
  0x1b   :  { %v80_v23 = vld [vmem:[%s3454_s0 + $0x1f8] sm:$0xff] }
  0x1d   :  { %1391 = vmatpush3.bf16.msra.mxu0 %v1388_v22  ;;  %1410 = vmatpush3.bf16.msra.mxu1 %v1388_v22  ;;  %v48_v22 = vld [vmem:[%s3454_s0 + $0xf8] sm:$0xff] }
  0x1e   :  { %1393 = vmatprep.subr.bf16.mxu0 %v1392_v25  ;;  %1403 = vmatprep.subr.bf16.mxu1 %v1392_v25 }
  0x21   :  { %1395 = vmatpush3.bf16.msra.mxu0 %v1392_v25  ;;  %1411 = vmatpush3.bf16.msra.mxu1 %v1392_v25 }
  0x24   :  { %1269 = vmatmul.mubr.f32.vlgmr.msra.gmra.mrb[0].mxu0 %v18_v26  ;;  %1317 = vmatmul.mubr.f32.vlgmr.msra.gmra.mrb[0].mxu1 %v50_v27 }
  0x25   :  { %1271 = vmatprep.mubr.f32.mxu0 %v19_v28  ;;  %1319 = vmatprep.mubr.f32.mxu1 %v51_v29 }
  0x28   :  { %1272 = vmatmul.mubr.f32.gmra.mrb[2].mxu0 %v20_v30  ;;  %1320 = vmatmul.mubr.f32.gmra.mrb[2].mxu1 %v52_v31 }
  0x29   :  { %1274 = vmatprep.mubr.f32.mxu0 %v21_v32  ;;  %1322 = vmatprep.mubr.f32.mxu1 %v53_v33 }
  0x2c   :  { %1275 = vmatmul.mubr.f32.gmra.mrb[4].mxu0 %v22_v34  ;;  %1323 = vmatmul.mubr.f32.gmra.mrb[4].mxu1 %v54_v35 }
  0x2d   :  { %1277 = vmatprep.mubr.f32.mxu0 %v23_v36  ;;  %1325 = vmatprep.mubr.f32.mxu1 %v55_v37 }
  0x30   :  { %1278 = vmatmul.mubr.f32.gmra.mrb[6].mxu0 %v24_v38  ;;  %1326 = vmatmul.mubr.f32.gmra.mrb[6].mxu1 %v56_v39 }
  0x31   :  { %1280 = vmatprep.mubr.f32.mxu0 %v25_v40  ;;  %1328 = vmatprep.mubr.f32.mxu1 %v57_v41 }
  0x34   :  { %1281 = vmatmul.mubr.f32.gmra.mrb[8].mxu0 %v26_v42  ;;  %1329 = vmatmul.mubr.f32.gmra.mrb[8].mxu1 %v58_v43 }
  0x35   :  { %1283 = vmatprep.mubr.f32.mxu0 %v27_v44  ;;  %1331 = vmatprep.mubr.f32.mxu1 %v59_v45 }
  0x38   :  { %1284 = vmatmul.mubr.f32.gmra.mrb[10].mxu0 %v28_v46  ;;  %1332 = vmatmul.mubr.f32.gmra.mrb[10].mxu1 %v60_v47 }
  0x39   :  { %1286 = vmatprep.mubr.f32.mxu0 %v29_v48  ;;  %1334 = vmatprep.mubr.f32.mxu1 %v61_v49 }
  0x3c   :  { %1287 = vmatmul.mubr.f32.gmra.mrb[12].mxu0 %v30_v50  ;;  %1335 = vmatmul.mubr.f32.gmra.mrb[12].mxu1 %v62_v51 }
  0x3d   :  { %1289 = vmatprep.mubr.f32.mxu0 %v31_v52  ;;  %1337 = vmatprep.mubr.f32.mxu1 %v63_v53 }
  0x40   :  { %1290 = vmatmul.mubr.f32.gmra.mrb[14].mxu0 %v32_v54  ;;  %1338 = vmatmul.mubr.f32.gmra.mrb[14].mxu1 %v64_v55 }
  0x41   :  { %1292 = vmatprep.mubr.f32.mxu0 %v33_v56  ;;  %1340 = vmatprep.mubr.f32.mxu1 %v65_v57 }
  0x44   :  { %1293 = vmatmul.mubr.f32.gmra.mrb[16].mxu0 %v34_v58  ;;  %1341 = vmatmul.mubr.f32.gmra.mrb[16].mxu1 %v66_v59 }
  0x45   :  { %1295 = vmatprep.mubr.f32.mxu0 %v35_v60  ;;  %1343 = vmatprep.mubr.f32.mxu1 %v67_v61 }
  0x48   :  { %1296 = vmatmul.mubr.f32.gmra.mrb[18].mxu0 %v36_v62  ;;  %1344 = vmatmul.mubr.f32.gmra.mrb[18].mxu1 %v68_v63 }
  0x49   :  { %1298 = vmatprep.mubr.f32.mxu0 %v37_v0  ;;  %1346 = vmatprep.mubr.f32.mxu1 %v69_v1 }
  0x4c   :  { %1299 = vmatmul.mubr.f32.gmra.mrb[20].mxu0 %v38_v2  ;;  %1347 = vmatmul.mubr.f32.gmra.mrb[20].mxu1 %v70_v3 }
  0x4d   :  { %1301 = vmatprep.mubr.f32.mxu0 %v39_v4  ;;  %1349 = vmatprep.mubr.f32.mxu1 %v71_v5 }
  0x50   :  { %1302 = vmatmul.mubr.f32.gmra.mrb[22].mxu0 %v40_v6  ;;  %1350 = vmatmul.mubr.f32.gmra.mrb[22].mxu1 %v72_v7 }
  0x51   :  { %1304 = vmatprep.mubr.f32.mxu0 %v41_v8  ;;  %1352 = vmatprep.mubr.f32.mxu1 %v73_v9 }
  0x54   :  { %1305 = vmatmul.mubr.f32.gmra.mrb[24].mxu0 %v42_v10  ;;  %1353 = vmatmul.mubr.f32.gmra.mrb[24].mxu1 %v74_v11 }
  0x55   :  { %1307 = vmatprep.mubr.f32.mxu0 %v43_v12  ;;  %1355 = vmatprep.mubr.f32.mxu1 %v75_v13 }
  0x58   :  { %1308 = vmatmul.mubr.f32.gmra.mrb[26].mxu0 %v44_v14  ;;  %1356 = vmatmul.mubr.f32.gmra.mrb[26].mxu1 %v76_v15 }
  0x59   :  { %1310 = vmatprep.mubr.f32.mxu0 %v45_v16  ;;  %1358 = vmatprep.mubr.f32.mxu1 %v77_v17 }
  0x5c   :  { %1311 = vmatmul.mubr.f32.gmra.mrb[28].mxu0 %v46_v18  ;;  %1359 = vmatmul.mubr.f32.gmra.mrb[28].mxu1 %v78_v19 }
  0x5d   :  { %1313 = vmatprep.mubr.f32.mxu0 %v47_v20  ;;  %1361 = vmatprep.mubr.f32.mxu1 %v79_v21 }
  0x60   :  { %1314 = vmatmul.mubr.f32.gmra.mrb[30].mxu0 %v48_v22  ;;  %1362 = vmatmul.mubr.f32.gmra.mrb[30].mxu1 %v80_v23 }
  0xf7   :  { %v1679_v24 = vpop.f32.mrb[0].mxu0  ;;  %v1681_v25 = vpop.f32.mrb[0].mxu1 }
  0xf8   :  { %v1683_v26 = vpop.f32.mrb[1].mxu0  ;;  %v1685_v27 = vpop.f32.mrb[1].mxu1 }
  0xf9   :  { %v482_v28 = vadd.f32 %v1679_v24, %v1683_v26 }
  0xfb   :  { %v1689_v29 = vpop.f32.mrb[2].mxu0  ;;  %v1691_v30 = vpop.f32.mrb[2].mxu1 }
  0xfc   :  { %v1693_v31 = vpop.f32.mrb[3].mxu0  ;;  %v1695_v32 = vpop.f32.mrb[3].mxu1 }
  0xfd   :  { %v483_v33 = vadd.f32 %v482_v28, %v1693_v31 }
  0xff   :  { %v1698_v34 = vpop.f32.mrb[4].mxu0  ;;  %v484_v35 = vadd.f32 %v1689_v29, %v483_v33  ;;  %v1701_v36 = vpop.f32.mrb[4].mxu1 }
 0x100   :  { %v1703_v37 = vpop.f32.mrb[5].mxu0  ;;  %v1705_v38 = vpop.f32.mrb[5].mxu1 }
 0x101   :  { %v485_v39 = vadd.f32 %v484_v35, %v1703_v37 }
 0x103   :  { %v1708_v40 = vpop.f32.mrb[6].mxu0  ;;  %v486_v41 = vadd.f32 %v1698_v34, %v485_v39  ;;  %v1711_v42 = vpop.f32.mrb[6].mxu1 }
 0x104   :  { %v1713_v43 = vpop.f32.mrb[7].mxu0  ;;  %v1715_v44 = vpop.f32.mrb[7].mxu1 }
 0x105   :  { %v487_v45 = vadd.f32 %v486_v41, %v1713_v43 }
 0x107   :  { %v1718_v46 = vpop.f32.mrb[8].mxu0  ;;  %v488_v47 = vadd.f32 %v1708_v40, %v487_v45  ;;  %v1721_v48 = vpop.f32.mrb[8].mxu1 }
 0x108   :  { %v1723_v49 = vpop.f32.mrb[9].mxu0  ;;  %v1725_v50 = vpop.f32.mrb[9].mxu1 }
 0x109   :  { %v489_v51 = vadd.f32 %v488_v47, %v1723_v49 }
 0x10b   :  { %v1728_v52 = vpop.f32.mrb[10].mxu0  ;;  %v490_v53 = vadd.f32 %v1718_v46, %v489_v51  ;;  %v1731_v54 = vpop.f32.mrb[10].mxu1 }
 0x10c   :  { %v1733_v55 = vpop.f32.mrb[11].mxu0  ;;  %v1735_v56 = vpop.f32.mrb[11].mxu1 }
 0x10d   :  { %v491_v57 = vadd.f32 %v490_v53, %v1733_v55 }
 0x10f   :  { %v1738_v58 = vpop.f32.mrb[12].mxu0  ;;  %v492_v59 = vadd.f32 %v1728_v52, %v491_v57  ;;  %v1741_v60 = vpop.f32.mrb[12].mxu1 }
 0x110   :  { %v1743_v61 = vpop.f32.mrb[13].mxu0  ;;  %v1745_v62 = vpop.f32.mrb[13].mxu1 }
 0x111   :  { %v493_v63 = vadd.f32 %v492_v59, %v1743_v61 }
 0x113   :  { %v1748_v0 = vpop.f32.mrb[14].mxu0  ;;  %v494_v1 = vadd.f32 %v1738_v58, %v493_v63  ;;  %v1751_v2 = vpop.f32.mrb[14].mxu1 }
 0x114   :  { %v1753_v3 = vpop.f32.mrb[15].mxu0  ;;  %v1755_v4 = vpop.f32.mrb[15].mxu1 }
 0x115   :  { %v495_v5 = vadd.f32 %v494_v1, %v1753_v3 }
 0x117   :  { %v1758_v6 = vpop.f32.mrb[16].mxu0  ;;  %v496_v7 = vadd.f32 %v1748_v0, %v495_v5  ;;  %v1761_v8 = vpop.f32.mrb[16].mxu1 }
 0x118   :  { %v1763_v9 = vpop.f32.mrb[17].mxu0  ;;  %v1765_v10 = vpop.f32.mrb[17].mxu1 }
 0x119   :  { %v497_v11 = vadd.f32 %v496_v7, %v1763_v9 }
 0x11b   :  { %v1768_v12 = vpop.f32.mrb[18].mxu0  ;;  %v498_v13 = vadd.f32 %v1758_v6, %v497_v11  ;;  %v1771_v14 = vpop.f32.mrb[18].mxu1 }
 0x11c   :  { %3522 = vst [vmem:[#allocation2_spill] sm:$0xff] %v1768_v12  ;;  %v1773_v15 = vpop.f32.mrb[19].mxu0  ;;  %v1775_v16 = vpop.f32.mrb[19].mxu1 }
 0x11d   :  { %v499_v17 = vadd.f32 %v498_v13, %v1773_v15 }
 0x11f   :  { %v1778_v18 = vpop.f32.mrb[20].mxu0  ;;  %v500_v19 = vadd.f32 %v1768_v12, %v499_v17  ;;  %v1781_v20 = vpop.f32.mrb[20].mxu1 }
 0x120   :  { %3523 = vst [vmem:[#allocation3_spill] sm:$0xff] %v1778_v18  ;;  %3524 = vst [vmem:[#allocation4_spill] sm:$0xff] %v1781_v20  ;;  %v1783_v21 = vpop.f32.mrb[21].mxu0  ;;  %v1785_v22 = vpop.f32.mrb[21].mxu1 }
 0x121   :  { %3525 = vst [vmem:[#allocation5_spill] sm:$0xff] %v1783_v21  ;;  %v501_v23 = vadd.f32 %v500_v19, %v1783_v21 }
 0x123   :  { %v1788_v28 = vpop.f32.mrb[22].mxu0  ;;  %v502_v33 = vadd.f32 %v1778_v18, %v501_v23  ;;  %v1791_v35 = vpop.f32.mrb[22].mxu1 }
 0x124   :  { %3526 = vst [vmem:[#allocation6_spill] sm:$0xff] %v1788_v28  ;;  %3527 = vst [vmem:[#allocation7_spill] sm:$0xff] %v1791_v35  ;;  %v1793_v39 = vpop.f32.mrb[23].mxu0  ;;  %v1795_v41 = vpop.f32.mrb[23].mxu1 }
 0x125   :  { %3528 = vst [vmem:[#allocation8_spill] sm:$0xff] %v1793_v39  ;;  %3529 = vst [vmem:[#allocation9_spill] sm:$0xff] %v1795_v41  ;;  %v503_v45 = vadd.f32 %v502_v33, %v1793_v39 }
 0x127   :  { %v1798_v47 = vpop.f32.mrb[24].mxu0  ;;  %v504_v51 = vadd.f32 %v1788_v28, %v503_v45  ;;  %v1801_v53 = vpop.f32.mrb[24].mxu1 }
 0x128   :  { %3530 = vst [vmem:[#allocation10_spill] sm:$0xff] %v1798_v47  ;;  %v1803_v57 = vpop.f32.mrb[25].mxu0  ;;  %v1805_v59 = vpop.f32.mrb[25].mxu1 }
 0x129   :  { %3531 = vst [vmem:[#allocation11_spill] sm:$0xff] %v1803_v57  ;;  %3532 = vst [vmem:[#allocation12_spill] sm:$0xff] %v1805_v59  ;;  %v505_v63 = vadd.f32 %v504_v51, %v1803_v57 }
 0x12b   :  { %v1808_v1 = vpop.f32.mrb[26].mxu0  ;;  %v506_v5 = vadd.f32 %v1798_v47, %v505_v63  ;;  %v1811_v7 = vpop.f32.mrb[26].mxu1 }
 0x12c   :  { %3533 = vst [vmem:[#allocation13_spill] sm:$0xff] %v1808_v1  ;;  %v1813_v11 = vpop.f32.mrb[27].mxu0  ;;  %v1815_v13 = vpop.f32.mrb[27].mxu1 }
 0x12d   :  { %3534 = vst [vmem:[#allocation14_spill] sm:$0xff] %v1813_v11  ;;  %v507_v17 = vadd.f32 %v506_v5, %v1813_v11 }
 0x12f   :  { %v1818_v19 = vpop.f32.mrb[28].mxu0  ;;  %v508_v23 = vadd.f32 %v1808_v1, %v507_v17  ;;  %v1821_v33 = vpop.f32.mrb[28].mxu1 }
 0x130   :  { %3535 = vst [vmem:[#allocation15_spill] sm:$0xff] %v1818_v19  ;;  %v1823_v45 = vpop.f32.mrb[29].mxu0  ;;  %v1825_v51 = vpop.f32.mrb[29].mxu1 }
 0x131   :  { %3536 = vst [vmem:[#allocation16_spill] sm:$0xff] %v1823_v45  ;;  %v509_v63 = vadd.f32 %v508_v23, %v1823_v45 }
 0x133   :  { %v1828_v47 = vpop.f32.mrb[30].mxu0  ;;  %v510_v57 = vadd.f32 %v1818_v19, %v509_v63  ;;  %v1831_v28 = vpop.f32.mrb[30].mxu1 }
 0x134   :  { %v1833_v39 = vpop.f32.mrb[31].mxu0  ;;  %v1835_v5 = vpop.f32.mrb[31].mxu1 }
 0x135   :  { %v511_v17 = vadd.f32 %v510_v57, %v1833_v39 }
 0x137   :  { %v512_v1 = vadd.f32 %v1828_v47, %v511_v17 }
 0x139   :  { %v513_v11 = vadd.f32 %v512_v1, %v1685_v27 }
 0x13b   :  { %v514_v18 = vadd.f32 %v1681_v25, %v513_v11 }
 0x13d   :  { %v515_v23 = vadd.f32 %v514_v18, %v1695_v32 }
 0x13f   :  { %v516_v45 = vadd.f32 %v1691_v30, %v515_v23 }
 0x141   :  { %v517_v63 = vadd.f32 %v516_v45, %v1705_v38 }
 0x143   :  { %v518_v19 = vadd.f32 %v1701_v36, %v517_v63 }
 0x145   :  { %v519_v21 = vadd.f32 %v518_v19, %v1715_v44 }
 0x147   :  { %v520_v12 = vadd.f32 %v1711_v42, %v519_v21 }
 0x149   :  { %v521_v57 = vadd.f32 %v520_v12, %v1725_v50 }
 0x14b   :  { %v522_v17 = vadd.f32 %v1721_v48, %v521_v57 }
 0x14d   :  { %v523_v1 = vadd.f32 %v522_v17, %v1735_v56 }
 0x14f   :  { %v524_v11 = vadd.f32 %v1731_v54, %v523_v1 }
 0x151   :  { %v525_v18 = vadd.f32 %v524_v11, %v1745_v62 }
 0x153   :  { %v526_v23 = vadd.f32 %v1741_v60, %v525_v18 }
 0x155   :  { %v527_v45 = vadd.f32 %v526_v23, %v1755_v4 }
 0x157   :  { %v528_v63 = vadd.f32 %v1751_v2, %v527_v45 }
 0x159   :  { %v529_v19 = vadd.f32 %v528_v63, %v1765_v10 }
 0x15b   :  { %v530_v21 = vadd.f32 %v1761_v8, %v529_v19 }
 0x15d   :  { %v531_v12 = vadd.f32 %v530_v21, %v1775_v16 }
 0x15f   :  { %v532_v57 = vadd.f32 %v1771_v14, %v531_v12 }
 0x161   :  { %v533_v17 = vadd.f32 %v532_v57, %v1785_v22 }
 0x163   :  { %v534_v1 = vadd.f32 %v1781_v20, %v533_v17 }
 0x165   :  { %v535_v11 = vadd.f32 %v534_v1, %v1795_v41 }
 0x167   :  { %v536_v18 = vadd.f32 %v1791_v35, %v535_v11 }
 0x169   :  { %v537_v23 = vadd.f32 %v536_v18, %v1805_v59 }
 0x16b   :  { %v538_v45 = vadd.f32 %v1801_v53, %v537_v23 }
 0x16d   :  { %v539_v63 = vadd.f32 %v538_v45, %v1815_v13 }
 0x16f   :  { %v540_v19 = vadd.f32 %v1811_v7, %v539_v63 }
 0x171   :  { %v541_v21 = vadd.f32 %v540_v19, %v1825_v51  ;;  %v3543_v19 = vld [vmem:[#allocation5_spill] sm:$0xff] }
 0x173   :  { %v542_v12 = vadd.f32 %v1821_v33, %v541_v21  ;;  %v3544_v21 = vld [vmem:[#allocation3_spill] sm:$0xff] }
 0x175   :  { %v543_v57 = vadd.f32 %v542_v12, %v1835_v5  ;;  %v3545_v12 = vld [vmem:[#allocation8_spill] sm:$0xff] }
 0x177   :  { %v544_v17 = vadd.f32 %v1831_v28, %v543_v57  ;;  %v3547_v57 = vld [vmem:[#allocation6_spill] sm:$0xff] }
 0x179   :  { %v545_v20 = vrot.slane %v544_v17, 4 }
 0x17b   :  { %v546_v1 = vadd.f32 %v545_v20, %v544_v17  ;;  %v3549_v17 = vld [vmem:[#allocation11_spill] sm:$0xff] }
 0x17d   :  { %v547_v41 = vrot.slane %v546_v1, 2 }
 0x17f   :  { %v548_v11 = vadd.f32 %v547_v41, %v546_v1  ;;  %v3542_v41 = vld [vmem:[#allocation2_spill] sm:$0xff] }
 0x181   :  { %v549_v35 = vrot.slane %v548_v11, 1 }
 0x183   :  { %v550_v18 = vadd.f32 %v549_v35, %v548_v11  ;;  %v3550_v11 = vld [vmem:[#allocation10_spill] sm:$0xff] }
 0x185   :  { %v1871_v59 = vmul.f32 0.001953125, %v550_v18 }
 0x187   :  { %v1875_v23 = vsub.f32 %v1683_v26, %v1871_v59  ;;  %v1879_v45 = vsub.f32 %v1679_v24, %v1871_v59  ;;  %v1883_v63 = vsub.f32 %v1693_v31, %v1871_v59  ;;  %v1887_v20 = vsub.f32 %v1689_v29, %v1871_v59 }
 0x188   :  { %v1891_v35 = vsub.f32 %v1703_v37, %v1871_v59  ;;  %v1895_v26 = vsub.f32 %v1698_v34, %v1871_v59  ;;  %v1899_v24 = vsub.f32 %v1713_v43, %v1871_v59  ;;  %v1903_v31 = vsub.f32 %v1708_v40, %v1871_v59 }
 0x189   :  { %3537 = vst [vmem:[#allocation17_spill] sm:$0xff] %v1875_v23  ;;  %3538 = vst [vmem:[#allocation18_spill] sm:$0xff] %v1879_v45  ;;  %v1907_v29 = vsub.f32 %v1723_v49, %v1871_v59  ;;  %v1911_v37 = vsub.f32 %v1718_v46, %v1871_v59  ;;  %v1915_v34 = vsub.f32 %v1733_v55, %v1871_v59 }
 0x18a   :  { %3539 = vst [vmem:[#allocation19_spill] sm:$0xff] %v1883_v63  ;;  %v1919_v43 = vsub.f32 %v1728_v52, %v1871_v59  ;;  %v1923_v40 = vsub.f32 %v1743_v61, %v1871_v59  ;;  %v1927_v49 = vsub.f32 %v1738_v58, %v1871_v59  ;;  %v1931_v46 = vsub.f32 %v1753_v3, %v1871_v59 }
 0x18b   :  { %v1935_v55 = vsub.f32 %v1748_v0, %v1871_v59  ;;  %v1939_v52 = vsub.f32 %v1763_v9, %v1871_v59  ;;  %v1943_v61 = vsub.f32 %v1758_v6, %v1871_v59  ;;  %v1947_v58 = vsub.f32 %v1773_v15, %v1871_v59 }
 0x18c   :  { %v1951_v3 = vsub.f32 %v3542_v41, %v1871_v59  ;;  %v1955_v0 = vsub.f32 %v3543_v19, %v1871_v59  ;;  %v1959_v9 = vsub.f32 %v3544_v21, %v1871_v59  ;;  %v1963_v6 = vsub.f32 %v3545_v12, %v1871_v59  ;;  %v3551_v41 = vld [vmem:[#allocation14_spill] sm:$0xff]  ;;  %v3552_v21 = vld [vmem:[#allocation13_spill] sm:$0xff] }
 0x18d   :  { %3540 = vst [vmem:[#allocation20_spill] sm:$0xff] %v1943_v61  ;;  %3541 = vst [vmem:[#allocation21_spill] sm:$0xff] %v1947_v58  ;;  %v1967_v15 = vsub.f32 %v3547_v57, %v1871_v59  ;;  %v1971_v1 = vsub.f32 %v3549_v17, %v1871_v59  ;;  %v1975_v18 = vsub.f32 %v3550_v11, %v1871_v59 }
 0x18e   :  { %3546 = vst [vmem:[#allocation2_spill] sm:$0xff] %v1963_v6  ;;  %v1979_v19 = vsub.f32 %v3551_v41, %v1871_v59  ;;  %v1983_v12 = vsub.f32 %v3552_v21, %v1871_v59  ;;  %v3553_v6 = vld [vmem:[#allocation16_spill] sm:$0xff]  ;;  %v1995_v11 = vsub.f32 %v1833_v39, %v1871_v59  ;;  %v1999_v41 = vsub.f32 %v1828_v47, %v1871_v59 }
 0x18f   :  { %3548 = vst [vmem:[#allocation5_spill] sm:$0xff] %v1967_v15  ;;  %v1987_v57 = vsub.f32 %v3553_v6, %v1871_v59  ;;  %v3554_v15 = vld [vmem:[#allocation15_spill] sm:$0xff]  ;;  %v2003_v21 = vsub.f32 %v1685_v27, %v1871_v59  ;;  %v2007_v6 = vsub.f32 %v1681_v25, %v1871_v59  ;;  %v2015_v39 = vsub.f32 %v1691_v30, %v1871_v59 }
 0x190   :  { %v1991_v17 = vsub.f32 %v3554_v15, %v1871_v59  ;;  %v2011_v15 = vsub.f32 %v1695_v32, %v1871_v59  ;;  %v2019_v47 = vsub.f32 %v1705_v38, %v1871_v59  ;;  %v2023_v27 = vsub.f32 %v1701_v36, %v1871_v59 }
 0x191   :  { %v2027_v25 = vsub.f32 %v1715_v44, %v1871_v59  ;;  %v2031_v32 = vsub.f32 %v1711_v42, %v1871_v59  ;;  %v2035_v30 = vsub.f32 %v1725_v50, %v1871_v59  ;;  %v2039_v38 = vsub.f32 %v1721_v48, %v1871_v59 }
 0x192   :  { %v2043_v36 = vsub.f32 %v1735_v56, %v1871_v59  ;;  %v2047_v44 = vsub.f32 %v1731_v54, %v1871_v59  ;;  %v2051_v42 = vsub.f32 %v1745_v62, %v1871_v59  ;;  %v2055_v50 = vsub.f32 %v1741_v60, %v1871_v59 }
 0x193   :  { %v2059_v48 = vsub.f32 %v1755_v4, %v1871_v59  ;;  %v2063_v56 = vsub.f32 %v1751_v2, %v1871_v59  ;;  %v2067_v54 = vsub.f32 %v1765_v10, %v1871_v59  ;;  %v2071_v62 = vsub.f32 %v1761_v8, %v1871_v59 }
 0x194   :  { %3555 = vst [vmem:[#allocation3_spill] sm:$0xff] %v2043_v36  ;;  %3556 = vst [vmem:[#allocation8_spill] sm:$0xff] %v2047_v44  ;;  %v2075_v60 = vsub.f32 %v1775_v16, %v1871_v59  ;;  %v2079_v4 = vsub.f32 %v1771_v14, %v1871_v59  ;;  %v2083_v2 = vsub.f32 %v1785_v22, %v1871_v59 }
 0x195   :  { %3557 = vst [vmem:[#allocation6_spill] sm:$0xff] %v2051_v42  ;;  %3558 = vst [vmem:[#allocation11_spill] sm:$0xff] %v2055_v50  ;;  %v2103_v22 = vsub.f32 %v1801_v53, %v1871_v59  ;;  %v2123_v53 = vsub.f32 %v1835_v5, %v1871_v59  ;;  %v620_v5 = vmul.f32 %v1891_v35, %v1891_v35 }
 0x196   :  { %3559 = vst [vmem:[#allocation10_spill] sm:$0xff] %v2063_v56  ;;  %3560 = vst [vmem:[#allocation14_spill] sm:$0xff] %v2067_v54  ;;  %v3563_v56 = vld [vmem:[#allocation4_spill] sm:$0xff]  ;;  %v3565_v54 = vld [vmem:[#allocation9_spill] sm:$0xff] }
 0x197   :  { %3561 = vst [vmem:[#allocation13_spill] sm:$0xff] %v2071_v62  ;;  %3562 = vst [vmem:[#allocation16_spill] sm:$0xff] %v2075_v60  ;;  %v2087_v10 = vsub.f32 %v3563_v56, %v1871_v59  ;;  %v2091_v8 = vsub.f32 %v3565_v54, %v1871_v59  ;;  %v3567_v62 = vld [vmem:[#allocation7_spill] sm:$0xff]  ;;  %v3569_v60 = vld [vmem:[#allocation12_spill] sm:$0xff]  ;;  %v2107_v56 = vsub.f32 %v1815_v13, %v1871_v59 }
 0x198   :  { %v2095_v16 = vsub.f32 %v3567_v62, %v1871_v59  ;;  %v2099_v14 = vsub.f32 %v3569_v60, %v1871_v59  ;;  %3571 = vst [vmem:[#allocation12_spill] sm:$0xff] %v2103_v22  ;;  %v2111_v54 = vsub.f32 %v1811_v7, %v1871_v59  ;;  %v2115_v62 = vsub.f32 %v1825_v51, %v1871_v59 }
 0x199   :  { %3564 = vst [vmem:[#allocation15_spill] sm:$0xff] %v2087_v10  ;;  %3566 = vst [vmem:[#allocation4_spill] sm:$0xff] %v2091_v8  ;;  %v2119_v60 = vsub.f32 %v1821_v33, %v1871_v59  ;;  %v2127_v13 = vsub.f32 %v1831_v28, %v1871_v59  ;;  %v616_v7 = vmul.f32 %v1875_v23, %v1875_v23 }
 0x19a   :  { %3568 = vst [vmem:[#allocation9_spill] sm:$0xff] %v2095_v16  ;;  %3570 = vst [vmem:[#allocation7_spill] sm:$0xff] %v2099_v14  ;;  %v618_v51 = vmul.f32 %v1883_v63, %v1883_v63  ;;  %v619_v33 = vmul.f32 %v1887_v20, %v1887_v20  ;;  %v621_v28 = vmul.f32 %v1895_v26, %v1895_v26 }
 0x19b   :  { %3572 = vst [vmem:[#allocation22_spill] sm:$0xff] %v2107_v56  ;;  %3573 = vst [vmem:[#allocation23_spill] sm:$0xff] %v2111_v54  ;;  %v617_v54 = vmul.f32 %v1879_v45, %v1879_v45  ;;  %v622_v23 = vmul.f32 %v1899_v24, %v1899_v24  ;;  %v623_v63 = vmul.f32 %v1903_v31, %v1903_v31 }
 0x19c   :  { %3574 = vst [vmem:[#allocation24_spill] sm:$0xff] %v2115_v62  ;;  %3575 = vst [vmem:[#allocation25_spill] sm:$0xff] %v2119_v60 }
 0x19d   :  { %3576 = vst [vmem:[#allocation26_spill] sm:$0xff] %v2123_v53  ;;  %3577 = vst [vmem:[#allocation27_spill] sm:$0xff] %v2127_v13  ;;  %v680_v62 = vadd.f32 %v617_v54, %v616_v7  ;;  %v624_v7 = vmul.f32 %v1907_v29, %v1907_v29 }
 0x19f   :  { %v681_v60 = vadd.f32 %v680_v62, %v618_v51  ;;  %v625_v51 = vmul.f32 %v1911_v37, %v1911_v37 }
 0x1a1   :  { %v682_v53 = vadd.f32 %v681_v60, %v619_v33  ;;  %v626_v33 = vmul.f32 %v1915_v34, %v1915_v34 }
 0x1a3   :  { %v683_v59 = vadd.f32 %v682_v53, %v620_v5  ;;  %v627_v5 = vmul.f32 %v1919_v43, %v1919_v43 }
 0x1a5   :  { %v684_v45 = vadd.f32 %v683_v59, %v621_v28  ;;  %v628_v59 = vmul.f32 %v1923_v40, %v1923_v40 }
 0x1a7   :  { %v685_v54 = vadd.f32 %v684_v45, %v622_v23  ;;  %v629_v45 = vmul.f32 %v1927_v49, %v1927_v49 }
 0x1a9   :  { %v686_v62 = vadd.f32 %v685_v54, %v623_v63  ;;  %v630_v54 = vmul.f32 %v1931_v46, %v1931_v46 }
 0x1ab   :  { %v687_v60 = vadd.f32 %v686_v62, %v624_v7  ;;  %v631_v62 = vmul.f32 %v1935_v55, %v1935_v55 }
 0x1ad   :  { %v688_v53 = vadd.f32 %v687_v60, %v625_v51  ;;  %v632_v60 = vmul.f32 %v1939_v52, %v1939_v52 }
 0x1af   :  { %v689_v28 = vadd.f32 %v688_v53, %v626_v33  ;;  %v633_v53 = vmul.f32 %v1943_v61, %v1943_v61 }
 0x1b1   :  { %v690_v23 = vadd.f32 %v689_v28, %v627_v5  ;;  %v634_v28 = vmul.f32 %v1947_v58, %v1947_v58 }
 0x1b3   :  { %v691_v63 = vadd.f32 %v690_v23, %v628_v59  ;;  %v635_v23 = vmul.f32 %v1951_v3, %v1951_v3 }
 0x1b5   :  { %v692_v7 = vadd.f32 %v691_v63, %v629_v45  ;;  %v636_v63 = vmul.f32 %v1955_v0, %v1955_v0 }
 0x1b7   :  { %v693_v51 = vadd.f32 %v692_v7, %v630_v54  ;;  %v637_v7 = vmul.f32 %v1959_v9, %v1959_v9 }
 0x1b9   :  { %v694_v33 = vadd.f32 %v693_v51, %v631_v62  ;;  %v3578_v51 = vld [vmem:[#allocation2_spill] sm:$0xff] }
 0x1ba   :  { %v638_v61 = vmul.f32 %v3578_v51, %v3578_v51 }
 0x1bb   :  { %v695_v5 = vadd.f32 %v694_v33, %v632_v60  ;;  %v3579_v33 = vld [vmem:[#allocation5_spill] sm:$0xff] }
 0x1bc   :  { %v639_v58 = vmul.f32 %v3579_v33, %v3579_v33 }
 0x1bd   :  { %v696_v59 = vadd.f32 %v695_v5, %v633_v53  ;;  %v640_v5 = vmul.f32 %v1971_v1, %v1971_v1 }
 0x1bf   :  { %v697_v45 = vadd.f32 %v696_v59, %v634_v28  ;;  %v641_v59 = vmul.f32 %v1975_v18, %v1975_v18 }
 0x1c1   :  { %v698_v54 = vadd.f32 %v697_v45, %v635_v23  ;;  %v642_v45 = vmul.f32 %v1979_v19, %v1979_v19 }
 0x1c3   :  { %v699_v62 = vadd.f32 %v698_v54, %v636_v63  ;;  %v643_v54 = vmul.f32 %v1983_v12, %v1983_v12 }
 0x1c5   :  { %v700_v60 = vadd.f32 %v699_v62, %v637_v7  ;;  %v644_v62 = vmul.f32 %v1987_v57, %v1987_v57 }
 0x1c7   :  { %v701_v53 = vadd.f32 %v700_v60, %v638_v61  ;;  %v645_v60 = vmul.f32 %v1991_v17, %v1991_v17 }
 0x1c9   :  { %v702_v28 = vadd.f32 %v701_v53, %v639_v58  ;;  %v646_v53 = vmul.f32 %v1995_v11, %v1995_v11 }
 0x1cb   :  { %v703_v23 = vadd.f32 %v702_v28, %v640_v5  ;;  %v647_v28 = vmul.f32 %v1999_v41, %v1999_v41 }
 0x1cd   :  { %v704_v63 = vadd.f32 %v703_v23, %v641_v59  ;;  %v648_v23 = vmul.f32 %v2003_v21, %v2003_v21 }
 0x1cf   :  { %v705_v7 = vadd.f32 %v704_v63, %v642_v45  ;;  %v649_v63 = vmul.f32 %v2007_v6, %v2007_v6 }
 0x1d1   :  { %v706_v61 = vadd.f32 %v705_v7, %v643_v54  ;;  %v650_v7 = vmul.f32 %v2011_v15, %v2011_v15 }
 0x1d3   :  { %v707_v58 = vadd.f32 %v706_v61, %v644_v62  ;;  %v651_v61 = vmul.f32 %v2015_v39, %v2015_v39 }
 0x1d5   :  { %v708_v5 = vadd.f32 %v707_v58, %v645_v60  ;;  %v652_v58 = vmul.f32 %v2019_v47, %v2019_v47 }
 0x1d7   :  { %v709_v59 = vadd.f32 %v708_v5, %v646_v53  ;;  %v653_v5 = vmul.f32 %v2023_v27, %v2023_v27 }
 0x1d9   :  { %v710_v45 = vadd.f32 %v709_v59, %v647_v28  ;;  %v654_v59 = vmul.f32 %v2027_v25, %v2027_v25 }
 0x1db   :  { %v711_v54 = vadd.f32 %v710_v45, %v648_v23  ;;  %v655_v45 = vmul.f32 %v2031_v32, %v2031_v32 }
 0x1dd   :  { %v712_v62 = vadd.f32 %v711_v54, %v649_v63  ;;  %v656_v54 = vmul.f32 %v2035_v30, %v2035_v30 }
 0x1df   :  { %v713_v60 = vadd.f32 %v712_v62, %v650_v7  ;;  %v657_v62 = vmul.f32 %v2039_v38, %v2039_v38 }
 0x1e1   :  { %v714_v53 = vadd.f32 %v713_v60, %v651_v61  ;;  %v658_v60 = vmul.f32 %v2043_v36, %v2043_v36 }
 0x1e3   :  { %v715_v28 = vadd.f32 %v714_v53, %v652_v58  ;;  %v659_v53 = vmul.f32 %v2047_v44, %v2047_v44 }
 0x1e5   :  { %v716_v23 = vadd.f32 %v715_v28, %v653_v5  ;;  %v660_v28 = vmul.f32 %v2051_v42, %v2051_v42 }
 0x1e7   :  { %v717_v63 = vadd.f32 %v716_v23, %v654_v59  ;;  %v661_v23 = vmul.f32 %v2055_v50, %v2055_v50 }
 0x1e9   :  { %v718_v7 = vadd.f32 %v717_v63, %v655_v45  ;;  %v662_v63 = vmul.f32 %v2059_v48, %v2059_v48 }
 0x1eb   :  { %v719_v61 = vadd.f32 %v718_v7, %v656_v54  ;;  %v3580_v7 = vld [vmem:[#allocation10_spill] sm:$0xff] }
 0x1ec   :  { %v663_v36 = vmul.f32 %v3580_v7, %v3580_v7 }
 0x1ed   :  { %v720_v58 = vadd.f32 %v719_v61, %v657_v62  ;;  %v3581_v61 = vld [vmem:[#allocation14_spill] sm:$0xff] }
 0x1ee   :  { %v664_v44 = vmul.f32 %v3581_v61, %v3581_v61 }
 0x1ef   :  { %v721_v5 = vadd.f32 %v720_v58, %v658_v60  ;;  %v3582_v58 = vld [vmem:[#allocation13_spill] sm:$0xff] }
 0x1f0   :  { %v665_v42 = vmul.f32 %v3582_v58, %v3582_v58 }
 0x1f1   :  { %v722_v59 = vadd.f32 %v721_v5, %v659_v53  ;;  %v3583_v5 = vld [vmem:[#allocation16_spill] sm:$0xff] }
 0x1f2   :  { %v666_v50 = vmul.f32 %v3583_v5, %v3583_v5 }
 0x1f3   :  { %v723_v45 = vadd.f32 %v722_v59, %v660_v28  ;;  %v667_v59 = vmul.f32 %v2079_v4, %v2079_v4 }
 0x1f5   :  { %v724_v54 = vadd.f32 %v723_v45, %v661_v23  ;;  %v668_v45 = vmul.f32 %v2083_v2, %v2083_v2 }
 0x1f7   :  { %v725_v62 = vadd.f32 %v724_v54, %v662_v63  ;;  %v669_v54 = vmul.f32 %v2087_v10, %v2087_v10 }
 0x1f9   :  { %v726_v60 = vadd.f32 %v725_v62, %v663_v36  ;;  %v670_v62 = vmul.f32 %v2091_v8, %v2091_v8 }
 0x1fb   :  { %v727_v53 = vadd.f32 %v726_v60, %v664_v44  ;;  %v671_v60 = vmul.f32 %v2095_v16, %v2095_v16 }
 0x1fd   :  { %v728_v28 = vadd.f32 %v727_v53, %v665_v42  ;;  %v672_v53 = vmul.f32 %v2099_v14, %v2099_v14 }
 0x1ff   :  { %v729_v23 = vadd.f32 %v728_v28, %v666_v50  ;;  %v673_v28 = vmul.f32 %v2103_v22, %v2103_v22 }
 0x201   :  { %v730_v63 = vadd.f32 %v729_v23, %v667_v59  ;;  %v674_v23 = vmul.f32 %v2107_v56, %v2107_v56 }
 0x203   :  { %v731_v36 = vadd.f32 %v730_v63, %v668_v45  ;;  %v3584_v63 = vld [vmem:[#allocation23_spill] sm:$0xff] }
 0x204   :  { %v675_v8 = vmul.f32 %v3584_v63, %v3584_v63 }
 0x205   :  { %v732_v44 = vadd.f32 %v731_v36, %v669_v54  ;;  %v3585_v36 = vld [vmem:[#allocation24_spill] sm:$0xff] }
 0x206   :  { %v676_v16 = vmul.f32 %v3585_v36, %v3585_v36 }
 0x207   :  { %v733_v42 = vadd.f32 %v732_v44, %v670_v62  ;;  %v3586_v44 = vld [vmem:[#allocation25_spill] sm:$0xff] }
 0x208   :  { %v677_v14 = vmul.f32 %v3586_v44, %v3586_v44  ;;  %v755_v44 = vlaneseq }
 0x209   :  { %v734_v50 = vadd.f32 %v733_v42, %v671_v60  ;;  %v3587_v42 = vld [vmem:[#allocation26_spill] sm:$0xff] }
 0x20a   :  { %v678_v22 = vmul.f32 %v3587_v42, %v3587_v42 }
 0x20b   :  { %v735_v59 = vadd.f32 %v734_v50, %v672_v53  ;;  %v679_v50 = vmul.f32 %v2127_v13, %v2127_v13 }
 0x20d   :  { %v736_v45 = vadd.f32 %v735_v59, %v673_v28 }
 0x20f   :  { %v737_v54 = vadd.f32 %v736_v45, %v674_v23 }
 0x211   :  { %v738_v62 = vadd.f32 %v737_v54, %v675_v8 }
 0x213   :  { %v739_v60 = vadd.f32 %v738_v62, %v676_v16  ;;  %v756_v16 = vshrl.u32 %v755_v44, 7 }
 0x215   :  { %v740_v53 = vadd.f32 %v739_v60, %v677_v14  ;;  %v750_v14 = vld [vmem:[%s3455_s2] sm:$0x1]  ;;  %v757_v13 = vsub.s32 0, %v756_v16 }
 0x217   :  { %v741_v28 = vadd.f32 %v740_v53, %v678_v22  ;;  %v3588_v53 = vld [vmem:[#allocation17_spill] sm:$0xff] }
 0x219   :  { %v742_v59 = vadd.f32 %v741_v28, %v679_v50 }
 0x21b   :  { %v743_v56 = vrot.slane %v742_v59, 4 }
 0x21d   :  { %v744_v63 = vadd.f32 %v743_v56, %v742_v59 }
 0x21f   :  { %v745_v23 = vrot.slane %v744_v63, 2 }
 0x221   :  { %v746_v45 = vadd.f32 %v745_v23, %v744_v63  ;;  %v3589_v63 = vld [vmem:[#allocation18_spill] sm:$0xff] }
 0x223   :  { %v747_v10 = vrot.slane %v746_v45, 1 }
 0x225   :  { %v748_v36 = vadd.f32 %v747_v10, %v746_v45  ;;  %v3591_v45 = vld [vmem:[#allocation20_spill] sm:$0xff] }
 0x227   :  { %v749_v8 = vmul.f32 0.001953125, %v748_v36  ;;  %v3590_v36 = vld [vmem:[#allocation19_spill] sm:$0xff] }
 0x229   :  { %v751_v54 = vadd.f32 1e-05, %v749_v8  ;;  %v3592_v8 = vld [vmem:[#allocation21_spill] sm:$0xff] }
 0x22b   :  { %1412 = vrsqrt.f32 %v751_v54 }
 0x235   :  { %v1413_v62 = vpop.eup %1412 }
 0x236   :  { %v753_v60 = vmul.f32 %v1413_v62, %v750_v14  ;;  %v3593_v62 = vld [vmem:[#allocation3_spill] sm:$0xff]  ;;  %v3594_v14 = vld [vmem:[#allocation8_spill] sm:$0xff] }
 0x238   :  { %v2260_v22 = vrot.slane %v753_v60, %v757_v13  ;;  %v3595_v60 = vld [vmem:[#allocation6_spill] sm:$0xff] }
 0x23a   :  { %v2264_v56 = vmul.f32 %v2260_v22, %v3588_v53  ;;  %v2268_v10 = vmul.f32 %v2260_v22, %v3589_v63  ;;  %v2272_v44 = vmul.f32 %v2260_v22, %v3590_v36  ;;  %v2276_v50 = vmul.f32 %v2260_v22, %v1887_v20  ;;  %v3596_v53 = vld [vmem:[#allocation11_spill] sm:$0xff] }
 0x23b   :  { %v2280_v13 = vmul.f32 %v2260_v22, %v1891_v35  ;;  %v2284_v28 = vmul.f32 %v2260_v22, %v1895_v26  ;;  %v2288_v59 = vmul.f32 %v2260_v22, %v1899_v24  ;;  %v2292_v23 = vmul.f32 %v2260_v22, %v1903_v31 }
 0x23c   :  { %v2296_v20 = vmul.f32 %v2260_v22, %v1907_v29  ;;  %v2300_v35 = vmul.f32 %v2260_v22, %v1911_v37  ;;  %v2304_v26 = vmul.f32 %v2260_v22, %v1915_v34  ;;  %v2308_v24 = vmul.f32 %v2260_v22, %v1919_v43 }
 0x23d   :  { %v2312_v31 = vmul.f32 %v2260_v22, %v1923_v40  ;;  %v2316_v29 = vmul.f32 %v2260_v22, %v1927_v49  ;;  %v2320_v37 = vmul.f32 %v2260_v22, %v1931_v46  ;;  %v2324_v34 = vmul.f32 %v2260_v22, %v1935_v55 }
 0x23e   :  { %v2328_v43 = vmul.f32 %v2260_v22, %v1939_v52  ;;  %v2332_v40 = vmul.f32 %v2260_v22, %v3591_v45  ;;  %v2336_v49 = vmul.f32 %v2260_v22, %v3592_v8  ;;  %v2340_v46 = vmul.f32 %v2260_v22, %v1951_v3 }
 0x23f   :  { %v2344_v55 = vmul.f32 %v2260_v22, %v1955_v0  ;;  %v2348_v52 = vmul.f32 %v2260_v22, %v1959_v9  ;;  %v2352_v54 = vmul.f32 %v2260_v22, %v3578_v51  ;;  %v2356_v16 = vmul.f32 %v2260_v22, %v3579_v33 }
 0x240   :  { %v2360_v3 = vmul.f32 %v2260_v22, %v1971_v1  ;;  %v2364_v0 = vmul.f32 %v2260_v22, %v1975_v18  ;;  %v2368_v9 = vmul.f32 %v2260_v22, %v1979_v19  ;;  %v2372_v51 = vmul.f32 %v2260_v22, %v1983_v12 }
 0x241   :  { %v2376_v33 = vmul.f32 %v2260_v22, %v1987_v57  ;;  %v2380_v1 = vmul.f32 %v2260_v22, %v1991_v17  ;;  %v2384_v18 = vmul.f32 %v2260_v22, %v1995_v11  ;;  %v2388_v19 = vmul.f32 %v2260_v22, %v1999_v41 }
 0x242   :  { %v2392_v12 = vmul.f32 %v2260_v22, %v2003_v21  ;;  %v2396_v57 = vmul.f32 %v2260_v22, %v2007_v6  ;;  %v2400_v17 = vmul.f32 %v2260_v22, %v2011_v15  ;;  %v2404_v11 = vmul.f32 %v2260_v22, %v2015_v39 }
 0x243   :  { %v2408_v41 = vmul.f32 %v2260_v22, %v2019_v47  ;;  %v2412_v21 = vmul.f32 %v2260_v22, %v2023_v27  ;;  %v2416_v6 = vmul.f32 %v2260_v22, %v2027_v25  ;;  %v2420_v15 = vmul.f32 %v2260_v22, %v2031_v32 }
 0x244   :  { %v2424_v39 = vmul.f32 %v2260_v22, %v2035_v30  ;;  %v2428_v47 = vmul.f32 %v2260_v22, %v2039_v38  ;;  %v2432_v27 = vmul.f32 %v2260_v22, %v3593_v62  ;;  %v2436_v25 = vmul.f32 %v2260_v22, %v3594_v14  ;;  %v3600_v62 = vld [vmem:[#allocation15_spill] sm:$0xff]  ;;  %v3602_v14 = vld [vmem:[#allocation4_spill] sm:$0xff] }
 0x245   :  { %v2440_v32 = vmul.f32 %v2260_v22, %v3595_v60  ;;  %v2444_v30 = vmul.f32 %v2260_v22, %v3596_v53  ;;  %v2448_v38 = vmul.f32 %v2260_v22, %v2059_v48  ;;  %v2452_v63 = vmul.f32 %v2260_v22, %v3580_v7  ;;  %v3604_v60 = vld [vmem:[#allocation9_spill] sm:$0xff]  ;;  %v3606_v53 = vld [vmem:[#allocation7_spill] sm:$0xff] }
 0x246   :  { %v2456_v36 = vmul.f32 %v2260_v22, %v3581_v61  ;;  %v2460_v45 = vmul.f32 %v2260_v22, %v3582_v58  ;;  %v2464_v8 = vmul.f32 %v2260_v22, %v3583_v5  ;;  %v2468_v48 = vmul.f32 %v2260_v22, %v2079_v4  ;;  %v2485_v5 = vld [vmem:[%s3456_s3] ss:$0 sm:$0xff] }
 0x247   :  { %v2472_v7 = vmul.f32 %v2260_v22, %v2083_v2  ;;  %v2476_v61 = vmul.f32 %v2260_v22, %v3600_v62  ;;  %v2480_v58 = vmul.f32 %v2260_v22, %v3602_v14  ;;  %v2489_v4 = vmul.f32 %v2260_v22, %v3604_v60 }
 0x248   :  { %3597 = vst [vmem:[#allocation2_spill] sm:$0xff] %v2464_v8  ;;  %3598 = vst [vmem:[#allocation5_spill] sm:$0xff] %v2468_v48  ;;  %v2493_v2 = vmul.f32 %v2260_v22, %v3606_v53  ;;  %v3611_v8 = vld [vmem:[#allocation24_spill] sm:$0xff] }
 0x249   :  { %3599 = vst [vmem:[#allocation10_spill] sm:$0xff] %v2472_v7  ;;  %3601 = vst [vmem:[#allocation14_spill] sm:$0xff] %v2476_v61  ;;  %v3607_v7 = vld [vmem:[#allocation12_spill] sm:$0xff]  ;;  %v3609_v61 = vld [vmem:[#allocation22_spill] sm:$0xff]  ;;  %v2509_v60 = vmul.f32 %v2260_v22, %v3611_v8  ;;  %v2529_v8 = vadd.f32 %v2485_v5, %v2268_v10  ;;  %v2549_v10 = vadd.f32 %v2485_v5, %v2288_v59 }
 0x24a   :  { %3603 = vst [vmem:[#allocation13_spill] sm:$0xff] %v2480_v58  ;;  %3605 = vst [vmem:[#allocation16_spill] sm:$0xff] %v2489_v4  ;;  %v2497_v62 = vmul.f32 %v2260_v22, %v3607_v7  ;;  %v2501_v14 = vmul.f32 %v2260_v22, %v3609_v61  ;;  %v3610_v58 = vld [vmem:[#allocation23_spill] sm:$0xff]  ;;  %v3612_v4 = vld [vmem:[#allocation25_spill] sm:$0xff]  ;;  %v2517_v7 = vmul.f32 %v2260_v22, %v3587_v42 }
 0x24b   :  { %v2505_v48 = vmul.f32 %v2260_v22, %v3610_v58  ;;  %v2513_v53 = vmul.f32 %v2260_v22, %v3612_v4  ;;  %v2525_v58 = vadd.f32 %v2485_v5, %v2264_v56  ;;  %v2533_v4 = vadd.f32 %v2485_v5, %v2272_v44 }
 0x24c   :  { %3608 = vst [vmem:[#allocation26_spill] sm:$0xff] %v2497_v62  ;;  %v3613_v62 = vld [vmem:[#allocation27_spill] sm:$0xff]  ;;  %v2537_v42 = vadd.f32 %v2485_v5, %v2276_v50  ;;  %v2545_v56 = vadd.f32 %v2485_v5, %v2284_v28  ;;  %v2553_v44 = vadd.f32 %v2485_v5, %v2292_v23  ;;  %v2557_v50 = vadd.f32 %v2485_v5, %v2296_v20 }
 0x24d   :  { %v2521_v61 = vmul.f32 %v2260_v22, %v3613_v62  ;;  %v2541_v22 = vadd.f32 %v2485_v5, %v2280_v13  ;;  %v2561_v13 = vadd.f32 %v2485_v5, %v2300_v35  ;;  %v2565_v28 = vadd.f32 %v2485_v5, %v2304_v26 }
 0x24e   :  { %v2569_v59 = vadd.f32 %v2485_v5, %v2308_v24  ;;  %v2573_v23 = vadd.f32 %v2485_v5, %v2312_v31  ;;  %v2577_v20 = vadd.f32 %v2485_v5, %v2316_v29  ;;  %v2581_v35 = vadd.f32 %v2485_v5, %v2320_v37 }
 0x24f   :  { %v2585_v26 = vadd.f32 %v2485_v5, %v2324_v34  ;;  %v2589_v24 = vadd.f32 %v2485_v5, %v2328_v43  ;;  %v2593_v31 = vadd.f32 %v2485_v5, %v2332_v40  ;;  %v2597_v29 = vadd.f32 %v2485_v5, %v2336_v49  ;;  %v3619_v62 = vld [vmem:[#allocation2_spill] sm:$0xff] }
 0x250   :  { %v2601_v37 = vadd.f32 %v2485_v5, %v2340_v46  ;;  %v2605_v34 = vadd.f32 %v2485_v5, %v2344_v55  ;;  %v2609_v43 = vadd.f32 %v2485_v5, %v2348_v52  ;;  %v2613_v40 = vadd.f32 %v2485_v5, %v2352_v54 }
 0x251   :  { %v2617_v49 = vadd.f32 %v2485_v5, %v2356_v16  ;;  %v2621_v46 = vadd.f32 %v2485_v5, %v2360_v3  ;;  %v2625_v55 = vadd.f32 %v2485_v5, %v2364_v0  ;;  %v2629_v52 = vadd.f32 %v2485_v5, %v2368_v9 }
 0x252   :  { %v2633_v54 = vadd.f32 %v2485_v5, %v2372_v51  ;;  %v2637_v16 = vadd.f32 %v2485_v5, %v2376_v33  ;;  %v2641_v3 = vadd.f32 %v2485_v5, %v2380_v1  ;;  %v2645_v0 = vadd.f32 %v2485_v5, %v2384_v18 }
 0x253   :  { %v2649_v9 = vadd.f32 %v2485_v5, %v2388_v19  ;;  %v2653_v51 = vadd.f32 %v2485_v5, %v2392_v12  ;;  %v2657_v33 = vadd.f32 %v2485_v5, %v2396_v57  ;;  %v2661_v1 = vadd.f32 %v2485_v5, %v2400_v17 }
 0x254   :  { %v2665_v18 = vadd.f32 %v2485_v5, %v2404_v11  ;;  %v2669_v19 = vadd.f32 %v2485_v5, %v2408_v41  ;;  %v2673_v12 = vadd.f32 %v2485_v5, %v2412_v21  ;;  %v2677_v57 = vadd.f32 %v2485_v5, %v2416_v6 }
 0x255   :  { %v2681_v17 = vadd.f32 %v2485_v5, %v2420_v15  ;;  %v2685_v11 = vadd.f32 %v2485_v5, %v2424_v39  ;;  %v2689_v41 = vadd.f32 %v2485_v5, %v2428_v47  ;;  %v2693_v21 = vadd.f32 %v2485_v5, %v2432_v27 }
 0x256   :  { %v2697_v6 = vadd.f32 %v2485_v5, %v2436_v25  ;;  %v2701_v15 = vadd.f32 %v2485_v5, %v2440_v32  ;;  %v2705_v39 = vadd.f32 %v2485_v5, %v2444_v30  ;;  %v2709_v47 = vadd.f32 %v2485_v5, %v2448_v38 }
 0x257   :  { %v2713_v27 = vadd.f32 %v2485_v5, %v2452_v63  ;;  %v2717_v25 = vadd.f32 %v2485_v5, %v2456_v36  ;;  %v2721_v32 = vadd.f32 %v2485_v5, %v2460_v45  ;;  %v2725_v30 = vadd.f32 %v2485_v5, %v3619_v62 }
 0x258   :  { %3614 = vst [vmem:[#allocation17_spill] sm:$0xff] %v2705_v39  ;;  %3615 = vst [vmem:[#allocation18_spill] sm:$0xff] %v2709_v47  ;;  %v3620_v39 = vld [vmem:[#allocation5_spill] sm:$0xff]  ;;  %v3622_v47 = vld [vmem:[#allocation10_spill] sm:$0xff]  ;;  %vm895_vm0 = vcmp.ge.f32.partialorder %v2525_v58, 0.0  ;;  %vm896_vm1 = vcmp.ge.f32.partialorder %v2529_v8, 0.0 }
 0x259   :  { %3616 = vst [vmem:[#allocation19_spill] sm:$0xff] %v2713_v27  ;;  %3617 = vst [vmem:[#allocation20_spill] sm:$0xff] %v2717_v25  ;;  %v2729_v38 = vadd.f32 %v2485_v5, %v3620_v39  ;;  %v2733_v63 = vadd.f32 %v2485_v5, %v3622_v47  ;;  %v3623_v27 = vld [vmem:[#allocation14_spill] sm:$0xff]  ;;  %v3625_v25 = vld [vmem:[#allocation13_spill] sm:$0xff]  ;;  %v2749_v39 = vadd.f32 %v2485_v5, %v2493_v2  ;;  %vm897_vm2 = vcmp.ge.f32.partialorder %v2533_v4, 0.0 }
 0x25a   :  { %3618 = vst [vmem:[#allocation21_spill] sm:$0xff] %v2721_v32  ;;  %v2737_v36 = vadd.f32 %v2485_v5, %v3623_v27  ;;  %v2741_v45 = vadd.f32 %v2485_v5, %v3625_v25  ;;  %v3627_v32 = vld [vmem:[#allocation16_spill] sm:$0xff]  ;;  %v2757_v27 = vadd.f32 %v2485_v5, %v2501_v14  ;;  %v2761_v25 = vadd.f32 %v2485_v5, %v2505_v48 }
 0x25b   :  { %3621 = vst [vmem:[#allocation3_spill] sm:$0xff] %v2729_v38  ;;  %v2745_v62 = vadd.f32 %v2485_v5, %v3627_v32  ;;  %3629 = vst [vmem:[#allocation15_spill] sm:$0xff] %v2749_v39  ;;  %v3630_v38 = vld [vmem:[#allocation26_spill] sm:$0xff]  ;;  %v2765_v32 = vadd.f32 %v2485_v5, %v2509_v60  ;;  %v2769_v2 = vadd.f32 %v2485_v5, %v2513_v53  ;;  %vm898_vm3 = vcmp.ge.f32.partialorder %v2537_v42, 0.0 }
 0x25c   :  { %3624 = vst [vmem:[#allocation8_spill] sm:$0xff] %v2737_v36  ;;  %3626 = vst [vmem:[#allocation6_spill] sm:$0xff] %v2741_v45  ;;  %v2753_v47 = vadd.f32 %v2485_v5, %v3630_v38  ;;  %vm899_vm4 = vcmp.ge.f32.partialorder %v2541_v22, 0.0  ;;  %vm900_vm5 = vcmp.ge.f32.partialorder %v2545_v56, 0.0  ;;  %vm901_vm6 = vcmp.ge.f32.partialorder %v2549_v10, 0.0 }
 0x25d   :  { %3628 = vst [vmem:[#allocation11_spill] sm:$0xff] %v2745_v62  ;;  %3632 = vst [vmem:[#allocation9_spill] sm:$0xff] %v2757_v27  ;;  %vm902_vm7 = vcmp.ge.f32.partialorder %v2553_v44, 0.0  ;;  %vm903_vm8 = vcmp.ge.f32.partialorder %v2557_v50, 0.0  ;;  %v2782_v48 = vadd.f32 %v2485_v5, %v2517_v7  ;;  %vm904_vm9 = vcmp.ge.f32.partialorder %v2561_v13, 0.0 }
 0x25e   :  { %3631 = vst [vmem:[#allocation4_spill] sm:$0xff] %v2753_v47  ;;  %3633 = vst [vmem:[#allocation7_spill] sm:$0xff] %v2761_v25  ;;  %v959_v14 = vmul.f32 0.2, %v2525_v58  ;;  %v960_v60 = vmul.f32 0.2, %v2529_v8  ;;  %v2790_v38 = vadd.f32 %v2485_v5, %v2521_v61 }
 0x25f   :  { %3634 = vst [vmem:[#allocation12_spill] sm:$0xff] %v2765_v32  ;;  %3635 = vst [vmem:[#allocation22_spill] sm:$0xff] %v2769_v2  ;;  %v961_v53 = vmul.f32 0.2, %v2533_v4  ;;  %vm905_vm10 = vcmp.ge.f32.partialorder %v2565_v28, 0.0  ;;  %vm906_vm11 = vcmp.ge.f32.partialorder %v2569_v59, 0.0 }
 0x260   :  { %3636 = vst [vmem:[#allocation23_spill] sm:$0xff] %v2782_v48  ;;  %3637 = vst [vmem:[#allocation24_spill] sm:$0xff] %v2790_v38  ;;  %v962_v2 = vmul.f32 0.2, %v2537_v42  ;;  %v963_v32 = vmul.f32 0.2, %v2541_v22  ;;  %v1023_v5 = vsel %vm895_vm0, %v2525_v58, %v959_v14  ;;  %v1024_v39 = vsel %vm896_vm1, %v2529_v8, %v960_v60 }
 0x261   :  { %v964_v7 = vmul.f32 0.2, %v2545_v56  ;;  %v965_v48 = vmul.f32 0.2, %v2549_v10  ;;  %v966_v25 = vmul.f32 0.2, %v2553_v44  ;;  %1087 = vst [vmem:[%s3457_s4] sm:$0xff] %v1023_v5  ;;  %v1025_v45 = vsel %vm897_vm2, %v2533_v4, %v961_v53 }
 0x262   :  { %v967_v27 = vmul.f32 0.2, %v2557_v50  ;;  %vm907_vm12 = vcmp.ge.f32.partialorder %v2573_v23, 0.0  ;;  %v968_v61 = vmul.f32 0.2, %v2561_v13  ;;  %vm908_vm13 = vcmp.ge.f32.partialorder %v2577_v20, 0.0 }
 0x263   :  { %v2806_v38 = vmul.f32 0.2, %v2565_v28  ;;  %v2809_v47 = vmul.f32 0.2, %v2569_v59  ;;  %v2819_v58 = vmul.f32 0.2, %v2573_v23  ;;  %v1026_v36 = vsel %vm898_vm3, %v2537_v42, %v962_v2 }
 0x264   :  { %v2822_v14 = vmul.f32 0.2, %v2577_v20  ;;  %v2825_v62 = vmul.f32 0.2, %v2581_v35  ;;  %1088 = vst [vmem:[%s3457_s4 + $0x8] sm:$0xff] %v1024_v39  ;;  %vm909_vm14 = vcmp.ge.f32.partialorder %v2581_v35, 0.0 }
 0x265   :  { %v2835_v8 = vmul.f32 0.2, %v2585_v26  ;;  %v2838_v60 = vmul.f32 0.2, %v2589_v24  ;;  %v2841_v5 = vmul.f32 0.2, %v2593_v31 }
 0x266   :  { %1089 = vst [vmem:[%s3457_s4 + $0x10] sm:$0xff] %v1025_v45  ;;  %vm910_vm15 = vcmp.ge.f32.partialorder %v2585_v26, 0.0  ;;  %v2851_v4 = vmul.f32 0.2, %v2597_v29  ;;  %v2854_v39 = vmul.f32 0.2, %v2601_v37 }
 0x267   :  { %3638 = vst [vmem:[#allocation25_spill] sm:$0xff] %v2841_v5  ;;  %v2857_v53 = vmul.f32 0.2, %v2605_v34  ;;  %v1027_v5 = vsel %vm899_vm4, %v2541_v22, %v963_v32  ;;  %1090 = vst [vmem:[%s3457_s4 + $0x18] sm:$0xff] %v1026_v36  ;;  %vm911_vm0 = vcmp.ge.f32.partialorder %v2589_v24, 0.0  ;;  %vm912_vm1 = vcmp.ge.f32.partialorder %v2593_v31, 0.0 }
 0x268   :  { %v2867_v42 = vmul.f32 0.2, %v2609_v43  ;;  %v2870_v45 = vmul.f32 0.2, %v2613_v40  ;;  %v2873_v2 = vmul.f32 0.2, %v2617_v49 }
 0x269   :  { %3639 = vst [vmem:[#allocation27_spill] sm:$0xff] %v2857_v53  ;;  %v1028_v53 = vsel %vm900_vm5, %v2545_v56, %v964_v7  ;;  %1091 = vst [vmem:[%s3457_s4 + $0x20] sm:$0xff] %v1027_v5  ;;  %v2883_v22 = vmul.f32 0.2, %v2621_v46  ;;  %v2886_v36 = vmul.f32 0.2, %v2625_v55 }
 0x26a   :  { %3640 = vst [vmem:[#allocation2_spill] sm:$0xff] %v2873_v2  ;;  %v2889_v32 = vmul.f32 0.2, %v2629_v52  ;;  %v1029_v2 = vsel %vm901_vm6, %v2549_v10, %v965_v48  ;;  %1092 = vst [vmem:[%s3457_s4 + $0x28] sm:$0xff] %v1028_v53  ;;  %vm913_vm2 = vcmp.ge.f32.partialorder %v2597_v29, 0.0  ;;  %vm914_vm3 = vcmp.ge.f32.partialorder %v2601_v37, 0.0 }
 0x26b   :  { %v2899_v56 = vmul.f32 0.2, %v2633_v54  ;;  %v2902_v7 = vmul.f32 0.2, %v2637_v16  ;;  %v2905_v5 = vmul.f32 0.2, %v2641_v3 }
 0x26c   :  { %3641 = vst [vmem:[#allocation5_spill] sm:$0xff] %v2889_v32  ;;  %v1030_v32 = vsel %vm902_vm7, %v2553_v44, %v966_v25  ;;  %1093 = vst [vmem:[%s3457_s4 + $0x30] sm:$0xff] %v1029_v2  ;;  %v2917_v10 = vmul.f32 0.2, %v2645_v0  ;;  %v2920_v48 = vmul.f32 0.2, %v2649_v9  ;;  %v1031_v44 = vsel %vm903_vm8, %v2557_v50, %v967_v27 }
 0x26d   :  { %v2923_v53 = vmul.f32 0.2, %v2653_v51  ;;  %1094 = vst [vmem:[%s3457_s4 + $0x38] sm:$0xff] %v1030_v32  ;;  %vm917_vm6 = vcmp.ge.f32.partialorder %v2613_v40, 0.0  ;;  %v2936_v25 = vmul.f32 0.2, %v2657_v33  ;;  %v1032_v27 = vsel %vm904_vm9, %v2561_v13, %v968_v61 }
 0x26e   :  { %v2939_v2 = vmul.f32 0.2, %v2661_v1  ;;  %v2942_v50 = vmul.f32 0.2, %v2665_v18  ;;  %1095 = vst [vmem:[%s3457_s4 + $0x40] sm:$0xff] %v1031_v44  ;;  %vm921_vm8 = vcmp.ge.f32.partialorder %v2629_v52, 0.0  ;;  %v1033_v61 = vsel %vm905_vm10, %v2565_v28, %v2806_v38 }
 0x26f   :  { %v2955_v32 = vmul.f32 0.2, %v2669_v19  ;;  %v2961_v13 = vmul.f32 0.2, %v2677_v57  ;;  %1096 = vst [vmem:[%s3457_s4 + $0x48] sm:$0xff] %v1032_v27  ;;  %vm925_vm9 = vcmp.ge.f32.partialorder %v2645_v0, 0.0  ;;  %v1034_v38 = vsel %vm906_vm11, %v2569_v59, %v2809_v47 }
 0x270   :  { %3642 = vst [vmem:[#allocation10_spill] sm:$0xff] %v2942_v50  ;;  %v2958_v50 = vmul.f32 0.2, %v2673_v12  ;;  %v2975_v44 = vmul.f32 0.2, %v2681_v17  ;;  %1097 = vst [vmem:[%s3457_s4 + $0x50] sm:$0xff] %v1033_v61  ;;  %v1035_v47 = vsel %vm907_vm12, %v2573_v23, %v2819_v58  ;;  %v1036_v58 = vsel %vm908_vm13, %v2577_v20, %v2822_v14 }
 0x271   :  { %3643 = vst [vmem:[#allocation14_spill] sm:$0xff] %v2961_v13  ;;  %v2978_v13 = vmul.f32 0.2, %v2685_v11  ;;  %v2981_v28 = vmul.f32 0.2, %v2689_v41  ;;  %vm929_vm10 = vcmp.ge.f32.partialorder %v2661_v1, 0.0  ;;  %v1037_v14 = vsel %vm909_vm14, %v2581_v35, %v2825_v62 }
 0x272   :  { %v2995_v27 = vmul.f32 0.2, %v2693_v21  ;;  %v3001_v59 = vmul.f32 0.2, %v2701_v15  ;;  %1098 = vst [vmem:[%s3457_s4 + $0x58] sm:$0xff] %v1034_v38  ;;  %vm933_vm11 = vcmp.ge.f32.partialorder %v2677_v57, 0.0  ;;  %v1038_v62 = vsel %vm910_vm15, %v2585_v26, %v2835_v8 }
 0x273   :  { %3644 = vst [vmem:[#allocation13_spill] sm:$0xff] %v2978_v13  ;;  %3645 = vst [vmem:[#allocation16_spill] sm:$0xff] %v2981_v28  ;;  %v2998_v28 = vmul.f32 0.2, %v2697_v6  ;;  %v3649_v61 = vld [vmem:[#allocation17_spill] sm:$0xff]  ;;  %v3653_v13 = vld [vmem:[#allocation19_spill] sm:$0xff]  ;;  %v1039_v8 = vsel %vm911_vm0, %v2589_v24, %v2838_v60 }
 0x274   :  { %3646 = vst [vmem:[#allocation26_spill] sm:$0xff] %v2995_v27  ;;  %3648 = vst [vmem:[#allocation29_spill] sm:$0xff] %v3001_v59  ;;  %v3651_v59 = vld [vmem:[#allocation18_spill] sm:$0xff]  ;;  %v3021_v23 = vmul.f32 0.2, %v3653_v13  ;;  %vm937_vm12 = vcmp.ge.f32.partialorder %v2693_v21, 0.0 }
 0x275   :  { %3647 = vst [vmem:[#allocation28_spill] sm:$0xff] %v2998_v28  ;;  %v3015_v28 = vmul.f32 0.2, %v3649_v61  ;;  %v3018_v27 = vmul.f32 0.2, %v3651_v59  ;;  %1099 = vst [vmem:[%s3457_s4 + $0x60] sm:$0xff] %v1035_v47 }
 0x276   :  { %3654 = vst [vmem:[#allocation19_spill] sm:$0xff] %v3021_v23  ;;  %v3655_v38 = vld [vmem:[#allocation20_spill] sm:$0xff]  ;;  %v3657_v23 = vld [vmem:[#allocation21_spill] sm:$0xff]  ;;  %v3041_v20 = vmul.f32 0.2, %v2725_v30  ;;  %1100 = vst [vmem:[%s3457_s4 + $0x68] sm:$0xff] %v1036_v58 }
 0x277   :  { %3650 = vst [vmem:[#allocation17_spill] sm:$0xff] %v3015_v28  ;;  %3652 = vst [vmem:[#allocation18_spill] sm:$0xff] %v3018_v27  ;;  %v3035_v27 = vmul.f32 0.2, %v3655_v38  ;;  %v3038_v28 = vmul.f32 0.2, %v3657_v23 }
 0x278   :  { %3659 = vst [vmem:[#allocation31_spill] sm:$0xff] %v3041_v20  ;;  %vm941_vm13 = vcmp.ge.f32.partialorder %v3651_v59, 0.0  ;;  %v3660_v47 = vld [vmem:[#allocation3_spill] sm:$0xff]  ;;  %v3058_v20 = vmul.f32 0.2, %v2733_v63  ;;  %1101 = vst [vmem:[%s3457_s4 + $0x70] sm:$0xff] %v1037_v14 }
 0x279   :  { %3656 = vst [vmem:[#allocation20_spill] sm:$0xff] %v3035_v27  ;;  %3658 = vst [vmem:[#allocation30_spill] sm:$0xff] %v3038_v28  ;;  %v3055_v28 = vmul.f32 0.2, %v3660_v47  ;;  %v3663_v27 = vld [vmem:[#allocation8_spill] sm:$0xff]  ;;  %vm945_vm14 = vcmp.ge.f32.partialorder %v2725_v30, 0.0 }
 0x27a   :  { %3662 = vst [vmem:[#allocation32_spill] sm:$0xff] %v3058_v20  ;;  %v3061_v35 = vmul.f32 0.2, %v3663_v27  ;;  %v3665_v58 = vld [vmem:[#allocation6_spill] sm:$0xff]  ;;  %v3669_v23 = vld [vmem:[#allocation15_spill] sm:$0xff]  ;;  %1102 = vst [vmem:[%s3457_s4 + $0x78] sm:$0xff] %v1038_v62 }
 0x27b   :  { %3661 = vst [vmem:[#allocation3_spill] sm:$0xff] %v3055_v28  ;;  %v3075_v20 = vmul.f32 0.2, %v3665_v58  ;;  %v3081_v26 = vmul.f32 0.2, %v3669_v23  ;;  %vm949_vm15 = vcmp.ge.f32.partialorder %v3665_v58, 0.0 }
 0x27c   :  { %3664 = vst [vmem:[#allocation33_spill] sm:$0xff] %v3061_v35  ;;  %v3667_v35 = vld [vmem:[#allocation11_spill] sm:$0xff]  ;;  %v3671_v14 = vld [vmem:[#allocation4_spill] sm:$0xff]  ;;  %v3677_v60 = vld [vmem:[#allocation25_spill] sm:$0xff]  ;;  %vm3685_vm5 = vcmp.ge.f32.partialorder %v2609_v43, 0.0 }
 0x27d   :  { %3666 = vst [vmem:[#allocation6_spill] sm:$0xff] %v3075_v20  ;;  %v3078_v28 = vmul.f32 0.2, %v3667_v35  ;;  %3670 = vst [vmem:[#allocation34_spill] sm:$0xff] %v3081_v26  ;;  %v3673_v26 = vld [vmem:[#allocation9_spill] sm:$0xff]  ;;  %v3675_v27 = vld [vmem:[#allocation7_spill] sm:$0xff]  ;;  %v1040_v62 = vsel %vm912_vm1, %v2593_v31, %v3677_v60 }
 0x27e   :  { %v3098_v20 = vmul.f32 0.2, %v3673_v26  ;;  %v3101_v24 = vmul.f32 0.2, %v3675_v27  ;;  %1103 = vst [vmem:[%s3457_s4 + $0x80] sm:$0xff] %v1039_v8  ;;  %vm953_vm0 = vcmp.ge.f32.partialorder %v3673_v26, 0.0  ;;  %v1041_v8 = vsel %vm913_vm2, %v2597_v29, %v2851_v4 }
 0x27f   :  { %3668 = vst [vmem:[#allocation11_spill] sm:$0xff] %v3078_v28  ;;  %v3095_v28 = vmul.f32 0.2, %v3671_v14  ;;  %vm954_vm4 = vcmp.ge.f32.partialorder %v3675_v27, 0.0  ;;  %v3678_v14 = vld [vmem:[#allocation12_spill] sm:$0xff]  ;;  %v3680_v23 = vld [vmem:[#allocation23_spill] sm:$0xff]  ;;  %v1044_v4 = vsel %vm3685_vm5, %v2609_v43, %v2867_v42 }
 0x280   :  { %3674 = vst [vmem:[#allocation9_spill] sm:$0xff] %v3098_v20  ;;  %3676 = vst [vmem:[#allocation7_spill] sm:$0xff] %v3101_v24  ;;  %v3115_v20 = vmul.f32 0.2, %v3678_v14  ;;  %v3121_v31 = vmul.f32 0.2, %v3680_v23 }
 0x281   :  { %3672 = vst [vmem:[#allocation35_spill] sm:$0xff] %v3095_v28  ;;  %v3679_v28 = vld [vmem:[#allocation22_spill] sm:$0xff]  ;;  %1104 = vst [vmem:[%s3457_s4 + $0x88] sm:$0xff] %v1040_v62  ;;  %vm957_vm1 = vcmp.ge.f32.partialorder %v3680_v23, 0.0  ;;  %v3682_v60 = vld [vmem:[#allocation24_spill] sm:$0xff]  ;;  %vm3684_vm2 = vcmp.ge.f32.partialorder %v2605_v34, 0.0  ;;  %v1045_v62 = vsel %vm917_vm6, %v2613_v40, %v2870_v45 }
 0x282   :  { %v3118_v24 = vmul.f32 0.2, %v3679_v28  ;;  %3681 = vst [vmem:[#allocation25_spill] sm:$0xff] %v3121_v31  ;;  %vm958_vm7 = vcmp.ge.f32.partialorder %v3682_v60, 0.0  ;;  %v3133_v14 = vmul.f32 0.2, %v3682_v60  ;;  %v1042_v31 = vsel %vm914_vm3, %v2601_v37, %v2854_v39 }
 0x283   :  { %v3683_v28 = vld [vmem:[#allocation27_spill] sm:$0xff]  ;;  %1105 = vst [vmem:[%s3457_s4 + $0x90] sm:$0xff] %v1041_v8  ;;  %v3686_v37 = vld [vmem:[#allocation2_spill] sm:$0xff]  ;;  %vm3687_vm3 = vcmp.ge.f32.partialorder %v2617_v49, 0.0  ;;  %vm3689_vm5 = vcmp.ge.f32.partialorder %v2625_v55, 0.0  ;;  %1106 = vst [vmem:[%s3457_s4 + $0x98] sm:$0xff] %v1042_v31 }
 0x284   :  { %v1043_v29 = vsel %vm3684_vm2, %v2605_v34, %v3683_v28  ;;  %v1046_v39 = vsel %vm3687_vm3, %v2617_v49, %v3686_v37  ;;  %vm3688_vm2 = vcmp.ge.f32.partialorder %v2621_v46, 0.0  ;;  %v1048_v43 = vsel %vm3689_vm5, %v2625_v55, %v2886_v36  ;;  %1108 = vst [vmem:[%s3457_s4 + $0xa8] sm:$0xff] %v1044_v4  ;;  %v3690_v40 = vld [vmem:[#allocation5_spill] sm:$0xff]  ;;  %1109 = vst [vmem:[%s3457_s4 + $0xb0] sm:$0xff] %v1045_v62  ;;  %v3705_v36 = vld [vmem:[#allocation16_spill] sm:$0xff] }
 0x285   :  { %v1047_v34 = vsel %vm3688_vm2, %v2621_v46, %v2883_v22  ;;  %1107 = vst [vmem:[%s3457_s4 + $0xa0] sm:$0xff] %v1043_v29  ;;  %v1049_v49 = vsel %vm921_vm8, %v2629_v52, %v3690_v40  ;;  %vm3691_vm6 = vcmp.ge.f32.partialorder %v2633_v54, 0.0  ;;  %vm3692_vm3 = vcmp.ge.f32.partialorder %v2637_v16, 0.0  ;;  %1110 = vst [vmem:[%s3457_s4 + $0xb8] sm:$0xff] %v1046_v39  ;;  %v3727_v8 = vld [vmem:[#allocation33_spill] sm:$0xff]  ;;  %v3728_v29 = vld [vmem:[#allocation8_spill] sm:$0xff] }
 0x286   :  { %v1050_v46 = vsel %vm3691_vm6, %v2633_v54, %v2899_v56  ;;  %v1051_v55 = vsel %vm3692_vm3, %v2637_v16, %v2902_v7  ;;  %vm3693_vm2 = vcmp.ge.f32.partialorder %v2641_v3, 0.0  ;;  %1111 = vst [vmem:[%s3457_s4 + $0xc0] sm:$0xff] %v1047_v34  ;;  %1112 = vst [vmem:[%s3457_s4 + $0xc8] sm:$0xff] %v1048_v43  ;;  %v1053_v52 = vsel %vm925_vm9, %v2645_v0, %v2917_v10  ;;  %v3710_v7 = vld [vmem:[#allocation29_spill] sm:$0xff]  ;;  %v3733_v37 = vld [vmem:[#allocation34_spill] sm:$0xff] }
 0x287   :  { %v1052_v42 = vsel %vm3693_vm2, %v2641_v3, %v2905_v5  ;;  %vm3694_vm8 = vcmp.ge.f32.partialorder %v2649_v9, 0.0  ;;  %vm3695_vm5 = vcmp.ge.f32.partialorder %v2653_v51, 0.0  ;;  %vm3696_vm6 = vcmp.ge.f32.partialorder %v2657_v33, 0.0  ;;  %1113 = vst [vmem:[%s3457_s4 + $0xd0] sm:$0xff] %v1049_v49  ;;  %1114 = vst [vmem:[%s3457_s4 + $0xd8] sm:$0xff] %v1050_v46  ;;  %v3712_v10 = vld [vmem:[#allocation17_spill] sm:$0xff] }
 0x288   :  { %v1054_v54 = vsel %vm3694_vm8, %v2649_v9, %v2920_v48  ;;  %v1055_v16 = vsel %vm3695_vm5, %v2653_v51, %v2923_v53  ;;  %v1056_v3 = vsel %vm3696_vm6, %v2657_v33, %v2936_v25  ;;  %1115 = vst [vmem:[%s3457_s4 + $0xe0] sm:$0xff] %v1051_v55  ;;  %1116 = vst [vmem:[%s3457_s4 + $0xe8] sm:$0xff] %v1052_v42  ;;  %v3697_v9 = vld [vmem:[#allocation10_spill] sm:$0xff]  ;;  %vm3698_vm9 = vcmp.ge.f32.partialorder %v2665_v18, 0.0  ;;  %v3717_v25 = vld [vmem:[#allocation20_spill] sm:$0xff] }
 0x289   :  { %v1057_v0 = vsel %vm929_vm10, %v2661_v1, %v2939_v2  ;;  %v1058_v51 = vsel %vm3698_vm9, %v2665_v18, %v3697_v9  ;;  %vm3699_vm3 = vcmp.ge.f32.partialorder %v2669_v19, 0.0  ;;  %vm3700_vm2 = vcmp.ge.f32.partialorder %v2673_v12, 0.0  ;;  %1117 = vst [vmem:[%s3457_s4 + $0xf0] sm:$0xff] %v1053_v52  ;;  %1118 = vst [vmem:[%s3457_s4 + $0xf8] sm:$0xff] %v1054_v54  ;;  %v3701_v1 = vld [vmem:[#allocation14_spill] sm:$0xff]  ;;  %v3734_v39 = vld [vmem:[#allocation15_spill] sm:$0xff] }
 0x28a   :  { %v1059_v33 = vsel %vm3699_vm3, %v2669_v19, %v2955_v32  ;;  %v1060_v45 = vsel %vm3700_vm2, %v2673_v12, %v2958_v50  ;;  %1119 = vst [vmem:[%s3457_s4 + $0x100] sm:$0xff] %v1055_v16  ;;  %1120 = vst [vmem:[%s3457_s4 + $0x108] sm:$0xff] %v1056_v3  ;;  %v1061_v18 = vsel %vm933_vm11, %v2677_v57, %v3701_v1  ;;  %vm3702_vm10 = vcmp.ge.f32.partialorder %v2681_v17, 0.0  ;;  %v3703_v12 = vld [vmem:[#allocation13_spill] sm:$0xff]  ;;  %v3707_v57 = vld [vmem:[#allocation26_spill] sm:$0xff] }
 0x28b   :  { %v1062_v19 = vsel %vm3702_vm10, %v2681_v17, %v2975_v44  ;;  %vm3704_vm8 = vcmp.ge.f32.partialorder %v2685_v11, 0.0  ;;  %vm3706_vm5 = vcmp.ge.f32.partialorder %v2689_v41, 0.0  ;;  %1121 = vst [vmem:[%s3457_s4 + $0x110] sm:$0xff] %v1057_v0  ;;  %1122 = vst [vmem:[%s3457_s4 + $0x118] sm:$0xff] %v1058_v51  ;;  %v1065_v17 = vsel %vm937_vm12, %v2693_v21, %v3707_v57  ;;  %v3714_v21 = vld [vmem:[#allocation18_spill] sm:$0xff]  ;;  %v3720_v32 = vld [vmem:[#allocation21_spill] sm:$0xff] }
 0x28c   :  { %v1063_v22 = vsel %vm3704_vm8, %v2685_v11, %v3703_v12  ;;  %v1064_v56 = vsel %vm3706_vm5, %v2689_v41, %v3705_v36  ;;  %1123 = vst [vmem:[%s3457_s4 + $0x120] sm:$0xff] %v1059_v33  ;;  %1124 = vst [vmem:[%s3457_s4 + $0x128] sm:$0xff] %v1060_v45  ;;  %v3708_v11 = vld [vmem:[#allocation28_spill] sm:$0xff]  ;;  %vm3709_vm11 = vcmp.ge.f32.partialorder %v2697_v6, 0.0  ;;  %vm3711_vm6 = vcmp.ge.f32.partialorder %v2701_v15, 0.0  ;;  %v3719_v50 = vld [vmem:[#allocation30_spill] sm:$0xff] }
 0x28d   :  { %v1066_v41 = vsel %vm3709_vm11, %v2697_v6, %v3708_v11  ;;  %v1067_v5 = vsel %vm3711_vm6, %v2701_v15, %v3710_v7  ;;  %vm3713_vm9 = vcmp.ge.f32.partialorder %v3649_v61, 0.0  ;;  %1125 = vst [vmem:[%s3457_s4 + $0x130] sm:$0xff] %v1061_v18  ;;  %1126 = vst [vmem:[%s3457_s4 + $0x138] sm:$0xff] %v1062_v19  ;;  %v1069_v6 = vsel %vm941_vm13, %v3651_v59, %v3714_v21  ;;  %v3715_v15 = vld [vmem:[#allocation19_spill] sm:$0xff]  ;;  %v3737_v40 = vld [vmem:[#allocation4_spill] sm:$0xff] }
 0x28e   :  { %v1068_v48 = vsel %vm3713_vm9, %v3649_v61, %v3712_v10  ;;  %1127 = vst [vmem:[%s3457_s4 + $0x140] sm:$0xff] %v1063_v22  ;;  %1128 = vst [vmem:[%s3457_s4 + $0x148] sm:$0xff] %v1064_v56  ;;  %vm3716_vm12 = vcmp.ge.f32.partialorder %v3653_v13, 0.0  ;;  %vm3718_vm3 = vcmp.ge.f32.partialorder %v3655_v38, 0.0  ;;  %vm3721_vm2 = vcmp.ge.f32.partialorder %v3720_v32, 0.0  ;;  %v3723_v59 = vld [vmem:[#allocation3_spill] sm:$0xff] }
 0x28f   :  { %v1070_v53 = vsel %vm3716_vm12, %v3653_v13, %v3715_v15  ;;  %v1071_v2 = vsel %vm3718_vm3, %v3655_v38, %v3717_v25  ;;  %v1072_v44 = vsel %vm3721_vm2, %v3720_v32, %v3719_v50  ;;  %1129 = vst [vmem:[%s3457_s4 + $0x150] sm:$0xff] %v1065_v17  ;;  %1130 = vst [vmem:[%s3457_s4 + $0x158] sm:$0xff] %v1066_v41  ;;  %v3722_v13 = vld [vmem:[#allocation31_spill] sm:$0xff]  ;;  %vm3724_vm13 = vcmp.ge.f32.partialorder %v3660_v47, 0.0  ;;  %v3725_v38 = vld [vmem:[#allocation32_spill] sm:$0xff] }
 0x290   :  { %1131 = vst [vmem:[%s3457_s4 + $0x160] sm:$0xff] %v1067_v5  ;;  %1132 = vst [vmem:[%s3457_s4 + $0x168] sm:$0xff] %v1068_v48  ;;  %v1073_v28 = vsel %vm945_vm14, %v2725_v30, %v3722_v13  ;;  %v1074_v61 = vsel %vm3724_vm13, %v3660_v47, %v3723_v59  ;;  %vm3726_vm10 = vcmp.ge.f32.partialorder %v2733_v63, 0.0  ;;  %vm3729_vm8 = vcmp.ge.f32.partialorder %v3728_v29, 0.0  ;;  %v3730_v30 = vld [vmem:[#allocation6_spill] sm:$0xff]  ;;  %v3731_v47 = vld [vmem:[#allocation11_spill] sm:$0xff] }
 0x291   :  { %v1075_v31 = vsel %vm3726_vm10, %v2733_v63, %v3725_v38  ;;  %v1076_v4 = vsel %vm3729_vm8, %v3728_v29, %v3727_v8  ;;  %1133 = vst [vmem:[%s3457_s4 + $0x170] sm:$0xff] %v1069_v6  ;;  %1134 = vst [vmem:[%s3457_s4 + $0x178] sm:$0xff] %v1070_v53  ;;  %v1077_v63 = vsel %vm949_vm15, %v3665_v58, %v3730_v30  ;;  %vm3732_vm14 = vcmp.ge.f32.partialorder %v3667_v35, 0.0  ;;  %v3736_v43 = vld [vmem:[#allocation35_spill] sm:$0xff]  ;;  %v3741_v42 = vld [vmem:[#allocation12_spill] sm:$0xff] }
 0x292   :  { %1135 = vst [vmem:[%s3457_s4 + $0x180] sm:$0xff] %v1071_v2  ;;  %1136 = vst [vmem:[%s3457_s4 + $0x188] sm:$0xff] %v1072_v44  ;;  %v1078_v62 = vsel %vm3732_vm14, %v3667_v35, %v3731_v47  ;;  %vm3735_vm5 = vcmp.ge.f32.partialorder %v3734_v39, 0.0  ;;  %vm3738_vm11 = vcmp.ge.f32.partialorder %v3737_v40, 0.0  ;;  %v3739_v35 = vld [vmem:[#allocation9_spill] sm:$0xff]  ;;  %v3740_v46 = vld [vmem:[#allocation7_spill] sm:$0xff] }
 0x293   :  { %v1079_v34 = vsel %vm3735_vm5, %v3734_v39, %v3733_v37  ;;  %v1080_v49 = vsel %vm3738_vm11, %v3737_v40, %v3736_v43  ;;  %1137 = vst [vmem:[%s3457_s4 + $0x190] sm:$0xff] %v1073_v28  ;;  %1138 = vst [vmem:[%s3457_s4 + $0x198] sm:$0xff] %v1074_v61  ;;  %v1081_v58 = vsel %vm953_vm0, %v3673_v26, %v3739_v35  ;;  %vm3742_vm15 = vcmp.ge.f32.partialorder %v3741_v42, 0.0  ;;  %v3743_v54 = vld [vmem:[#allocation22_spill] sm:$0xff] }
 0x294   :  { %1139 = vst [vmem:[%s3457_s4 + $0x1a0] sm:$0xff] %v1075_v31  ;;  %1140 = vst [vmem:[%s3457_s4 + $0x1a8] sm:$0xff] %v1076_v4  ;;  %v1082_v55 = vsel %vm954_vm4, %v3675_v27, %v3740_v46  ;;  %v1083_v52 = vsel %vm3742_vm15, %v3741_v42, %v3115_v20  ;;  %vm3744_vm6 = vcmp.ge.f32.partialorder %v3743_v54, 0.0  ;;  %v3745_v27 = vld [vmem:[#allocation25_spill] sm:$0xff]  ;;  %v1086_v26 = vsel %vm958_vm7, %v3682_v60, %v3133_v14 }
 0x295   :  { %v1084_v16 = vsel %vm3744_vm6, %v3743_v54, %v3118_v24  ;;  %1141 = vst [vmem:[%s3457_s4 + $0x1b0] sm:$0xff] %v1077_v63  ;;  %1142 = vst [vmem:[%s3457_s4 + $0x1b8] sm:$0xff] %v1078_v62  ;;  %v1085_v20 = vsel %vm957_vm1, %v3680_v23, %v3745_v27 }
 0x296   :  { %1143 = vst [vmem:[%s3457_s4 + $0x1c0] sm:$0xff] %v1079_v34  ;;  %1144 = vst [vmem:[%s3457_s4 + $0x1c8] sm:$0xff] %v1080_v49 }
 0x297   :  { %1145 = vst [vmem:[%s3457_s4 + $0x1d0] sm:$0xff] %v1081_v58  ;;  %1146 = vst [vmem:[%s3457_s4 + $0x1d8] sm:$0xff] %v1082_v55 }
 0x298   :  { %1147 = vst [vmem:[%s3457_s4 + $0x1e0] sm:$0xff] %v1083_v52  ;;  %1148 = vst [vmem:[%s3457_s4 + $0x1e8] sm:$0xff] %v1084_v16 }
 0x299   :  { %1149 = vst [vmem:[%s3457_s4 + $0x1f0] sm:$0xff] %v1085_v20  ;;  %1150 = vst [vmem:[%s3457_s4 + $0x1f8] sm:$0xff] %v1086_v26 }

// kernel: discriminator_forward.6
= control target key start
LH: loop header
LB: loop body
LE: loop exit
PB: predicated region body
PF: predicated region fallthrough
CT: control target
= control target key end

     0   :  { %s929_s1 = inlined_call_operand.vmem [shape: f32[256,128], index: 1, kind: input, shape index: {}]   ;;  %s930_s0 = inlined_call_operand.vmem [shape: f32[128,256], index: 0, kind: input, shape index: {}]   ;;  %s931_s2 = inlined_call_operand.vmem [shape: f32[1,128], index: 2, kind: input, shape index: {}]   ;;  %s932_s3 = inlined_call_operand.vmem [shape: f32[1,128], index: 3, kind: input, shape index: {}]   ;;  %s933_s4 = inlined_call_operand.vmem [shape: f32[128,128], index: 4, kind: output, shape index: {}]  }
   0x1   :  { %v65_v0 = vld [vmem:[%s929_s1 + $0x80] sm:$0xff]  ;;  %v66_v1 = vld [vmem:[%s929_s1 + $0x88] sm:$0xff]  ;;  %v67_v5 = vld [vmem:[%s929_s1 + $0x90] sm:$0xff] }
   0x2   :  { %v49_v2 = vld [vmem:[%s929_s1] sm:$0xff]  ;;  %v500_v3 = vpack.c.bf16 %v66_v1, %v65_v0  ;;  %v50_v4 = vld [vmem:[%s929_s1 + $0x8] sm:$0xff]  ;;  %v68_v6 = vld [vmem:[%s929_s1 + $0x98] sm:$0xff] }
   0x3   :  { %v502_v7 = vpack.c.bf16 %v50_v4, %v49_v2  ;;  %v504_v8 = vpack.c.bf16 %v68_v6, %v67_v5  ;;  %v51_v9 = vld [vmem:[%s929_s1 + $0x10] sm:$0xff]  ;;  %v52_v10 = vld [vmem:[%s929_s1 + $0x18] sm:$0xff]  ;;  %v69_v11 = vld [vmem:[%s929_s1 + $0xa0] sm:$0xff] }
   0x4   :  { %501 = vmatprep.subr.bf16.mxu0 %v500_v3  ;;  %v70_v12 = vld [vmem:[%s929_s1 + $0xa8] sm:$0xff]  ;;  %532 = vmatprep.subr.bf16.mxu1 %v500_v3  ;;  %v506_v13 = vpack.c.bf16 %v52_v10, %v51_v9  ;;  %v53_v15 = vld [vmem:[%s929_s1 + $0x20] sm:$0xff]  ;;  %v71_v17 = vld [vmem:[%s929_s1 + $0xb0] sm:$0xff] }
   0x5   :  { %503 = vmatpush3.bf16.msra.mxu0 %v502_v7  ;;  %540 = vmatpush3.bf16.msra.mxu1 %v502_v7  ;;  %v508_v14 = vpack.c.bf16 %v70_v12, %v69_v11  ;;  %v54_v16 = vld [vmem:[%s929_s1 + $0x28] sm:$0xff]  ;;  %v72_v18 = vld [vmem:[%s929_s1 + $0xb8] sm:$0xff]  ;;  %v55_v21 = vld [vmem:[%s929_s1 + $0x30] sm:$0xff] }
   0x6   :  { %505 = vmatprep.subr.bf16.mxu0 %v504_v8  ;;  %533 = vmatprep.subr.bf16.mxu1 %v504_v8  ;;  %v510_v19 = vpack.c.bf16 %v54_v16, %v53_v15  ;;  %v512_v20 = vpack.c.bf16 %v72_v18, %v71_v17  ;;  %v56_v22 = vld [vmem:[%s929_s1 + $0x38] sm:$0xff]  ;;  %v73_v23 = vld [vmem:[%s929_s1 + $0xc0] sm:$0xff]  ;;  %v74_v24 = vld [vmem:[%s929_s1 + $0xc8] sm:$0xff] }
   0x7   :  { %v18_v25 = vld [vmem:[%s930_s0 + $0x8] sm:$0xff]  ;;  %v514_v26 = vpack.c.bf16 %v56_v22, %v55_v21  ;;  %v516_v27 = vpack.c.bf16 %v74_v24, %v73_v23  ;;  %v57_v28 = vld [vmem:[%s929_s1 + $0x40] sm:$0xff]  ;;  %v75_v31 = vld [vmem:[%s929_s1 + $0xd0] sm:$0xff] }
   0x8   :  { %145 = vmatprep.mubr.f32.mxu0 %v18_v25  ;;  %v58_v29 = vld [vmem:[%s929_s1 + $0x48] sm:$0xff]  ;;  %v76_v32 = vld [vmem:[%s929_s1 + $0xd8] sm:$0xff]  ;;  %v59_v35 = vld [vmem:[%s929_s1 + $0x50] sm:$0xff] }
   0x9   :  { %507 = vmatpush3.bf16.msra.mxu0 %v506_v13  ;;  %541 = vmatpush3.bf16.msra.mxu1 %v506_v13  ;;  %v34_v30 = vld [vmem:[%s930_s0 + $0x88] sm:$0xff]  ;;  %v518_v33 = vpack.c.bf16 %v58_v29, %v57_v28  ;;  %v520_v34 = vpack.c.bf16 %v76_v32, %v75_v31  ;;  %v60_v36 = vld [vmem:[%s929_s1 + $0x58] sm:$0xff]  ;;  %v77_v37 = vld [vmem:[%s929_s1 + $0xe0] sm:$0xff] }
   0xa   :  { %509 = vmatprep.subr.bf16.mxu0 %v508_v14  ;;  %534 = vmatprep.subr.bf16.mxu1 %v508_v14  ;;  %v78_v38 = vld [vmem:[%s929_s1 + $0xe8] sm:$0xff]  ;;  %v522_v39 = vpack.c.bf16 %v60_v36, %v59_v35  ;;  %v61_v41 = vld [vmem:[%s929_s1 + $0x60] sm:$0xff]  ;;  %v79_v43 = vld [vmem:[%s929_s1 + $0xf0] sm:$0xff] }
   0xb   :  { %185 = vmatprep.mubr.f32.mxu1 %v34_v30  ;;  %v524_v40 = vpack.c.bf16 %v78_v38, %v77_v37  ;;  %v62_v42 = vld [vmem:[%s929_s1 + $0x68] sm:$0xff]  ;;  %v80_v44 = vld [vmem:[%s929_s1 + $0xf8] sm:$0xff]  ;;  %v63_v47 = vld [vmem:[%s929_s1 + $0x70] sm:$0xff] }
   0xc   :  { %v526_v45 = vpack.c.bf16 %v62_v42, %v61_v41  ;;  %v528_v46 = vpack.c.bf16 %v80_v44, %v79_v43  ;;  %v64_v48 = vld [vmem:[%s929_s1 + $0x78] sm:$0xff]  ;;  %v17_v50 = vld [vmem:[%s930_s0] sm:$0xff]  ;;  %v19_v54 = vld [vmem:[%s930_s0 + $0x10] sm:$0xff] }
   0xd   :  { %511 = vmatpush3.bf16.msra.mxu0 %v510_v19  ;;  %542 = vmatpush3.bf16.msra.mxu1 %v510_v19  ;;  %v530_v49 = vpack.c.bf16 %v64_v48, %v63_v47  ;;  %v33_v51 = vld [vmem:[%s930_s0 + $0x80] sm:$0xff]  ;;  %v20_v52 = vld [vmem:[%s930_s0 + $0x18] sm:$0xff]  ;;  %v35_v55 = vld [vmem:[%s930_s0 + $0x90] sm:$0xff] }
   0xe   :  { %513 = vmatprep.subr.bf16.mxu0 %v512_v20  ;;  %535 = vmatprep.subr.bf16.mxu1 %v512_v20  ;;  %v36_v53 = vld [vmem:[%s930_s0 + $0x98] sm:$0xff]  ;;  %v22_v56 = vld [vmem:[%s930_s0 + $0x28] sm:$0xff]  ;;  %v21_v58 = vld [vmem:[%s930_s0 + $0x20] sm:$0xff] }
   0xf   :  { %v38_v57 = vld [vmem:[%s930_s0 + $0xa8] sm:$0xff]  ;;  %v37_v59 = vld [vmem:[%s930_s0 + $0xa0] sm:$0xff]  ;;  %v24_v60 = vld [vmem:[%s930_s0 + $0x38] sm:$0xff] }
  0x10   :  { %v40_v61 = vld [vmem:[%s930_s0 + $0xb8] sm:$0xff]  ;;  %v23_v62 = vld [vmem:[%s930_s0 + $0x30] sm:$0xff]  ;;  %v26_v0 = vld [vmem:[%s930_s0 + $0x48] sm:$0xff] }
  0x11   :  { %515 = vmatpush3.bf16.msra.mxu0 %v514_v26  ;;  %543 = vmatpush3.bf16.msra.mxu1 %v514_v26  ;;  %v39_v63 = vld [vmem:[%s930_s0 + $0xb0] sm:$0xff]  ;;  %v42_v1 = vld [vmem:[%s930_s0 + $0xc8] sm:$0xff]  ;;  %v25_v2 = vld [vmem:[%s930_s0 + $0x40] sm:$0xff] }
  0x12   :  { %517 = vmatprep.subr.bf16.mxu0 %v516_v27  ;;  %536 = vmatprep.subr.bf16.mxu1 %v516_v27  ;;  %v41_v3 = vld [vmem:[%s930_s0 + $0xc0] sm:$0xff]  ;;  %v28_v4 = vld [vmem:[%s930_s0 + $0x58] sm:$0xff]  ;;  %v27_v6 = vld [vmem:[%s930_s0 + $0x50] sm:$0xff] }
  0x13   :  { %v44_v5 = vld [vmem:[%s930_s0 + $0xd8] sm:$0xff]  ;;  %v43_v7 = vld [vmem:[%s930_s0 + $0xd0] sm:$0xff]  ;;  %v30_v8 = vld [vmem:[%s930_s0 + $0x68] sm:$0xff] }
  0x14   :  { %v46_v9 = vld [vmem:[%s930_s0 + $0xe8] sm:$0xff]  ;;  %v29_v10 = vld [vmem:[%s930_s0 + $0x60] sm:$0xff]  ;;  %v32_v12 = vld [vmem:[%s930_s0 + $0x78] sm:$0xff] }
  0x15   :  { %519 = vmatpush3.bf16.msra.mxu0 %v518_v33  ;;  %544 = vmatpush3.bf16.msra.mxu1 %v518_v33  ;;  %v45_v11 = vld [vmem:[%s930_s0 + $0xe0] sm:$0xff]  ;;  %v48_v13 = vld [vmem:[%s930_s0 + $0xf8] sm:$0xff]  ;;  %v31_v14 = vld [vmem:[%s930_s0 + $0x70] sm:$0xff] }
  0x16   :  { %521 = vmatprep.subr.bf16.mxu0 %v520_v34  ;;  %537 = vmatprep.subr.bf16.mxu1 %v520_v34  ;;  %v47_v15 = vld [vmem:[%s930_s0 + $0xf0] sm:$0xff] }
  0x19   :  { %523 = vmatpush3.bf16.msra.mxu0 %v522_v39  ;;  %545 = vmatpush3.bf16.msra.mxu1 %v522_v39 }
  0x1a   :  { %525 = vmatprep.subr.bf16.mxu0 %v524_v40  ;;  %538 = vmatprep.subr.bf16.mxu1 %v524_v40 }
  0x1d   :  { %527 = vmatpush3.bf16.msra.mxu0 %v526_v45  ;;  %546 = vmatpush3.bf16.msra.mxu1 %v526_v45 }
  0x1e   :  { %529 = vmatprep.subr.bf16.mxu0 %v528_v46  ;;  %539 = vmatprep.subr.bf16.mxu1 %v528_v46 }
  0x21   :  { %531 = vmatpush3.bf16.msra.mxu0 %v530_v49  ;;  %547 = vmatpush3.bf16.msra.mxu1 %v530_v49 }
  0x24   :  { %146 = vmatmul.mubr.f32.vlgmr.msra.gmra.mrb[0].mxu0 %v17_v50  ;;  %186 = vmatmul.mubr.f32.vlgmr.msra.gmra.mrb[0].mxu1 %v33_v51 }
  0x25   :  { %150 = vmatprep.mubr.f32.mxu0 %v20_v52  ;;  %190 = vmatprep.mubr.f32.mxu1 %v36_v53 }
  0x28   :  { %151 = vmatmul.mubr.f32.gmra.mrb[2].mxu0 %v19_v54  ;;  %191 = vmatmul.mubr.f32.gmra.mrb[2].mxu1 %v35_v55 }
  0x29   :  { %155 = vmatprep.mubr.f32.mxu0 %v22_v56  ;;  %195 = vmatprep.mubr.f32.mxu1 %v38_v57 }
  0x2c   :  { %156 = vmatmul.mubr.f32.gmra.mrb[4].mxu0 %v21_v58  ;;  %196 = vmatmul.mubr.f32.gmra.mrb[4].mxu1 %v37_v59 }
  0x2d   :  { %160 = vmatprep.mubr.f32.mxu0 %v24_v60  ;;  %200 = vmatprep.mubr.f32.mxu1 %v40_v61 }
  0x30   :  { %161 = vmatmul.mubr.f32.gmra.mrb[6].mxu0 %v23_v62  ;;  %201 = vmatmul.mubr.f32.gmra.mrb[6].mxu1 %v39_v63 }
  0x31   :  { %165 = vmatprep.mubr.f32.mxu0 %v26_v0  ;;  %205 = vmatprep.mubr.f32.mxu1 %v42_v1 }
  0x34   :  { %166 = vmatmul.mubr.f32.gmra.mrb[8].mxu0 %v25_v2  ;;  %206 = vmatmul.mubr.f32.gmra.mrb[8].mxu1 %v41_v3 }
  0x35   :  { %170 = vmatprep.mubr.f32.mxu0 %v28_v4  ;;  %210 = vmatprep.mubr.f32.mxu1 %v44_v5 }
  0x38   :  { %171 = vmatmul.mubr.f32.gmra.mrb[10].mxu0 %v27_v6  ;;  %211 = vmatmul.mubr.f32.gmra.mrb[10].mxu1 %v43_v7 }
  0x39   :  { %175 = vmatprep.mubr.f32.mxu0 %v30_v8  ;;  %215 = vmatprep.mubr.f32.mxu1 %v46_v9 }
  0x3c   :  { %176 = vmatmul.mubr.f32.gmra.mrb[12].mxu0 %v29_v10  ;;  %216 = vmatmul.mubr.f32.gmra.mrb[12].mxu1 %v45_v11 }
  0x3d   :  { %180 = vmatprep.mubr.f32.mxu0 %v32_v12  ;;  %220 = vmatprep.mubr.f32.mxu1 %v48_v13 }
  0x40   :  { %181 = vmatmul.mubr.f32.gmra.mrb[14].mxu0 %v31_v14  ;;  %221 = vmatmul.mubr.f32.gmra.mrb[14].mxu1 %v47_v15 }
  0xf7   :  { %v452_v16 = vpop.f32.mrb[0].mxu0  ;;  %v476_v17 = vpop.f32.mrb[0].mxu1 }
  0xf8   :  { %v453_v18 = vpop.f32.mrb[1].mxu0  ;;  %v477_v19 = vpop.f32.mrb[1].mxu1 }
  0xf9   :  { %v767_v20 = vadd.f32 %v453_v18, %v452_v16  ;;  %v769_v21 = vadd.f32 %v477_v19, %v476_v17 }
  0xfb   :  { %v455_v22 = vpop.f32.mrb[2].mxu0  ;;  %v479_v23 = vpop.f32.mrb[2].mxu1 }
  0xfc   :  { %v456_v24 = vpop.f32.mrb[3].mxu0  ;;  %v480_v25 = vpop.f32.mrb[3].mxu1 }
  0xfd   :  { %v457_v26 = vadd.f32 %v456_v24, %v455_v22  ;;  %v771_v27 = vadd.f32 %v480_v25, %v479_v23 }
  0xff   :  { %v226_v28 = vadd.f32 %v457_v26, %v767_v20  ;;  %v458_v29 = vpop.f32.mrb[4].mxu0  ;;  %v482_v30 = vpop.f32.mrb[4].mxu1 }
 0x100   :  { %v459_v31 = vpop.f32.mrb[5].mxu0  ;;  %v483_v32 = vpop.f32.mrb[5].mxu1 }
 0x101   :  { %v460_v33 = vadd.f32 %v459_v31, %v458_v29  ;;  %v484_v34 = vadd.f32 %v483_v32, %v482_v30 }
 0x103   :  { %v227_v35 = vadd.f32 %v460_v33, %v226_v28  ;;  %v461_v36 = vpop.f32.mrb[6].mxu0  ;;  %v485_v37 = vpop.f32.mrb[6].mxu1 }
 0x104   :  { %v462_v38 = vpop.f32.mrb[7].mxu0  ;;  %v486_v39 = vpop.f32.mrb[7].mxu1 }
 0x105   :  { %v463_v40 = vadd.f32 %v462_v38, %v461_v36  ;;  %v487_v41 = vadd.f32 %v486_v39, %v485_v37 }
 0x107   :  { %v228_v42 = vadd.f32 %v463_v40, %v227_v35  ;;  %v464_v43 = vpop.f32.mrb[8].mxu0  ;;  %v488_v44 = vpop.f32.mrb[8].mxu1 }
 0x108   :  { %v465_v45 = vpop.f32.mrb[9].mxu0  ;;  %v489_v46 = vpop.f32.mrb[9].mxu1 }
 0x109   :  { %v466_v47 = vadd.f32 %v465_v45, %v464_v43  ;;  %v490_v48 = vadd.f32 %v489_v46, %v488_v44 }
 0x10b   :  { %v229_v49 = vadd.f32 %v466_v47, %v228_v42  ;;  %v467_v50 = vpop.f32.mrb[10].mxu0  ;;  %v491_v51 = vpop.f32.mrb[10].mxu1 }
 0x10c   :  { %v468_v52 = vpop.f32.mrb[11].mxu0  ;;  %v492_v53 = vpop.f32.mrb[11].mxu1 }
 0x10d   :  { %v469_v54 = vadd.f32 %v468_v52, %v467_v50  ;;  %v493_v55 = vadd.f32 %v492_v53, %v491_v51 }
 0x10f   :  { %v230_v56 = vadd.f32 %v469_v54, %v229_v49  ;;  %v470_v57 = vpop.f32.mrb[12].mxu0  ;;  %v494_v58 = vpop.f32.mrb[12].mxu1 }
 0x110   :  { %v471_v59 = vpop.f32.mrb[13].mxu0  ;;  %v495_v60 = vpop.f32.mrb[13].mxu1 }
 0x111   :  { %v472_v61 = vadd.f32 %v471_v59, %v470_v57  ;;  %v496_v62 = vadd.f32 %v495_v60, %v494_v58 }
 0x113   :  { %v231_v63 = vadd.f32 %v472_v61, %v230_v56  ;;  %v473_v0 = vpop.f32.mrb[14].mxu0  ;;  %v497_v1 = vpop.f32.mrb[14].mxu1 }
 0x114   :  { %v474_v2 = vpop.f32.mrb[15].mxu0  ;;  %v498_v3 = vpop.f32.mrb[15].mxu1 }
 0x115   :  { %v475_v4 = vadd.f32 %v474_v2, %v473_v0  ;;  %v499_v5 = vadd.f32 %v498_v3, %v497_v1 }
 0x117   :  { %v232_v6 = vadd.f32 %v475_v4, %v231_v63 }
 0x119   :  { %v233_v7 = vadd.f32 %v769_v21, %v232_v6 }
 0x11b   :  { %v234_v8 = vadd.f32 %v771_v27, %v233_v7 }
 0x11d   :  { %v235_v9 = vadd.f32 %v484_v34, %v234_v8 }
 0x11f   :  { %v236_v10 = vadd.f32 %v487_v41, %v235_v9 }
 0x121   :  { %v237_v11 = vadd.f32 %v490_v48, %v236_v10 }
 0x123   :  { %v238_v12 = vadd.f32 %v493_v55, %v237_v11 }
 0x125   :  { %v239_v13 = vadd.f32 %v496_v62, %v238_v12 }
 0x127   :  { %v240_v14 = vadd.f32 %v499_v5, %v239_v13  ;;  %v307_v13 = vlaneseq }
 0x129   :  { %v241_v15 = vrot.slane %v240_v14, 4 }
 0x12b   :  { %v242_v16 = vadd.f32 %v241_v15, %v240_v14  ;;  %v308_v14 = vshrl.u32 %v307_v13, 7  ;;  %v302_v15 = vld [vmem:[%s931_s2] sm:$0x1] }
 0x12d   :  { %v243_v17 = vrot.slane %v242_v16, 2 }
 0x12f   :  { %v244_v18 = vadd.f32 %v243_v17, %v242_v16  ;;  %v309_v16 = vsub.s32 0, %v308_v14 }
 0x131   :  { %v245_v19 = vrot.slane %v244_v18, 1 }
 0x133   :  { %v246_v22 = vadd.f32 %v245_v19, %v244_v18 }
 0x135   :  { %v247_v23 = vmul.f32 0.0078125, %v246_v22 }
 0x137   :  { %v777_v24 = vsub.f32 %v767_v20, %v247_v23  ;;  %v779_v25 = vsub.f32 %v457_v26, %v247_v23  ;;  %v781_v28 = vsub.f32 %v460_v33, %v247_v23  ;;  %v783_v29 = vsub.f32 %v463_v40, %v247_v23 }
 0x138   :  { %v785_v30 = vsub.f32 %v466_v47, %v247_v23  ;;  %v787_v31 = vsub.f32 %v469_v54, %v247_v23  ;;  %v789_v32 = vsub.f32 %v472_v61, %v247_v23  ;;  %v791_v35 = vsub.f32 %v475_v4, %v247_v23 }
 0x139   :  { %v794_v36 = vsub.f32 %v769_v21, %v247_v23  ;;  %v797_v20 = vsub.f32 %v771_v27, %v247_v23  ;;  %v799_v26 = vsub.f32 %v484_v34, %v247_v23  ;;  %v801_v33 = vsub.f32 %v487_v41, %v247_v23 }
 0x13a   :  { %v803_v37 = vsub.f32 %v490_v48, %v247_v23  ;;  %v805_v38 = vsub.f32 %v493_v55, %v247_v23  ;;  %v807_v39 = vsub.f32 %v496_v62, %v247_v23  ;;  %v809_v40 = vsub.f32 %v499_v5, %v247_v23 }
 0x13b   :  { %v264_v42 = vmul.f32 %v777_v24, %v777_v24  ;;  %v265_v21 = vmul.f32 %v779_v25, %v779_v25  ;;  %v266_v27 = vmul.f32 %v781_v28, %v781_v28  ;;  %v267_v41 = vmul.f32 %v783_v29, %v783_v29 }
 0x13c   :  { %v268_v44 = vmul.f32 %v785_v30, %v785_v30  ;;  %v269_v46 = vmul.f32 %v787_v31, %v787_v31  ;;  %v270_v48 = vmul.f32 %v789_v32, %v789_v32  ;;  %v271_v50 = vmul.f32 %v791_v35, %v791_v35 }
 0x13d   :  { %v280_v34 = vadd.f32 %v265_v21, %v264_v42  ;;  %v272_v52 = vmul.f32 %v794_v36, %v794_v36  ;;  %v273_v54 = vmul.f32 %v797_v20, %v797_v20  ;;  %v274_v56 = vmul.f32 %v799_v26, %v799_v26 }
 0x13e   :  { %v275_v58 = vmul.f32 %v801_v33, %v801_v33  ;;  %v276_v60 = vmul.f32 %v803_v37, %v803_v37  ;;  %v277_v62 = vmul.f32 %v805_v38, %v805_v38  ;;  %v278_v0 = vmul.f32 %v807_v39, %v807_v39 }
 0x13f   :  { %v281_v43 = vadd.f32 %v280_v34, %v266_v27  ;;  %v279_v2 = vmul.f32 %v809_v40, %v809_v40 }
 0x141   :  { %v282_v45 = vadd.f32 %v281_v43, %v267_v41 }
 0x143   :  { %v283_v47 = vadd.f32 %v282_v45, %v268_v44  ;;  %v419_v44 = vld [vmem:[%s932_s3] ss:$0 sm:$0xff] }
 0x145   :  { %v284_v49 = vadd.f32 %v283_v47, %v269_v46 }
 0x147   :  { %v285_v51 = vadd.f32 %v284_v49, %v270_v48 }
 0x149   :  { %v286_v53 = vadd.f32 %v285_v51, %v271_v50 }
 0x14b   :  { %v287_v55 = vadd.f32 %v286_v53, %v272_v52 }
 0x14d   :  { %v288_v57 = vadd.f32 %v287_v55, %v273_v54 }
 0x14f   :  { %v289_v59 = vadd.f32 %v288_v57, %v274_v56 }
 0x151   :  { %v290_v61 = vadd.f32 %v289_v59, %v275_v58 }
 0x153   :  { %v291_v63 = vadd.f32 %v290_v61, %v276_v60 }
 0x155   :  { %v292_v1 = vadd.f32 %v291_v63, %v277_v62 }
 0x157   :  { %v293_v3 = vadd.f32 %v292_v1, %v278_v0 }
 0x159   :  { %v294_v4 = vadd.f32 %v293_v3, %v279_v2 }
 0x15b   :  { %v295_v5 = vrot.slane %v294_v4, 4 }
 0x15d   :  { %v296_v6 = vadd.f32 %v295_v5, %v294_v4 }
 0x15f   :  { %v297_v7 = vrot.slane %v296_v6, 2 }
 0x161   :  { %v298_v8 = vadd.f32 %v297_v7, %v296_v6 }
 0x163   :  { %v299_v9 = vrot.slane %v298_v8, 1 }
 0x165   :  { %v300_v10 = vadd.f32 %v299_v9, %v298_v8 }
 0x167   :  { %v301_v11 = vmul.f32 0.0078125, %v300_v10 }
 0x169   :  { %v303_v12 = vadd.f32 1e-05, %v301_v11 }
 0x16b   :  { %548 = vrsqrt.f32 %v303_v12 }
 0x175   :  { %v549_v17 = vpop.eup %548 }
 0x176   :  { %v305_v18 = vmul.f32 %v549_v17, %v302_v15 }
 0x178   :  { %v310_v19 = vrot.slane %v305_v18, %v309_v16 }
 0x17a   :  { %v312_v22 = vmul.f32 %v310_v19, %v777_v24  ;;  %v313_v23 = vmul.f32 %v310_v19, %v779_v25  ;;  %v314_v42 = vmul.f32 %v310_v19, %v781_v28  ;;  %v315_v21 = vmul.f32 %v310_v19, %v783_v29 }
 0x17b   :  { %v316_v27 = vmul.f32 %v310_v19, %v785_v30  ;;  %v317_v34 = vmul.f32 %v310_v19, %v787_v31  ;;  %v318_v41 = vmul.f32 %v310_v19, %v789_v32  ;;  %v319_v43 = vmul.f32 %v310_v19, %v791_v35 }
 0x17c   :  { %v320_v24 = vmul.f32 %v310_v19, %v794_v36  ;;  %v321_v25 = vmul.f32 %v310_v19, %v797_v20  ;;  %v322_v28 = vmul.f32 %v310_v19, %v799_v26  ;;  %v323_v29 = vmul.f32 %v310_v19, %v801_v33 }
 0x17d   :  { %v324_v30 = vmul.f32 %v310_v19, %v803_v37  ;;  %v325_v31 = vmul.f32 %v310_v19, %v805_v38  ;;  %v326_v32 = vmul.f32 %v310_v19, %v807_v39  ;;  %v327_v35 = vmul.f32 %v310_v19, %v809_v40 }
 0x17e   :  { %v335_v45 = vadd.f32 %v419_v44, %v312_v22  ;;  %v336_v46 = vadd.f32 %v419_v44, %v313_v23  ;;  %v337_v47 = vadd.f32 %v419_v44, %v314_v42  ;;  %v338_v48 = vadd.f32 %v419_v44, %v315_v21 }
 0x17f   :  { %v339_v49 = vadd.f32 %v419_v44, %v316_v27  ;;  %v340_v36 = vadd.f32 %v419_v44, %v317_v34  ;;  %v341_v50 = vadd.f32 %v419_v44, %v318_v41  ;;  %v342_v20 = vadd.f32 %v419_v44, %v319_v43 }
 0x180   :  { %v343_v51 = vadd.f32 %v419_v44, %v320_v24  ;;  %v344_v26 = vadd.f32 %v419_v44, %v321_v25  ;;  %v345_v52 = vadd.f32 %v419_v44, %v322_v28  ;;  %v346_v33 = vadd.f32 %v419_v44, %v323_v29 }
 0x181   :  { %v347_v53 = vadd.f32 %v419_v44, %v324_v30  ;;  %v348_v37 = vadd.f32 %v419_v44, %v325_v31  ;;  %v349_v54 = vadd.f32 %v419_v44, %v326_v32  ;;  %v350_v38 = vadd.f32 %v419_v44, %v327_v35 }
 0x182   :  { %vm351_vm0 = vcmp.ge.f32.partialorder %v335_v45, 0.0  ;;  %vm352_vm1 = vcmp.ge.f32.partialorder %v336_v46, 0.0  ;;  %vm353_vm2 = vcmp.ge.f32.partialorder %v337_v47, 0.0  ;;  %vm354_vm3 = vcmp.ge.f32.partialorder %v338_v48, 0.0 }
 0x183   :  { %vm355_vm4 = vcmp.ge.f32.partialorder %v339_v49, 0.0  ;;  %vm356_vm5 = vcmp.ge.f32.partialorder %v340_v36, 0.0  ;;  %vm357_vm6 = vcmp.ge.f32.partialorder %v341_v50, 0.0  ;;  %vm358_vm7 = vcmp.ge.f32.partialorder %v342_v20, 0.0 }
 0x184   :  { %vm359_vm8 = vcmp.ge.f32.partialorder %v343_v51, 0.0  ;;  %vm360_vm9 = vcmp.ge.f32.partialorder %v344_v26, 0.0  ;;  %vm361_vm10 = vcmp.ge.f32.partialorder %v345_v52, 0.0  ;;  %vm362_vm11 = vcmp.ge.f32.partialorder %v346_v33, 0.0 }
 0x185   :  { %vm363_vm12 = vcmp.ge.f32.partialorder %v347_v53, 0.0  ;;  %vm364_vm13 = vcmp.ge.f32.partialorder %v348_v37, 0.0  ;;  %vm365_vm14 = vcmp.ge.f32.partialorder %v349_v54, 0.0  ;;  %vm366_vm15 = vcmp.ge.f32.partialorder %v350_v38, 0.0 }
 0x186   :  { %v367_v39 = vmul.f32 0.2, %v335_v45  ;;  %v368_v40 = vmul.f32 0.2, %v336_v46  ;;  %v369_v55 = vmul.f32 0.2, %v337_v47 }
 0x187   :  { %v370_v56 = vmul.f32 0.2, %v338_v48  ;;  %v371_v57 = vmul.f32 0.2, %v339_v49  ;;  %v372_v58 = vmul.f32 0.2, %v340_v36 }
 0x188   :  { %v373_v59 = vmul.f32 0.2, %v341_v50  ;;  %v374_v60 = vmul.f32 0.2, %v342_v20  ;;  %v375_v61 = vmul.f32 0.2, %v343_v51  ;;  %v383_v62 = vsel %vm351_vm0, %v335_v45, %v367_v39 }
 0x189   :  { %v376_v63 = vmul.f32 0.2, %v344_v26  ;;  %v377_v0 = vmul.f32 0.2, %v345_v52  ;;  %v378_v1 = vmul.f32 0.2, %v346_v33  ;;  %v384_v2 = vsel %vm352_vm1, %v336_v46, %v368_v40  ;;  %399 = vst [vmem:[%s933_s4] sm:$0xff] %v383_v62 }
 0x18a   :  { %v379_v3 = vmul.f32 0.2, %v347_v53  ;;  %v380_v4 = vmul.f32 0.2, %v348_v37  ;;  %v381_v5 = vmul.f32 0.2, %v349_v54  ;;  %v385_v6 = vsel %vm353_vm2, %v337_v47, %v369_v55 }
 0x18b   :  { %400 = vst [vmem:[%s933_s4 + $0x8] sm:$0xff] %v384_v2  ;;  %v382_v7 = vmul.f32 0.2, %v350_v38  ;;  %v386_v8 = vsel %vm354_vm3, %v338_v48, %v370_v56  ;;  %v387_v9 = vsel %vm355_vm4, %v339_v49, %v371_v57  ;;  %v388_v10 = vsel %vm356_vm5, %v340_v36, %v372_v58  ;;  %401 = vst [vmem:[%s933_s4 + $0x10] sm:$0xff] %v385_v6 }
 0x18c   :  { %v389_v11 = vsel %vm357_vm6, %v341_v50, %v373_v59  ;;  %v390_v12 = vsel %vm358_vm7, %v342_v20, %v374_v60  ;;  %v391_v13 = vsel %vm359_vm8, %v343_v51, %v375_v61  ;;  %v392_v14 = vsel %vm360_vm9, %v344_v26, %v376_v63  ;;  %402 = vst [vmem:[%s933_s4 + $0x18] sm:$0xff] %v386_v8 }
 0x18d   :  { %403 = vst [vmem:[%s933_s4 + $0x20] sm:$0xff] %v387_v9  ;;  %404 = vst [vmem:[%s933_s4 + $0x28] sm:$0xff] %v388_v10  ;;  %v393_v15 = vsel %vm361_vm10, %v345_v52, %v377_v0  ;;  %v394_v16 = vsel %vm362_vm11, %v346_v33, %v378_v1  ;;  %v395_v17 = vsel %vm363_vm12, %v347_v53, %v379_v3 }
 0x18e   :  { %v396_v18 = vsel %vm364_vm13, %v348_v37, %v380_v4  ;;  %405 = vst [vmem:[%s933_s4 + $0x30] sm:$0xff] %v389_v11  ;;  %406 = vst [vmem:[%s933_s4 + $0x38] sm:$0xff] %v390_v12  ;;  %v397_v19 = vsel %vm365_vm14, %v349_v54, %v381_v5  ;;  %v398_v22 = vsel %vm366_vm15, %v350_v38, %v382_v7 }
 0x18f   :  { %407 = vst [vmem:[%s933_s4 + $0x40] sm:$0xff] %v391_v13  ;;  %408 = vst [vmem:[%s933_s4 + $0x48] sm:$0xff] %v392_v14 }
 0x190   :  { %409 = vst [vmem:[%s933_s4 + $0x50] sm:$0xff] %v393_v15  ;;  %410 = vst [vmem:[%s933_s4 + $0x58] sm:$0xff] %v394_v16 }
 0x191   :  { %411 = vst [vmem:[%s933_s4 + $0x60] sm:$0xff] %v395_v17  ;;  %412 = vst [vmem:[%s933_s4 + $0x68] sm:$0xff] %v396_v18 }
 0x192   :  { %413 = vst [vmem:[%s933_s4 + $0x70] sm:$0xff] %v397_v19  ;;  %414 = vst [vmem:[%s933_s4 + $0x78] sm:$0xff] %v398_v22 }

// kernel: discriminator_forward.7
= control target key start
LH: loop header
LB: loop body
LE: loop exit
PB: predicated region body
PF: predicated region fallthrough
CT: control target
= control target key end

     0   :  { %vm628_vm0 = vmmov 0   ;;  %vm350_vm5 = vcmask 261120   ;;  %vm424_vm6 = vcmask 1041408   ;;  %vm436_vm7 = vcmask 1024   ;;  %s939_s1 = inlined_call_operand.vmem [shape: f32[512,128], index: 1, kind: input, shape index: {}]   ;;  %s940_s0 = inlined_call_operand.vmem [shape: f32[32,512], index: 0, kind: input, shape index: {}]   ;;  %s941_s2 = inlined_call_operand.vmem [shape: f32[1,128], index: 2, kind: input, shape index: {}]   ;;  %s942_s3 = inlined_call_operand.vmem [shape: f32[1,128], index: 3, kind: input, shape index: {}]   ;;  %s943_s4 = inlined_call_operand.vmem [shape: f32[32,128], index: 4, kind: input, shape index: {}]   ;;  %s944_s5 = inlined_call_operand.vmem [shape: f32[2,32], index: 5, kind: input, shape index: {}]   ;;  %s945_s6 = inlined_call_operand.vmem [shape: f32[2,1], index: 6, kind: input, shape index: {}]   ;;  %s946_s7 = inlined_call_operand.vmem [shape: f32[2,1], index: 7, kind: output, shape index: {}]  }
   0x1   :  { %v58_v0 = vld [vmem:[%s939_s1 + $0x80] sm:$0xff]  ;;  %v59_v1 = vld [vmem:[%s939_s1 + $0x88] sm:$0xff]  ;;  %v60_v11 = vld [vmem:[%s939_s1 + $0x90] sm:$0xff] }
   0x2   :  { %v90_v2 = vld [vmem:[%s939_s1 + $0x180] sm:$0xff]  ;;  %v548_v3 = vpack.c.bf16 %v59_v1, %v58_v0  ;;  %v91_v4 = vld [vmem:[%s939_s1 + $0x188] sm:$0xff]  ;;  %v61_v13 = vld [vmem:[%s939_s1 + $0x98] sm:$0xff] }
   0x3   :  { %v42_v5 = vld [vmem:[%s939_s1] sm:$0xff]  ;;  %v43_v6 = vld [vmem:[%s939_s1 + $0x8] sm:$0xff]  ;;  %v580_v7 = vpack.c.bf16 %v91_v4, %v90_v2  ;;  %v92_v14 = vld [vmem:[%s939_s1 + $0x190] sm:$0xff]  ;;  %v552_v16 = vpack.c.bf16 %v61_v13, %v60_v11 }
   0x4   :  { %v550_v8 = vpack.c.bf16 %v43_v6, %v42_v5  ;;  %v74_v9 = vld [vmem:[%s939_s1 + $0x100] sm:$0xff]  ;;  %v75_v10 = vld [vmem:[%s939_s1 + $0x108] sm:$0xff]  ;;  %549 = vmatprep.subr.bf16.mxu0 %v548_v3  ;;  %v93_v15 = vld [vmem:[%s939_s1 + $0x198] sm:$0xff] }
   0x5   :  { %v582_v12 = vpack.c.bf16 %v75_v10, %v74_v9  ;;  %581 = vmatprep.subr.bf16.mxu1 %v580_v7  ;;  %v584_v17 = vpack.c.bf16 %v93_v15, %v92_v14  ;;  %v44_v18 = vld [vmem:[%s939_s1 + $0x10] sm:$0xff]  ;;  %v45_v19 = vld [vmem:[%s939_s1 + $0x18] sm:$0xff]  ;;  %v62_v23 = vld [vmem:[%s939_s1 + $0xa0] sm:$0xff] }
   0x6   :  { %551 = vmatpush3.bf16.msra.mxu0 %v550_v8  ;;  %v76_v20 = vld [vmem:[%s939_s1 + $0x110] sm:$0xff]  ;;  %v554_v21 = vpack.c.bf16 %v45_v19, %v44_v18  ;;  %v77_v22 = vld [vmem:[%s939_s1 + $0x118] sm:$0xff]  ;;  %v63_v24 = vld [vmem:[%s939_s1 + $0xa8] sm:$0xff] }
   0x7   :  { %583 = vmatpush3.bf16.msra.mxu1 %v582_v12  ;;  %553 = vmatprep.subr.bf16.mxu0 %v552_v16  ;;  %v586_v25 = vpack.c.bf16 %v77_v22, %v76_v20  ;;  %v556_v26 = vpack.c.bf16 %v63_v24, %v62_v23  ;;  %v94_v27 = vld [vmem:[%s939_s1 + $0x1a0] sm:$0xff]  ;;  %v95_v28 = vld [vmem:[%s939_s1 + $0x1a8] sm:$0xff]  ;;  %v64_v35 = vld [vmem:[%s939_s1 + $0xb0] sm:$0xff] }
   0x8   :  { %585 = vmatprep.subr.bf16.mxu1 %v584_v17  ;;  %v46_v29 = vld [vmem:[%s939_s1 + $0x20] sm:$0xff]  ;;  %v588_v30 = vpack.c.bf16 %v95_v28, %v94_v27  ;;  %v47_v31 = vld [vmem:[%s939_s1 + $0x28] sm:$0xff]  ;;  %v65_v36 = vld [vmem:[%s939_s1 + $0xb8] sm:$0xff] }
   0x9   :  { %v78_v32 = vld [vmem:[%s939_s1 + $0x120] sm:$0xff]  ;;  %v79_v33 = vld [vmem:[%s939_s1 + $0x128] sm:$0xff]  ;;  %v558_v34 = vpack.c.bf16 %v47_v31, %v46_v29  ;;  %v96_v37 = vld [vmem:[%s939_s1 + $0x1b0] sm:$0xff]  ;;  %v560_v39 = vpack.c.bf16 %v65_v36, %v64_v35 }
   0xa   :  { %555 = vmatpush3.bf16.msra.mxu0 %v554_v21  ;;  %v590_v38 = vpack.c.bf16 %v79_v33, %v78_v32  ;;  %v97_v40 = vld [vmem:[%s939_s1 + $0x1b8] sm:$0xff]  ;;  %v48_v41 = vld [vmem:[%s939_s1 + $0x30] sm:$0xff]  ;;  %v66_v46 = vld [vmem:[%s939_s1 + $0xc0] sm:$0xff] }
   0xb   :  { %587 = vmatpush3.bf16.msra.mxu1 %v586_v25  ;;  %557 = vmatprep.subr.bf16.mxu0 %v556_v26  ;;  %v49_v42 = vld [vmem:[%s939_s1 + $0x38] sm:$0xff]  ;;  %v592_v43 = vpack.c.bf16 %v97_v40, %v96_v37  ;;  %v80_v44 = vld [vmem:[%s939_s1 + $0x130] sm:$0xff]  ;;  %v67_v47 = vld [vmem:[%s939_s1 + $0xc8] sm:$0xff] }
   0xc   :  { %589 = vmatprep.subr.bf16.mxu1 %v588_v30  ;;  %v81_v45 = vld [vmem:[%s939_s1 + $0x138] sm:$0xff]  ;;  %v98_v48 = vld [vmem:[%s939_s1 + $0x1c0] sm:$0xff]  ;;  %v99_v49 = vld [vmem:[%s939_s1 + $0x1c8] sm:$0xff]  ;;  %v562_v50 = vpack.c.bf16 %v49_v42, %v48_v41  ;;  %v564_v52 = vpack.c.bf16 %v67_v47, %v66_v46 }
   0xd   :  { %v594_v51 = vpack.c.bf16 %v81_v45, %v80_v44  ;;  %v50_v53 = vld [vmem:[%s939_s1 + $0x40] sm:$0xff]  ;;  %v51_v54 = vld [vmem:[%s939_s1 + $0x48] sm:$0xff]  ;;  %v596_v56 = vpack.c.bf16 %v99_v49, %v98_v48  ;;  %v68_v58 = vld [vmem:[%s939_s1 + $0xd0] sm:$0xff]  ;;  %v627_v48 = vmov 0.0|0.0   ;;  %v629_v49 = vmov 0.0  }
   0xe   :  { %559 = vmatpush3.bf16.msra.mxu0 %v558_v34  ;;  %v82_v55 = vld [vmem:[%s939_s1 + $0x140] sm:$0xff]  ;;  %v83_v57 = vld [vmem:[%s939_s1 + $0x148] sm:$0xff]  ;;  %v69_v59 = vld [vmem:[%s939_s1 + $0xd8] sm:$0xff]  ;;  %v566_v62 = vpack.c.bf16 %v51_v54, %v50_v53 }
   0xf   :  { %591 = vmatpush3.bf16.msra.mxu1 %v590_v38  ;;  %561 = vmatprep.subr.bf16.mxu0 %v560_v39  ;;  %v100_v60 = vld [vmem:[%s939_s1 + $0x1d0] sm:$0xff]  ;;  %v101_v61 = vld [vmem:[%s939_s1 + $0x1d8] sm:$0xff]  ;;  %v598_v63 = vpack.c.bf16 %v83_v57, %v82_v55  ;;  %v568_v0 = vpack.c.bf16 %v69_v59, %v68_v58  ;;  %v70_v6 = vld [vmem:[%s939_s1 + $0xe0] sm:$0xff] }
  0x10   :  { %593 = vmatprep.subr.bf16.mxu1 %v592_v43  ;;  %v52_v1 = vld [vmem:[%s939_s1 + $0x50] sm:$0xff]  ;;  %v53_v2 = vld [vmem:[%s939_s1 + $0x58] sm:$0xff]  ;;  %v600_v4 = vpack.c.bf16 %v101_v61, %v100_v60  ;;  %v71_v7 = vld [vmem:[%s939_s1 + $0xe8] sm:$0xff] }
  0x11   :  { %v84_v3 = vld [vmem:[%s939_s1 + $0x150] sm:$0xff]  ;;  %v85_v5 = vld [vmem:[%s939_s1 + $0x158] sm:$0xff]  ;;  %v102_v8 = vld [vmem:[%s939_s1 + $0x1e0] sm:$0xff]  ;;  %v570_v10 = vpack.c.bf16 %v53_v2, %v52_v1  ;;  %v572_v14 = vpack.c.bf16 %v71_v7, %v70_v6 }
  0x12   :  { %563 = vmatpush3.bf16.msra.mxu0 %v562_v50  ;;  %v103_v9 = vld [vmem:[%s939_s1 + $0x1e8] sm:$0xff]  ;;  %v54_v11 = vld [vmem:[%s939_s1 + $0x60] sm:$0xff]  ;;  %v602_v13 = vpack.c.bf16 %v85_v5, %v84_v3  ;;  %v29_v17 = vld [vmem:[%s940_s0 + $0x18] sm:$0xff] }
  0x13   :  { %595 = vmatpush3.bf16.msra.mxu1 %v594_v51  ;;  %565 = vmatprep.subr.bf16.mxu0 %v564_v52  ;;  %v55_v12 = vld [vmem:[%s939_s1 + $0x68] sm:$0xff]  ;;  %v86_v15 = vld [vmem:[%s939_s1 + $0x160] sm:$0xff]  ;;  %v604_v18 = vpack.c.bf16 %v103_v9, %v102_v8  ;;  %v72_v20 = vld [vmem:[%s939_s1 + $0xf0] sm:$0xff] }
  0x14   :  { %597 = vmatprep.subr.bf16.mxu1 %v596_v56  ;;  %v27_v16 = vld [vmem:[%s940_s0 + $0x8] sm:$0xff]  ;;  %v73_v21 = vld [vmem:[%s939_s1 + $0xf8] sm:$0xff]  ;;  %v104_v22 = vld [vmem:[%s939_s1 + $0x1f0] sm:$0xff]  ;;  %255 = vmatprep.mubr.f32.mxu1 %v29_v17  ;;  %v574_v24 = vpack.c.bf16 %v55_v12, %v54_v11 }
  0x15   :  { %v87_v19 = vld [vmem:[%s939_s1 + $0x168] sm:$0xff]  ;;  %170 = vmatprep.mubr.f32.mxu0 %v27_v16  ;;  %v105_v23 = vld [vmem:[%s939_s1 + $0x1f8] sm:$0xff]  ;;  %v576_v26 = vpack.c.bf16 %v73_v21, %v72_v20  ;;  %v56_v27 = vld [vmem:[%s939_s1 + $0x70] sm:$0xff] }
  0x16   :  { %567 = vmatpush3.bf16.msra.mxu0 %v566_v62  ;;  %v606_v25 = vpack.c.bf16 %v87_v19, %v86_v15  ;;  %v57_v28 = vld [vmem:[%s939_s1 + $0x78] sm:$0xff]  ;;  %v608_v29 = vpack.c.bf16 %v105_v23, %v104_v22  ;;  %v88_v30 = vld [vmem:[%s939_s1 + $0x170] sm:$0xff]  ;;  %v26_v34 = vld [vmem:[%s940_s0] sm:$0xff] }
  0x17   :  { %599 = vmatpush3.bf16.msra.mxu1 %v598_v63  ;;  %569 = vmatprep.subr.bf16.mxu0 %v568_v0  ;;  %v89_v31 = vld [vmem:[%s939_s1 + $0x178] sm:$0xff]  ;;  %v578_v32 = vpack.c.bf16 %v57_v28, %v56_v27  ;;  %v28_v35 = vld [vmem:[%s940_s0 + $0x10] sm:$0xff]  ;;  %v31_v36 = vld [vmem:[%s940_s0 + $0x28] sm:$0xff] }
  0x18   :  { %601 = vmatprep.subr.bf16.mxu1 %v600_v4  ;;  %v610_v33 = vpack.c.bf16 %v89_v31, %v88_v30  ;;  %v33_v37 = vld [vmem:[%s940_s0 + $0x38] sm:$0xff]  ;;  %v30_v38 = vld [vmem:[%s940_s0 + $0x20] sm:$0xff]  ;;  %v32_v39 = vld [vmem:[%s940_s0 + $0x30] sm:$0xff] }
  0x19   :  { %v35_v40 = vld [vmem:[%s940_s0 + $0x48] sm:$0xff]  ;;  %v37_v41 = vld [vmem:[%s940_s0 + $0x58] sm:$0xff]  ;;  %v34_v42 = vld [vmem:[%s940_s0 + $0x40] sm:$0xff] }
  0x1a   :  { %571 = vmatpush3.bf16.msra.mxu0 %v570_v10  ;;  %v36_v43 = vld [vmem:[%s940_s0 + $0x50] sm:$0xff]  ;;  %v39_v44 = vld [vmem:[%s940_s0 + $0x68] sm:$0xff]  ;;  %v41_v45 = vld [vmem:[%s940_s0 + $0x78] sm:$0xff] }
  0x1b   :  { %603 = vmatpush3.bf16.msra.mxu1 %v602_v13  ;;  %573 = vmatprep.subr.bf16.mxu0 %v572_v14  ;;  %v38_v46 = vld [vmem:[%s940_s0 + $0x60] sm:$0xff]  ;;  %v40_v47 = vld [vmem:[%s940_s0 + $0x70] sm:$0xff] }
  0x1c   :  { %605 = vmatprep.subr.bf16.mxu1 %v604_v18 }
  0x1e   :  { %575 = vmatpush3.bf16.msra.mxu0 %v574_v24 }
  0x1f   :  { %607 = vmatpush3.bf16.msra.mxu1 %v606_v25  ;;  %577 = vmatprep.subr.bf16.mxu0 %v576_v26 }
  0x20   :  { %609 = vmatprep.subr.bf16.mxu1 %v608_v29 }
  0x22   :  { %579 = vmatpush3.bf16.msra.mxu0 %v578_v32 }
  0x23   :  { %611 = vmatpush3.bf16.msra.mxu1 %v610_v33  ;;  %612 = vmatprep.subr.bf16.mxu0 %v627_v48 }
  0x25   :  { %171 = vmatmul.mubr.f32.vlgmr.msra.gmra.mrb[0].mxu0 %v26_v34 }
  0x26   :  { %256 = vmatmul.mubr.f32.vlgmr.msra.gmra.mrb[0].mxu1 %v28_v35  ;;  %175 = vmatprep.mubr.f32.mxu0 %v31_v36 }
  0x27   :  { %260 = vmatprep.mubr.f32.mxu1 %v33_v37 }
  0x29   :  { %176 = vmatmul.mubr.f32.gmra.mrb[2].mxu0 %v30_v38 }
  0x2a   :  { %261 = vmatmul.mubr.f32.gmra.mrb[2].mxu1 %v32_v39  ;;  %180 = vmatprep.mubr.f32.mxu0 %v35_v40 }
  0x2b   :  { %265 = vmatprep.mubr.f32.mxu1 %v37_v41 }
  0x2d   :  { %181 = vmatmul.mubr.f32.gmra.mrb[4].mxu0 %v34_v42 }
  0x2e   :  { %266 = vmatmul.mubr.f32.gmra.mrb[4].mxu1 %v36_v43  ;;  %185 = vmatprep.mubr.f32.mxu0 %v39_v44  ;;  %v309_v43 = vlaneseq }
  0x2f   :  { %270 = vmatprep.mubr.f32.mxu1 %v41_v45  ;;  %v304_v45 = vld [vmem:[%s941_s2] sm:$0x1] }
  0x30   :  { %v310_v44 = vshrl.u32 %v309_v43, 7 }
  0x31   :  { %186 = vmatmul.mubr.f32.gmra.mrb[6].mxu0 %v38_v46 }
  0x32   :  { %271 = vmatmul.mubr.f32.gmra.mrb[6].mxu1 %v40_v47  ;;  %545 = vmatprep.mubr.msk.f32.mxu0 %vm628_vm0, %v629_v49  ;;  %v311_v46 = vsub.s32 0, %v310_v44 }
  0xf8   :  { %v476_v50 = vpop.f32.mrb[0].mxu0 }
  0xf9   :  { %v520_v51 = vpop.f32.mrb[0].mxu1  ;;  %v477_v52 = vpop.f32.mrb[1].mxu0 }
  0xfa   :  { %v478_v53 = vadd.f32 %v477_v52, %v476_v50  ;;  %v521_v54 = vpop.f32.mrb[1].mxu1 }
  0xfb   :  { %v522_v55 = vadd.f32 %v521_v54, %v520_v51  ;;  %v442_v51 = vld [vmem:[%s942_s3] ss:$0 sm:$0xff] }
  0xfc   :  { %v479_v56 = vpop.f32.mrb[2].mxu0 }
  0xfd   :  { %v258_v57 = vadd.f32 %v522_v55, %v478_v53  ;;  %v523_v58 = vpop.f32.mrb[2].mxu1  ;;  %v480_v59 = vpop.f32.mrb[3].mxu0 }
  0xfe   :  { %v481_v60 = vadd.f32 %v480_v59, %v479_v56  ;;  %v524_v61 = vpop.f32.mrb[3].mxu1  ;;  %v342_v59 = vld [vmem:[%s943_s4] sm:$0xff] }
  0xff   :  { %v525_v62 = vadd.f32 %v524_v61, %v523_v58  ;;  %v343_v61 = vld [vmem:[%s943_s4 + $0x8] sm:$0xff] }
 0x100   :  { %v482_v63 = vpop.f32.mrb[4].mxu0 }
 0x101   :  { %v263_v0 = vadd.f32 %v525_v62, %v481_v60  ;;  %v526_v1 = vpop.f32.mrb[4].mxu1  ;;  %v483_v2 = vpop.f32.mrb[5].mxu0  ;;  %v344_v62 = vld [vmem:[%s943_s4 + $0x10] sm:$0xff] }
 0x102   :  { %v484_v3 = vadd.f32 %v483_v2, %v482_v63  ;;  %v527_v4 = vpop.f32.mrb[5].mxu1  ;;  %v345_v63 = vld [vmem:[%s943_s4 + $0x18] sm:$0xff] }
 0x103   :  { %v276_v5 = vadd.f32 %v263_v0, %v258_v57  ;;  %v528_v6 = vadd.f32 %v527_v4, %v526_v1 }
 0x104   :  { %v485_v7 = vpop.f32.mrb[6].mxu0 }
 0x105   :  { %v268_v8 = vadd.f32 %v528_v6, %v484_v3  ;;  %v529_v9 = vpop.f32.mrb[6].mxu1  ;;  %v486_v10 = vpop.f32.mrb[7].mxu0 }
 0x106   :  { %v487_v11 = vadd.f32 %v486_v10, %v485_v7  ;;  %v530_v12 = vpop.f32.mrb[7].mxu1 }
 0x107   :  { %v277_v13 = vadd.f32 %v276_v5, %v268_v8  ;;  %v531_v14 = vadd.f32 %v530_v12, %v529_v9 }
 0x109   :  { %v273_v15 = vadd.f32 %v531_v14, %v487_v11  ;;  %v341_v14 = vld [vmem:[%s944_s5] sm:$0x3] }
 0x10b   :  { %v278_v16 = vadd.f32 %v277_v13, %v273_v15 }
 0x10d   :  { %v279_v17 = vrot.slane %v278_v16, 4 }
 0x10f   :  { %v280_v18 = vadd.f32 %v279_v17, %v278_v16 }
 0x111   :  { %v281_v19 = vrot.slane %v280_v18, 2 }
 0x113   :  { %v282_v20 = vadd.f32 %v281_v19, %v280_v18  ;;  %v428_v18 = vld [vmem:[%s945_s6] sm:$0x3] }
 0x115   :  { %v283_v21 = vrot.slane %v282_v20, 1 }
 0x117   :  { %v284_v22 = vadd.f32 %v283_v21, %v282_v20 }
 0x119   :  { %v285_v23 = vmul.f32 0.03125, %v284_v22 }
 0x11b   :  { %v286_v24 = vsub.f32 %v258_v57, %v285_v23  ;;  %v287_v25 = vsub.f32 %v263_v0, %v285_v23  ;;  %v288_v26 = vsub.f32 %v268_v8, %v285_v23  ;;  %v289_v27 = vsub.f32 %v273_v15, %v285_v23 }
 0x11d   :  { %v290_v28 = vmul.f32 %v286_v24, %v286_v24  ;;  %v291_v29 = vmul.f32 %v287_v25, %v287_v25  ;;  %v292_v30 = vmul.f32 %v288_v26, %v288_v26  ;;  %v293_v32 = vmul.f32 %v289_v27, %v289_v27 }
 0x11f   :  { %v294_v31 = vadd.f32 %v291_v29, %v290_v28 }
 0x121   :  { %v295_v33 = vadd.f32 %v294_v31, %v292_v30 }
 0x123   :  { %v296_v34 = vadd.f32 %v295_v33, %v293_v32 }
 0x125   :  { %v297_v35 = vrot.slane %v296_v34, 4 }
 0x127   :  { %v298_v36 = vadd.f32 %v297_v35, %v296_v34 }
 0x129   :  { %v299_v37 = vrot.slane %v298_v36, 2 }
 0x12b   :  { %v300_v38 = vadd.f32 %v299_v37, %v298_v36 }
 0x12d   :  { %v301_v39 = vrot.slane %v300_v38, 1 }
 0x12f   :  { %v302_v40 = vadd.f32 %v301_v39, %v300_v38 }
 0x131   :  { %v303_v41 = vmul.f32 0.03125, %v302_v40 }
 0x133   :  { %v305_v42 = vadd.f32 1e-05, %v303_v41 }
 0x135   :  { %621 = vrsqrt.f32 %v305_v42 }
 0x13f   :  { %v622_v47 = vpop.eup %621 }
 0x140   :  { %v307_v49 = vmul.f32 %v622_v47, %v304_v45 }
 0x142   :  { %v312_v50 = vrot.slane %v307_v49, %v311_v46 }
 0x144   :  { %v316_v52 = vmul.f32 %v312_v50, %v288_v26  ;;  %v317_v53 = vmul.f32 %v312_v50, %v289_v27  ;;  %v314_v54 = vmul.f32 %v312_v50, %v286_v24  ;;  %v315_v55 = vmul.f32 %v312_v50, %v287_v25 }
 0x146   :  { %v328_v56 = vadd.f32 %v442_v51, %v317_v53  ;;  %v325_v57 = vadd.f32 %v442_v51, %v314_v54  ;;  %v326_v58 = vadd.f32 %v442_v51, %v315_v55  ;;  %v327_v60 = vadd.f32 %v442_v51, %v316_v52 }
 0x148   :  { %v336_v0 = vmul.f32 0.2, %v328_v56  ;;  %vm329_vm1 = vcmp.ge.f32.partialorder %v325_v57, 0.0  ;;  %vm330_vm2 = vcmp.ge.f32.partialorder %v326_v58, 0.0  ;;  %v333_v1 = vmul.f32 0.2, %v325_v57 }
 0x149   :  { %v334_v2 = vmul.f32 0.2, %v326_v58  ;;  %vm331_vm3 = vcmp.ge.f32.partialorder %v327_v60, 0.0  ;;  %vm332_vm4 = vcmp.ge.f32.partialorder %v328_v56, 0.0  ;;  %v335_v3 = vmul.f32 0.2, %v327_v60 }
 0x14a   :  { %v337_v4 = vsel %vm329_vm1, %v325_v57, %v333_v1  ;;  %v340_v5 = vsel %vm332_vm4, %v328_v56, %v336_v0 }
 0x14b   :  { %v338_v6 = vsel %vm330_vm2, %v326_v58, %v334_v2  ;;  %v346_v7 = vmul.f32 %v342_v59, %v337_v4  ;;  %v339_v8 = vsel %vm331_vm3, %v327_v60, %v335_v3  ;;  %v349_v9 = vmul.f32 %v345_v63, %v340_v5 }
 0x14c   :  { %v347_v10 = vmul.f32 %v343_v61, %v338_v6  ;;  %v348_v11 = vmul.f32 %v344_v62, %v339_v8 }
 0x14e   :  { %v613_v12 = vpack.c.bf16 %v347_v10, %v346_v7  ;;  %v616_v13 = vpack.c.bf16 %v349_v9, %v348_v11 }
 0x150   :  { %614 = vmatpush3.bf16.msra.mxu0 %v613_v12 }
 0x151   :  { %615 = vmatprep.subr.bf16.mxu0 %v627_v48 }
 0x154   :  { %617 = vmatpush3.bf16.msra.mxu0 %v616_v13 }
 0x157   :  { %546 = vmatmul.mubr.msk.f32.vlgmr.msra.gmra.mrb[8].mxu0 %vm350_vm5, %v341_v14 }
 0x22a   :  { %v420_v15 = vpop.f32.mrb[8].mxu0 }
 0x22b   :  { %v547_v16 = vpop.f32.mrb[9].mxu0  ;;  %v425_v17 = vsel %vm424_vm6, %v420_v15, 0.0 }
 0x22c   :  { %426 = vadd.xlane.f32.xlu0 %v425_v17 }
 0x2b9   :  { %v427_v19 = vpop.xlane.xlu0 %426 }
 0x2ba   :  { %v429_v20 = vadd.f32 %v428_v18, %v427_v19 }
 0x2bc   :  { %v430_v21 = vsub.f32 0.0, %v429_v20 }
 0x2be   :  { %v431_v48 = vmul.f32 1.442695, %v430_v21 }
 0x2c0   :  { %623 = vpow2.f32 %v431_v48 }
 0x2ca   :  { %v624_v22 = vpop.eup %623 }
 0x2cb   :  { %v433_v23 = vadd.f32 1.0, %v624_v22 }
 0x2cd   :  { %625 = vrcp.f32 %v433_v23 }
 0x2d7   :  { %v626_v24 = vpop.eup %625 }
 0x2d8   :  { %437 = vst.msk [vmem:[%s946_s7] sm:$0x3] %vm436_vm7, %v626_v24 }

</bundles_post_ra>
